<compile_context>
chip_gen: v6e
topology: v6e:2x2x1
jax: 0.10.0
libtpu: 0.0.40
codegen_flags: <defaults>
</compile_context>

<pallas_src>
import functools

import jax
import jax.numpy as jnp
from jax import lax
from jax.experimental import pallas as pl
from jax.experimental.pallas import tpu as pltpu


def _attention_kernel(x_ref, wqkv_ref, wout_ref, bout_ref, o_ref,
                      qkv_scr, out_scr, *, heads, dim_head, scale):
    H, D = heads, dim_head
    HD = H * D

    x = x_ref[0]                                            # (C, N) f32

    # QKV projection: (3*HD, C) @ (C, N) -> (3*HD, N).  Standard MXU matmul,
    # weight used in its native (out_ch, in_ch) orientation (no .T).
    qkv_scr[...] = jnp.dot(wqkv_ref[...], x,
                           preferred_element_type=jnp.float32)

    # Per-head attention (H is small and static -> unrolled Python loop).
    # D-row slices are sublane-aligned (D % 8 == 0); N stays on the lane axis.
    for h in range(H):
        q_dn = qkv_scr[h * D:(h + 1) * D, :]                # (D, N)
        k_dn = qkv_scr[HD + h * D:HD + (h + 1) * D, :]      # (D, N)
        v_dn = qkv_scr[2 * HD + h * D:2 * HD + (h + 1) * D, :]

        # Small in-VMEM transpose so sim is a standard (N,D)x(D,N) MXU matmul;
        # the scale multiply lands on the small (N, D) operand, not on (N, N).
        q_nd = q_dn.T * scale                               # (N, D)
        sim = jnp.dot(q_nd, k_dn,
                      preferred_element_type=jnp.float32)   # (N, N)

        # Numerically-stable softmax over the lane (j) axis.  Denominator via
        # EUP reciprocal + multiply instead of a full (N, N) divide.
        sim = sim - jnp.max(sim, axis=-1, keepdims=True)
        p = jnp.exp(sim)
        inv_l = pl.reciprocal(jnp.sum(p, axis=-1, keepdims=True), approx=True)
        attn = p * inv_l                                    # (N, N)

        # out[d, i] = sum_j v[d, j] * attn[i, j]   (transposed-rhs matmul),
        # written back in (D, N) layout so the store is sublane-aligned.
        out_scr[h * D:(h + 1) * D, :] = lax.dot_general(
            v_dn, attn, (((1,), (1,)), ((), ())),
            preferred_element_type=jnp.float32)             # (D, N)

    # Output projection + bias: (C, HD) @ (HD, N) + (C, 1) -> (C, N)
    res = jnp.dot(wout_ref[...], out_scr[...],
                  preferred_element_type=jnp.float32)
    o_ref[0] = (res + bout_ref[...]).astype(o_ref.dtype)


def attention_pallas(x, w_qkv, w_out, b_out, *, heads=4, dim_head=32):
    """x: (B, C, N); w_qkv: (3*heads*dim_head, C); w_out: (C, heads*dim_head);
    b_out: (C,).  Returns (B, C, N) — same semantics as the PyTorch module."""
    B, C, N = x.shape
    HD = heads * dim_head
    assert w_qkv.shape == (3 * HD, C)
    assert w_out.shape == (C, HD)
    scale = float(dim_head) ** -0.5
    b2d = b_out.reshape(C, 1)

    kernel = functools.partial(_attention_kernel,
                               heads=heads, dim_head=dim_head, scale=scale)

    cost = pl.CostEstimate(
        flops=B * (2 * (3 * HD) * C * N            # qkv projection
                   + heads * 4 * N * N * dim_head  # sim + out matmuls
                   + 2 * C * HD * N),              # output projection
        transcendentals=B * heads * N * N,         # softmax exp
        bytes_accessed=4 * (2 * B * C * N + 3 * HD * C + C * HD + C),
    )

    return pl.pallas_call(
        kernel,
        out_shape=jax.ShapeDtypeStruct((B, C, N), x.dtype),
        grid_spec=pltpu.PrefetchScalarGridSpec(
            num_scalar_prefetch=0,
            grid=(B,),
            in_specs=[
                pl.BlockSpec((1, C, N), lambda b: (b, 0, 0)),      # x tile
                pl.BlockSpec((3 * HD, C), lambda b: (0, 0)),       # qkv weight (resident)
                pl.BlockSpec((C, HD), lambda b: (0, 0)),           # out weight (resident)
                pl.BlockSpec((C, 1), lambda b: (0, 0)),            # out bias  (resident)
            ],
            out_specs=pl.BlockSpec((1, C, N), lambda b: (b, 0, 0)),
            scratch_shapes=[
                pltpu.VMEM((3 * HD, N), jnp.float32),              # qkv staging
                pltpu.VMEM((HD, N), jnp.float32),                  # attention output
            ],
        ),
        compiler_params=pltpu.CompilerParams(
            dimension_semantics=("parallel",),
            vmem_limit_bytes=32 * 1024 * 1024,
        ),
        cost_estimate=cost,
    )(x, w_qkv, w_out, b2d)


def attention_ref(x, w_qkv, w_out, b_out, heads, dim_head):
    """Pure-JAX reference mirroring the PyTorch forward."""
    b, c, n = x.shape
    hd = heads * dim_head
    scale = float(dim_head) ** -0.5
    hi = lax.Precision.HIGHEST
    qkv = jnp.einsum('oc,bcn->bon', w_qkv, x, precision=hi)
    q, k, v = qkv[:, :hd], qkv[:, hd:2 * hd], qkv[:, 2 * hd:]
    q = q.reshape(b, heads, dim_head, n) * scale
    k = k.reshape(b, heads, dim_head, n)
    v = v.reshape(b, heads, dim_head, n)
    sim = jnp.einsum('bhdi,bhdj->bhij', q, k, precision=hi)
    attn = jax.nn.softmax(sim, axis=-1)
    out = jnp.einsum('bhij,bhdj->bhid', attn, v, precision=hi)      # (b,h,n,d)
    out = jnp.transpose(out, (0, 1, 3, 2)).reshape(b, hd, n)        # b (h d) n
    return jnp.einsum('ok,bkn->bon', w_out, out, precision=hi) + b_out[None, :, None]


if __name__ == "__main__":
    key = jax.random.PRNGKey(0)
    kx, kw1, kw2, kb = jax.random.split(key, 4)

    # (batch, dim, sequence) — sequence = 16x16 feature map flattened.
    B, C, N = 2, 32, 256
    heads, dim_head = 4, 32
    HD = heads * dim_head

    x = jax.random.normal(kx, (B, C, N), dtype=jnp.float32)
    w_qkv = jax.random.normal(kw1, (3 * HD, C), dtype=jnp.float32) * 0.1
    w_out = jax.random.normal(kw2, (C, HD), dtype=jnp.float32) * 0.1
    b_out = jax.random.normal(kb, (C,), dtype=jnp.float32) * 0.1

    out = jax.block_until_ready(
        attention_pallas(x, w_qkv, w_out, b_out, heads=heads, dim_head=dim_head))

    ref = attention_ref(x, w_qkv, w_out, b_out, heads, dim_head)
    assert out.shape == x.shape
    assert jnp.allclose(out, ref, atol=2e-2, rtol=2e-2), \
        float(jnp.max(jnp.abs(out - ref)))

    print("KERNEL_OK")
</pallas_src>

<mosaic_0001>
module attributes {stable_mosaic.version = 11 : i64} {
  func.func @_attention_kernel(%arg0: i32, %arg1: memref<1x32x256xf32, #tpu.memory_space<vmem>>, %arg2: memref<384x32xf32, #tpu.memory_space<vmem>>, %arg3: memref<32x128xf32, #tpu.memory_space<vmem>>, %arg4: memref<32x1xf32, #tpu.memory_space<vmem>>, %arg5: memref<1x32x256xf32, #tpu.memory_space<vmem>>, %arg6: memref<384x256xf32, #tpu.memory_space<vmem>>, %arg7: memref<128x256xf32, #tpu.memory_space<vmem>>) attributes {dimension_semantics = [#tpu.dimension_semantics<parallel>], iteration_bounds = array<i64: 2>, scalar_prefetch = 0 : i64, scratch_operands = 2 : i64, tpu.core_type = #tpu.core_type<tc>, window_params = [{transform_indices = @transform_0, window_bounds = array<i64: 1, 32, 256>}, {pipeline_mode = #tpu.pipeline_mode<synchronous>, transform_indices = @transform_1, window_bounds = array<i64: 384, 32>}, {pipeline_mode = #tpu.pipeline_mode<synchronous>, transform_indices = @transform_2, window_bounds = array<i64: 32, 128>}, {pipeline_mode = #tpu.pipeline_mode<synchronous>, transform_indices = @transform_3, window_bounds = array<i64: 32, 1>}, {transform_indices = @transform_4, window_bounds = array<i64: 1, 32, 256>}]} {
    %c0 = arith.constant 0 : index
    %c0_0 = arith.constant 0 : index
    %c0_1 = arith.constant 0 : index
    %0 = vector.load %arg1[%c0, %c0_0, %c0_1] : memref<1x32x256xf32, #tpu.memory_space<vmem>>, vector<1x32x256xf32>
    %1 = vector.shape_cast %0 : vector<1x32x256xf32> to vector<32x256xf32>
    %c0_2 = arith.constant 0 : index
    %c0_3 = arith.constant 0 : index
    %2 = vector.load %arg2[%c0_2, %c0_3] : memref<384x32xf32, #tpu.memory_space<vmem>>, vector<384x32xf32>
    %cst = arith.constant dense<0.000000e+00> : vector<384x256xf32>
    %3 = tpu.matmul %2, %1, %cst {dimension_numbers = #tpu.dot_dimension_numbers<[1], [0], [0], [1], [0, 0, 1, 1], [], []>} : vector<384x32xf32>, vector<32x256xf32>, vector<384x256xf32> -> vector<384x256xf32>
    %c0_4 = arith.constant 0 : index
    %c0_5 = arith.constant 0 : index
    %4 = vector.load %arg6[%c0_4, %c0_5] : memref<384x256xf32, #tpu.memory_space<vmem>>, vector<384x256xf32>
    tpu.vector_store %arg6[%c0_4, %c0_5], %3 {strides = array<i32>} : memref<384x256xf32, #tpu.memory_space<vmem>>, vector<384x256xf32>,
    %c0_6 = arith.constant 0 : index
    %c0_7 = arith.constant 0 : index
    %5 = vector.load %arg6[%c0_6, %c0_7] : memref<384x256xf32, #tpu.memory_space<vmem>>, vector<32x256xf32>
    %c128 = arith.constant 128 : index
    %c0_8 = arith.constant 0 : index
    %6 = vector.load %arg6[%c128, %c0_8] : memref<384x256xf32, #tpu.memory_space<vmem>>, vector<32x256xf32>
    %c256 = arith.constant 256 : index
    %c0_9 = arith.constant 0 : index
    %7 = vector.load %arg6[%c256, %c0_9] : memref<384x256xf32, #tpu.memory_space<vmem>>, vector<32x256xf32>
    %8 = tpu.transpose %5, [1, 0] : vector<32x256xf32> -> vector<256x32xf32>
    %cst_10 = arith.constant 0.176776692 : f32
    %9 = vector.broadcast %cst_10 : f32 to vector<256x32xf32>
    %10 = arith.mulf %8, %9 : vector<256x32xf32>
    %cst_11 = arith.constant dense<0.000000e+00> : vector<256x256xf32>
    %11 = tpu.matmul %10, %6, %cst_11 {dimension_numbers = #tpu.dot_dimension_numbers<[1], [0], [0], [1], [0, 0, 1, 1], [], []>} : vector<256x32xf32>, vector<32x256xf32>, vector<256x256xf32> -> vector<256x256xf32>
    %cst_12 = arith.constant dense<0xFF800000> : vector<256xf32>
    %12 = vector.multi_reduction <maximumf>, %11, %cst_12 [1] : vector<256x256xf32> to vector<256xf32>
    %13 = vector.shape_cast %12 : vector<256xf32> to vector<256x1xf32>
    %14 = vector.broadcast %13 : vector<256x1xf32> to vector<256x256xf32>
    %15 = arith.subf %11, %14 : vector<256x256xf32>
    %16 = math.exp %15 : vector<256x256xf32>
    %cst_13 = arith.constant dense<0.000000e+00> : vector<256xf32>
    %17 = vector.multi_reduction <add>, %16, %cst_13 [1] : vector<256x256xf32> to vector<256xf32>
    %18 = vector.shape_cast %17 : vector<256xf32> to vector<256x1xf32>
    %19 = tpu.reciprocal %18 {approx = true} : vector<256x1xf32> -> vector<256x1xf32>
    %20 = vector.broadcast %19 : vector<256x1xf32> to vector<256x256xf32>
    %21 = arith.mulf %16, %20 : vector<256x256xf32>
    %cst_14 = arith.constant dense<0.000000e+00> : vector<32x256xf32>
    %22 = tpu.matmul %7, %21, %cst_14 {dimension_numbers = #tpu.dot_dimension_numbers<[1], [1], [0], [0], [0, 0, 1, 0], [], []>} : vector<32x256xf32>, vector<256x256xf32>, vector<32x256xf32> -> vector<32x256xf32>
    %c0_15 = arith.constant 0 : index
    %c0_16 = arith.constant 0 : index
    %23 = vector.load %arg7[%c0_15, %c0_16] : memref<128x256xf32, #tpu.memory_space<vmem>>, vector<32x256xf32>
    tpu.vector_store %arg7[%c0_15, %c0_16], %22 {strides = array<i32>} : memref<128x256xf32, #tpu.memory_space<vmem>>, vector<32x256xf32>,
    %c32 = arith.constant 32 : index
    %c0_17 = arith.constant 0 : index
    %24 = vector.load %arg6[%c32, %c0_17] : memref<384x256xf32, #tpu.memory_space<vmem>>, vector<32x256xf32>
    %c160 = arith.constant 160 : index
    %c0_18 = arith.constant 0 : index
    %25 = vector.load %arg6[%c160, %c0_18] : memref<384x256xf32, #tpu.memory_space<vmem>>, vector<32x256xf32>
    %c288 = arith.constant 288 : index
    %c0_19 = arith.constant 0 : index
    %26 = vector.load %arg6[%c288, %c0_19] : memref<384x256xf32, #tpu.memory_space<vmem>>, vector<32x256xf32>
    %27 = tpu.transpose %24, [1, 0] : vector<32x256xf32> -> vector<256x32xf32>
    %cst_20 = arith.constant 0.176776692 : f32
    %28 = vector.broadcast %cst_20 : f32 to vector<256x32xf32>
    %29 = arith.mulf %27, %28 : vector<256x32xf32>
    %cst_21 = arith.constant dense<0.000000e+00> : vector<256x256xf32>
    %30 = tpu.matmul %29, %25, %cst_21 {dimension_numbers = #tpu.dot_dimension_numbers<[1], [0], [0], [1], [0, 0, 1, 1], [], []>} : vector<256x32xf32>, vector<32x256xf32>, vector<256x256xf32> -> vector<256x256xf32>
    %cst_22 = arith.constant dense<0xFF800000> : vector<256xf32>
    %31 = vector.multi_reduction <maximumf>, %30, %cst_22 [1] : vector<256x256xf32> to vector<256xf32>
    %32 = vector.shape_cast %31 : vector<256xf32> to vector<256x1xf32>
    %33 = vector.broadcast %32 : vector<256x1xf32> to vector<256x256xf32>
    %34 = arith.subf %30, %33 : vector<256x256xf32>
    %35 = math.exp %34 : vector<256x256xf32>
    %cst_23 = arith.constant dense<0.000000e+00> : vector<256xf32>
    %36 = vector.multi_reduction <add>, %35, %cst_23 [1] : vector<256x256xf32> to vector<256xf32>
    %37 = vector.shape_cast %36 : vector<256xf32> to vector<256x1xf32>
    %38 = tpu.reciprocal %37 {approx = true} : vector<256x1xf32> -> vector<256x1xf32>
    %39 = vector.broadcast %38 : vector<256x1xf32> to vector<256x256xf32>
    %40 = arith.mulf %35, %39 : vector<256x256xf32>
    %cst_24 = arith.constant dense<0.000000e+00> : vector<32x256xf32>
    %41 = tpu.matmul %26, %40, %cst_24 {dimension_numbers = #tpu.dot_dimension_numbers<[1], [1], [0], [0], [0, 0, 1, 0], [], []>} : vector<32x256xf32>, vector<256x256xf32>, vector<32x256xf32> -> vector<32x256xf32>
    %c32_25 = arith.constant 32 : index
    %c0_26 = arith.constant 0 : index
    %42 = vector.load %arg7[%c32_25, %c0_26] : memref<128x256xf32, #tpu.memory_space<vmem>>, vector<32x256xf32>
    tpu.vector_store %arg7[%c32_25, %c0_26], %41 {strides = array<i32>} : memref<128x256xf32, #tpu.memory_space<vmem>>, vector<32x256xf32>,
    %c64 = arith.constant 64 : index
    %c0_27 = arith.constant 0 : index
    %43 = vector.load %arg6[%c64, %c0_27] : memref<384x256xf32, #tpu.memory_space<vmem>>, vector<32x256xf32>
    %c192 = arith.constant 192 : index
    %c0_28 = arith.constant 0 : index
    %44 = vector.load %arg6[%c192, %c0_28] : memref<384x256xf32, #tpu.memory_space<vmem>>, vector<32x256xf32>
    %c320 = arith.constant 320 : index
    %c0_29 = arith.constant 0 : index
    %45 = vector.load %arg6[%c320, %c0_29] : memref<384x256xf32, #tpu.memory_space<vmem>>, vector<32x256xf32>
    %46 = tpu.transpose %43, [1, 0] : vector<32x256xf32> -> vector<256x32xf32>
    %cst_30 = arith.constant 0.176776692 : f32
    %47 = vector.broadcast %cst_30 : f32 to vector<256x32xf32>
    %48 = arith.mulf %46, %47 : vector<256x32xf32>
    %cst_31 = arith.constant dense<0.000000e+00> : vector<256x256xf32>
    %49 = tpu.matmul %48, %44, %cst_31 {dimension_numbers = #tpu.dot_dimension_numbers<[1], [0], [0], [1], [0, 0, 1, 1], [], []>} : vector<256x32xf32>, vector<32x256xf32>, vector<256x256xf32> -> vector<256x256xf32>
    %cst_32 = arith.constant dense<0xFF800000> : vector<256xf32>
    %50 = vector.multi_reduction <maximumf>, %49, %cst_32 [1] : vector<256x256xf32> to vector<256xf32>
    %51 = vector.shape_cast %50 : vector<256xf32> to vector<256x1xf32>
    %52 = vector.broadcast %51 : vector<256x1xf32> to vector<256x256xf32>
    %53 = arith.subf %49, %52 : vector<256x256xf32>
    %54 = math.exp %53 : vector<256x256xf32>
    %cst_33 = arith.constant dense<0.000000e+00> : vector<256xf32>
    %55 = vector.multi_reduction <add>, %54, %cst_33 [1] : vector<256x256xf32> to vector<256xf32>
    %56 = vector.shape_cast %55 : vector<256xf32> to vector<256x1xf32>
    %57 = tpu.reciprocal %56 {approx = true} : vector<256x1xf32> -> vector<256x1xf32>
    %58 = vector.broadcast %57 : vector<256x1xf32> to vector<256x256xf32>
    %59 = arith.mulf %54, %58 : vector<256x256xf32>
    %cst_34 = arith.constant dense<0.000000e+00> : vector<32x256xf32>
    %60 = tpu.matmul %45, %59, %cst_34 {dimension_numbers = #tpu.dot_dimension_numbers<[1], [1], [0], [0], [0, 0, 1, 0], [], []>} : vector<32x256xf32>, vector<256x256xf32>, vector<32x256xf32> -> vector<32x256xf32>
    %c64_35 = arith.constant 64 : index
    %c0_36 = arith.constant 0 : index
    %61 = vector.load %arg7[%c64_35, %c0_36] : memref<128x256xf32, #tpu.memory_space<vmem>>, vector<32x256xf32>
    tpu.vector_store %arg7[%c64_35, %c0_36], %60 {strides = array<i32>} : memref<128x256xf32, #tpu.memory_space<vmem>>, vector<32x256xf32>,
    %c96 = arith.constant 96 : index
    %c0_37 = arith.constant 0 : index
    %62 = vector.load %arg6[%c96, %c0_37] : memref<384x256xf32, #tpu.memory_space<vmem>>, vector<32x256xf32>
    %c224 = arith.constant 224 : index
    %c0_38 = arith.constant 0 : index
    %63 = vector.load %arg6[%c224, %c0_38] : memref<384x256xf32, #tpu.memory_space<vmem>>, vector<32x256xf32>
    %c352 = arith.constant 352 : index
    %c0_39 = arith.constant 0 : index
    %64 = vector.load %arg6[%c352, %c0_39] : memref<384x256xf32, #tpu.memory_space<vmem>>, vector<32x256xf32>
    %65 = tpu.transpose %62, [1, 0] : vector<32x256xf32> -> vector<256x32xf32>
    %cst_40 = arith.constant 0.176776692 : f32
    %66 = vector.broadcast %cst_40 : f32 to vector<256x32xf32>
    %67 = arith.mulf %65, %66 : vector<256x32xf32>
    %cst_41 = arith.constant dense<0.000000e+00> : vector<256x256xf32>
    %68 = tpu.matmul %67, %63, %cst_41 {dimension_numbers = #tpu.dot_dimension_numbers<[1], [0], [0], [1], [0, 0, 1, 1], [], []>} : vector<256x32xf32>, vector<32x256xf32>, vector<256x256xf32> -> vector<256x256xf32>
    %cst_42 = arith.constant dense<0xFF800000> : vector<256xf32>
    %69 = vector.multi_reduction <maximumf>, %68, %cst_42 [1] : vector<256x256xf32> to vector<256xf32>
    %70 = vector.shape_cast %69 : vector<256xf32> to vector<256x1xf32>
    %71 = vector.broadcast %70 : vector<256x1xf32> to vector<256x256xf32>
    %72 = arith.subf %68, %71 : vector<256x256xf32>
    %73 = math.exp %72 : vector<256x256xf32>
    %cst_43 = arith.constant dense<0.000000e+00> : vector<256xf32>
    %74 = vector.multi_reduction <add>, %73, %cst_43 [1] : vector<256x256xf32> to vector<256xf32>
    %75 = vector.shape_cast %74 : vector<256xf32> to vector<256x1xf32>
    %76 = tpu.reciprocal %75 {approx = true} : vector<256x1xf32> -> vector<256x1xf32>
    %77 = vector.broadcast %76 : vector<256x1xf32> to vector<256x256xf32>
    %78 = arith.mulf %73, %77 : vector<256x256xf32>
    %cst_44 = arith.constant dense<0.000000e+00> : vector<32x256xf32>
    %79 = tpu.matmul %64, %78, %cst_44 {dimension_numbers = #tpu.dot_dimension_numbers<[1], [1], [0], [0], [0, 0, 1, 0], [], []>} : vector<32x256xf32>, vector<256x256xf32>, vector<32x256xf32> -> vector<32x256xf32>
    %c96_45 = arith.constant 96 : index
    %c0_46 = arith.constant 0 : index
    %80 = vector.load %arg7[%c96_45, %c0_46] : memref<128x256xf32, #tpu.memory_space<vmem>>, vector<32x256xf32>
    tpu.vector_store %arg7[%c96_45, %c0_46], %79 {strides = array<i32>} : memref<128x256xf32, #tpu.memory_space<vmem>>, vector<32x256xf32>,
    %c0_47 = arith.constant 0 : index
    %c0_48 = arith.constant 0 : index
    %81 = vector.load %arg3[%c0_47, %c0_48] : memref<32x128xf32, #tpu.memory_space<vmem>>, vector<32x128xf32>
    %c0_49 = arith.constant 0 : index
    %c0_50 = arith.constant 0 : index
    %82 = vector.load %arg7[%c0_49, %c0_50] : memref<128x256xf32, #tpu.memory_space<vmem>>, vector<128x256xf32>
    %cst_51 = arith.constant dense<0.000000e+00> : vector<32x256xf32>
    %83 = tpu.matmul %81, %82, %cst_51 {dimension_numbers = #tpu.dot_dimension_numbers<[1], [0], [0], [1], [0, 0, 1, 1], [], []>} : vector<32x128xf32>, vector<128x256xf32>, vector<32x256xf32> -> vector<32x256xf32>
    %c0_52 = arith.constant 0 : index
    %c0_53 = arith.constant 0 : index
    %84 = vector.load %arg4[%c0_52, %c0_53] : memref<32x1xf32, #tpu.memory_space<vmem>>, vector<32x1xf32>
    %85 = vector.broadcast %84 : vector<32x1xf32> to vector<32x256xf32>
    %86 = arith.addf %83, %85 : vector<32x256xf32>
    %c0_54 = arith.constant 0 : index
    %c0_55 = arith.constant 0 : index
    %c0_56 = arith.constant 0 : index
    %87 = vector.load %arg5[%c0_54, %c0_55, %c0_56] : memref<1x32x256xf32, #tpu.memory_space<vmem>>, vector<1x32x256xf32>
    %88 = vector.shape_cast %87 : vector<1x32x256xf32> to vector<32x256xf32>
    %89 = vector.shape_cast %86 : vector<32x256xf32> to vector<1x32x256xf32>
    tpu.vector_store %arg5[%c0_54, %c0_55, %c0_56], %89 {strides = array<i32>} : memref<1x32x256xf32, #tpu.memory_space<vmem>>, vector<1x32x256xf32>,
    return
  }
  func.func @transform_0(%arg0: i32) -> (i32, i32, i32) {
    %c0_i32 = arith.constant 0 : i32
    %c0_i32_0 = arith.constant 0 : i32
    %c0_i32_1 = arith.constant 0 : i32
    return %arg0, %c0_i32, %c0_i32_0 : i32, i32, i32
  }
  func.func @transform_1(%arg0: i32) -> (i32, i32) {
    %c0_i32 = arith.constant 0 : i32
    %c0_i32_0 = arith.constant 0 : i32
    %c0_i32_1 = arith.constant 0 : i32
    return %c0_i32, %c0_i32_0 : i32, i32
  }
  func.func @transform_2(%arg0: i32) -> (i32, i32) {
    %c0_i32 = arith.constant 0 : i32
    %c0_i32_0 = arith.constant 0 : i32
    %c0_i32_1 = arith.constant 0 : i32
    return %c0_i32, %c0_i32_0 : i32, i32
  }
  func.func @transform_3(%arg0: i32) -> (i32, i32) {
    %c0_i32 = arith.constant 0 : i32
    %c0_i32_0 = arith.constant 0 : i32
    %c0_i32_1 = arith.constant 0 : i32
    return %c0_i32, %c0_i32_0 : i32, i32
  }
  func.func @transform_4(%arg0: i32) -> (i32, i32, i32) {
    %c0_i32 = arith.constant 0 : i32
    %c0_i32_0 = arith.constant 0 : i32
    %c0_i32_1 = arith.constant 0 : i32
    return %arg0, %c0_i32, %c0_i32_0 : i32, i32, i32
  }
}

</mosaic_0001>

<bundles_post_ra>
// kernel: tpu_custom_call.1
= control target key start
LH: loop header
LB: loop body
LE: loop exit
PB: predicated region body
PF: predicated region fallthrough
CT: control target
= control target key end

     0   :  { %9 = vsyncpa [#allocation5], 0  ;;  %s9332_s0 = inlined_call_operand.vmem [shape: f32[2,32,256], index: 0, kind: input, shape index: {}]   ;;  %s9333_s1 = inlined_call_operand.vmem [shape: f32[384,32], index: 1, kind: input, shape index: {}]   ;;  %s9334_s2 = inlined_call_operand.vmem [shape: f32[32,128], index: 2, kind: input, shape index: {}]   ;;  %s9335_s3 = inlined_call_operand.vmem [shape: f32[32,1], index: 3, kind: input, shape index: {}]   ;;  %s9336_s4 = inlined_call_operand.hbm [shape: f32[2,32,256], index: 4, kind: output, shape index: {}]  }
   0x1   :  { %11 = vsyncpa [#allocation5 + $0x1], 0  ;;  %s6374_s15 = smov 0   ;;  %s6376_s16 = smov 0  }
   0x2   :  { %s6378_s17 = smov 0   ;;  %s6380_s18 = smov 0  }
   0x3 LB: > { %s6395_s19 = sadd.s32 4294967295, %s6342_s18   ;;  %s5279_s20 = sadd.s32 4294967294, %s6342_s18   ;;  %s6342_s18 = sphi %s6380_s18, %s9856_s18   ;;  %s6338_s17 = sphi %s6378_s17, %s9855_s17   ;;  %s6334_s16 = sphi %s6376_s16, %s9854_s16   ;;  %s6330_s15 = sphi %s6374_s15, %s9853_s15  }
   0x4   : > { %s6399_s21 = sadd.s32 1, %s6342_s18   ;;  %s113_s22 = sadd.s32 1, %s6338_s17 }
   0x5   : > { %s110_s23 = ssub.s32 %s6342_s18, %s6399_s21  ;;  %p123_p0 = scmp.ne.s32.totalorder %s6338_s17, %s6334_s16 }
   0x6   : > { %p111_p1 = scmp.eq.s32.totalorder %s110_s23, 0  ;;  %p124_p2 = scmp.eq.s32.totalorder %s6395_s19, 1 }
   0x7   : > { %p129_p3 = scmp.ne.s32.totalorder %s6334_s16, %s6330_s15  ;;  %p130_p4 = scmp.eq.s32.totalorder %s5279_s20, 1 }
   0x8   : > { %s6410_s24 = scalar_select %p111_p1, %s6338_s17, %s113_s22  }
   0x9   : > { %p6412_p5 = por %p124_p2, %p123_p0  ;;  %p6416_p6 = por %p130_p4, %p129_p3 }
   0xa   : > { %p5282_p7 = scmp.ge.s32.totalorder %s6342_s18, 1  ;;  %p165_p8 = scmp.lt.s32.totalorder %s6342_s18, 3 }
   0xc   : > { %p166_p9 = pnand %p5282_p7, %p165_p8 }
   0xe   : > { %169 = sbr.rel (%p166_p9) target bundleno = 3664 (0xe50), region = 36 }
  0x13   : > { %p191_p10 = scmp.lt.s32.totalorder %s6395_s19, 1  ;;  %v9337_v0 = vmov 0.0   ;;  %v204_v9 = vld [vmem:[%s9333_s1] sm:$0xff]  ;;  %vm252_vm0 = vcmask 261120   ;;  %v205_v10 = vld [vmem:[%s9333_s1 + $0x8] sm:$0xff]  ;;  %v206_v11 = vld [vmem:[%s9333_s1 + $0x10] sm:$0xff] }
  0x14   : > { %461 = vmatprep.mubr.f32.mxu0 %v9337_v0  ;;  %1126 = vmatprep.mubr.f32.mxu1 %v9337_v0  ;;  %v207_v12 = vld [vmem:[%s9333_s1 + $0x18] sm:$0xff]  ;;  %v208_v13 = vld [vmem:[%s9333_s1 + $0x20] sm:$0xff]  ;;  %v209_v14 = vld [vmem:[%s9333_s1 + $0x28] sm:$0xff]  ;;  %s188_s22 = sand.u32 1, %s6334_s16   ;;  %s6346_s8 = smov [#allocation4]  }
  0x15   : > { %s192_s27 = scalar_select %p191_p10, %s6395_s19, 1  ;;  %v210_v15 = vld [vmem:[%s9333_s1 + $0x30] sm:$0xff]  ;;  %v211_v16 = vld [vmem:[%s9333_s1 + $0x38] sm:$0xff]  ;;  %v212_v17 = vld [vmem:[%s9333_s1 + $0x40] sm:$0xff] }
  0x16   : > { %v213_v18 = vld [vmem:[%s9333_s1 + $0x48] sm:$0xff]  ;;  %v214_v19 = vld [vmem:[%s9333_s1 + $0x50] sm:$0xff]  ;;  %v215_v20 = vld [vmem:[%s9333_s1 + $0x58] sm:$0xff]  ;;  %s5283_s23 = sshll.u32 %s188_s22, 6  ;;  %s6286_s9 = sshll.u32 %s6346_s8, 4  ;;  %s6287_s9 = int_to_ptr.vmem [resolvable:$false] %s6286_s9 }
  0x17   : > { %s5467_s28 = sshll.u32 %s192_s27, 6  ;;  %v216_v21 = vld [vmem:[%s9333_s1 + $0x60] sm:$0xff]  ;;  %v217_v22 = vld [vmem:[%s9333_s1 + $0x68] sm:$0xff]  ;;  %v218_v23 = vld [vmem:[%s9333_s1 + $0x70] sm:$0xff]  ;;  %s190_s27 = scalar_lea.vmem [#allocation4], %s5283_s23 }
  0x18   : > { %s195_s5 = scalar_lea.vmem %s9332_s0, %s5467_s28  ;;  %v219_v24 = vld [vmem:[%s9333_s1 + $0x78] sm:$0xff]  ;;  %v220_v25 = vld [vmem:[%s9333_s1 + $0x80] sm:$0xff]  ;;  %v221_v26 = vld [vmem:[%s9333_s1 + $0x88] sm:$0xff]  ;;  %s5468_s28 = sshll.u32 %s6395_s19, 10 }
  0x19   : > { %v203_v1 = vld [vmem:[%s195_s5 + $0x38] sm:$0xff]  ;;  %v202_v2 = vld [vmem:[%s195_s5 + $0x30] sm:$0xff]  ;;  %v201_v3 = vld [vmem:[%s195_s5 + $0x28] sm:$0xff]  ;;  %s5217_s29 = sshll.u32 %s190_s27, 4  ;;  %s9286_s6 = scalar_lea.hbm %s9336_s4, %s5468_s28  ;;  %s9288_s29 = int_to_ptr.vmem [resolvable:$true] %s5217_s29 }
  0x1a   : > { %421 = vmatprep.subr.mxu0 %v203_v1  ;;  %v200_v4 = vld [vmem:[%s195_s5 + $0x20] sm:$0xff]  ;;  %v199_v5 = vld [vmem:[%s195_s5 + $0x18] sm:$0xff]  ;;  %v198_v6 = vld [vmem:[%s195_s5 + $0x10] sm:$0xff]  ;;  %s9292_s19 = scalar_lea.sflag [#allocation5], %s188_s22  ;;  %s6282_s7 = scalar_lea.vmem %s9288_s29, 1024 }
  0x1b   : > { %422 = vmatpush1.msra.mxu0 %v202_v2  ;;  %v197_v7 = vld [vmem:[%s195_s5 + $0x8] sm:$0xff]  ;;  %v196_v8 = vld [vmem:[%s195_s5] sm:$0xff]  ;;  %v222_v27 = vld [vmem:[%s9333_s1 + $0x90] sm:$0xff]  ;;  %p6283_p11 = scmp.ne.s32.totalorder %s9288_s29, %s6282_s7  ;;  %s6288_s10 = scalar_lea.vmem %s6287_s9, 2048 }
  0x1c   : > { %423 = vmatprep.subr.mxu0 %v201_v3  ;;  %v223_v28 = vld [vmem:[%s9333_s1 + $0x98] sm:$0xff]  ;;  %p6289_p0 = scmp.lt.s32.totalorder %s9288_s29, %s6287_s9  ;;  %p6290_p1 = scmp.lt.s32.totalorder %s6288_s10, %s6282_s7 }
  0x1d   : > { %424 = vmatpush1.msra.mxu0 %v200_v4  ;;  %p6284_p12 = pnand %p6283_p11, %p6412_p5 }
  0x1e   : > { %425 = vmatprep.subr.mxu0 %v199_v5  ;;  %p6291_p2 = por %p6290_p1, %p6289_p0 }
  0x1f   : > { %426 = vmatpush1.msra.mxu0 %v198_v6  ;;  %p6285_p13 = pneg %p6284_p12 }
  0x20   : > { %427 = vmatprep.subr.mxu0 %v197_v7 }
  0x21   : > { %428 = vmatpush1.msra.mxu0 %v196_v8  ;;  %p6292_p3 = pnand %p6291_p2, %p6285_p13 }
  0x22   : > { %5286 = vmatmul.mubr.msk.f32.vlgmr.msra.gmra.mxu0 %vm252_vm0, %v204_v9 }
  0x23   : > { %467 = vmatprep.mubr.f32.mxu0 %v9337_v0 }
  0x26   : > { %5287 = vmatmul.mubr.msk.f32.gmra.mxu0 %vm252_vm0, %v205_v10 }
  0x27   : > { %473 = vmatprep.mubr.f32.mxu0 %v9337_v0 }
  0x2a   : > { %5288 = vmatmul.mubr.msk.f32.gmra.mxu0 %vm252_vm0, %v206_v11 }
  0x2b   : > { %479 = vmatprep.mubr.f32.mxu0 %v9337_v0 }
  0x2e   : > { %5289 = vmatmul.mubr.msk.f32.gmra.mxu0 %vm252_vm0, %v207_v12 }
  0x2f   : > { %485 = vmatprep.mubr.f32.mxu0 %v9337_v0 }
  0x32   : > { %5290 = vmatmul.mubr.msk.f32.gmra.mxu0 %vm252_vm0, %v208_v13 }
  0x33   : > { %491 = vmatprep.mubr.f32.mxu0 %v9337_v0 }
  0x36   : > { %5291 = vmatmul.mubr.msk.f32.gmra.mxu0 %vm252_vm0, %v209_v14 }
  0x37   : > { %497 = vmatprep.mubr.f32.mxu0 %v9337_v0 }
  0x3a   : > { %5292 = vmatmul.mubr.msk.f32.gmra.mxu0 %vm252_vm0, %v210_v15 }
  0x3b   : > { %503 = vmatprep.mubr.f32.mxu0 %v9337_v0 }
  0x3e   : > { %5293 = vmatmul.mubr.msk.f32.gmra.mxu0 %vm252_vm0, %v211_v16 }
  0x3f   : > { %509 = vmatprep.mubr.f32.mxu0 %v9337_v0 }
  0x42   : > { %5294 = vmatmul.mubr.msk.f32.gmra.mxu0 %vm252_vm0, %v212_v17 }
  0x43   : > { %515 = vmatprep.mubr.f32.mxu0 %v9337_v0 }
  0x46   : > { %5295 = vmatmul.mubr.msk.f32.gmra.mxu0 %vm252_vm0, %v213_v18 }
  0x47   : > { %521 = vmatprep.mubr.f32.mxu0 %v9337_v0 }
  0x4a   : > { %5296 = vmatmul.mubr.msk.f32.gmra.mxu0 %vm252_vm0, %v214_v19 }
  0x4b   : > { %527 = vmatprep.mubr.f32.mxu0 %v9337_v0 }
  0x4e   : > { %5297 = vmatmul.mubr.msk.f32.gmra.mxu0 %vm252_vm0, %v215_v20 }
  0x4f   : > { %533 = vmatprep.mubr.f32.mxu0 %v9337_v0 }
  0x52   : > { %5298 = vmatmul.mubr.msk.f32.gmra.mxu0 %vm252_vm0, %v216_v21 }
  0x53   : > { %539 = vmatprep.mubr.f32.mxu0 %v9337_v0 }
  0x56   : > { %5299 = vmatmul.mubr.msk.f32.gmra.mxu0 %vm252_vm0, %v217_v22 }
  0x57   : > { %545 = vmatprep.mubr.f32.mxu0 %v9337_v0 }
  0x5a   : > { %5300 = vmatmul.mubr.msk.f32.gmra.mxu0 %vm252_vm0, %v218_v23 }
  0x5b   : > { %551 = vmatprep.mubr.f32.mxu0 %v9337_v0 }
  0x5e   : > { %5301 = vmatmul.mubr.msk.f32.gmra.mxu0 %vm252_vm0, %v219_v24 }
  0x5f   : > { %557 = vmatprep.mubr.f32.mxu0 %v9337_v0 }
  0x62   : > { %5302 = vmatmul.mubr.msk.f32.gmra.mxu0 %vm252_vm0, %v220_v25 }
  0x63   : > { %563 = vmatprep.mubr.f32.mxu0 %v9337_v0 }
  0x66   : > { %5303 = vmatmul.mubr.msk.f32.gmra.mxu0 %vm252_vm0, %v221_v26 }
  0x67   : > { %569 = vmatprep.mubr.f32.mxu0 %v9337_v0 }
  0x6a   : > { %5304 = vmatmul.mubr.msk.f32.gmra.mxu0 %vm252_vm0, %v222_v27 }
  0x6b   : > { %575 = vmatprep.mubr.f32.mxu0 %v9337_v0 }
  0x6e   : > { %5305 = vmatmul.mubr.msk.f32.gmra.mxu0 %vm252_vm0, %v223_v28 }
  0x6f   : > { %581 = vmatprep.mubr.f32.mxu0 %v9337_v0 }
  0xe2   : > { %v463_v29 = vpop.f32.mrf.mxu0 }
  0xe3   : > { %870 = vxpose.xlu0.b32.start [1/4] (short) %v463_v29, 128 }
  0xe4   : > { %v465_v30 = vpop.f32.mrf.mxu0 }
  0xe5   : > { %902 = vxpose.xlu1.b32.start [1/4] (short) %v465_v30, 128 }
  0xe6   : > { %v469_v31 = vpop.f32.mrf.mxu0 }
  0xe7   : > { %871 = vxpose.xlu0.b32.cont [2/4] (short) %v469_v31, 128 }
  0xe8   : > { %v471_v32 = vpop.f32.mrf.mxu0 }
  0xe9   : > { %903 = vxpose.xlu1.b32.cont [2/4] (short) %v471_v32, 128 }
  0xea   : > { %v475_v33 = vpop.f32.mrf.mxu0 }
  0xeb   : > { %872 = vxpose.xlu0.b32.cont [3/4] (short) %v475_v33, 128 }
  0xec   : > { %v477_v34 = vpop.f32.mrf.mxu0 }
  0xed   : > { %904 = vxpose.xlu1.b32.cont [3/4] (short) %v477_v34, 128 }
  0xee   : > { %v481_v35 = vpop.f32.mrf.mxu0 }
  0xef   : > { %873 = vxpose.xlu0.b32.end [4/4] (short) %v481_v35, 128 }
  0xf0   : > { %v483_v36 = vpop.f32.mrf.mxu0 }
  0xf1   : > { %905 = vxpose.xlu1.b32.end [4/4] (short) %v483_v36, 128 }
  0xf2   : > { %v6529_v37 = vpop.f32.mrf.mxu0 }
  0xf3   : > { %9455 = vst [vmem:[#allocation7_spill] sm:$0xff] %v6529_v37 }
  0xf4   : > { %v6531_v38 = vpop.f32.mrf.mxu0 }
  0xf5   : > { %9456 = vst [vmem:[#allocation8_spill] sm:$0xff] %v6531_v38 }
  0xf6   : > { %v6533_v39 = vpop.f32.mrf.mxu0 }
  0xf7   : > { %9457 = vst [vmem:[#allocation9_spill] sm:$0xff] %v6533_v39 }
  0xf8   : > { %v6535_v40 = vpop.f32.mrf.mxu0 }
  0xf9   : > { %9458 = vst [vmem:[#allocation10_spill] sm:$0xff] %v6535_v40 }
  0xfa   : > { %v6537_v41 = vpop.f32.mrf.mxu0 }
  0xfb   : > { %9459 = vst [vmem:[#allocation11_spill] sm:$0xff] %v6537_v41 }
  0xfc   : > { %v6539_v42 = vpop.f32.mrf.mxu0 }
  0xfd   : > { %9460 = vst [vmem:[#allocation12_spill] sm:$0xff] %v6539_v42 }
  0xfe   : > { %v6541_v43 = vpop.f32.mrf.mxu0 }
  0xff   : > { %9461 = vst [vmem:[#allocation13_spill] sm:$0xff] %v6541_v43 }
 0x100   : > { %v6543_v44 = vpop.f32.mrf.mxu0 }
 0x101   : > { %9462 = vst [vmem:[#allocation14_spill] sm:$0xff] %v6543_v44 }
 0x102   : > { %v6545_v45 = vpop.f32.mrf.mxu0 }
 0x103   : > { %9463 = vst [vmem:[#allocation15_spill] sm:$0xff] %v6545_v45 }
 0x104   : > { %v6547_v46 = vpop.f32.mrf.mxu0 }
 0x105   : > { %9464 = vst [vmem:[#allocation16_spill] sm:$0xff] %v6547_v46 }
 0x106   : > { %v6549_v47 = vpop.f32.mrf.mxu0 }
 0x107   : > { %9465 = vst [vmem:[#allocation17_spill] sm:$0xff] %v6549_v47 }
 0x108   : > { %v6551_v48 = vpop.f32.mrf.mxu0 }
 0x109   : > { %9466 = vst [vmem:[#allocation18_spill] sm:$0xff] %v6551_v48 }
 0x10a   : > { %v6553_v49 = vpop.f32.mrf.mxu0 }
 0x10b   : > { %9467 = vst [vmem:[#allocation19_spill] sm:$0xff] %v6553_v49 }
 0x10c   : > { %v6555_v50 = vpop.f32.mrf.mxu0 }
 0x10d   : > { %9468 = vst [vmem:[#allocation20_spill] sm:$0xff] %v6555_v50 }
 0x10e   : > { %v6557_v51 = vpop.f32.mrf.mxu0 }
 0x10f   : > { %9469 = vst [vmem:[#allocation21_spill] sm:$0xff] %v6557_v51 }
 0x110   : > { %v6559_v52 = vpop.f32.mrf.mxu0 }
 0x111   : > { %9470 = vst [vmem:[#allocation22_spill] sm:$0xff] %v6559_v52 }
 0x112   : > { %v6561_v53 = vpop.f32.mrf.mxu0 }
 0x113   : > { %9471 = vst [vmem:[#allocation23_spill] sm:$0xff] %v6561_v53 }
 0x114   : > { %v6563_v54 = vpop.f32.mrf.mxu0 }
 0x115   : > { %9472 = vst [vmem:[#allocation24_spill] sm:$0xff] %v6563_v54 }
 0x116   : > { %v6565_v55 = vpop.f32.mrf.mxu0 }
 0x117   : > { %9473 = vst [vmem:[#allocation25_spill] sm:$0xff] %v6565_v55 }
 0x118   : > { %v6567_v56 = vpop.f32.mrf.mxu0 }
 0x119   : > { %9474 = vst [vmem:[#allocation26_spill] sm:$0xff] %v6567_v56 }
 0x11a   : > { %v6569_v57 = vpop.f32.mrf.mxu0 }
 0x11b   : > { %9475 = vst [vmem:[#allocation27_spill] sm:$0xff] %v6569_v57 }
 0x11c   : > { %v6571_v58 = vpop.f32.mrf.mxu0 }
 0x11d   : > { %9476 = vst [vmem:[#allocation28_spill] sm:$0xff] %v6571_v58 }
 0x11e   : > { %v6573_v59 = vpop.f32.mrf.mxu0 }
 0x11f   : > { %9477 = vst [vmem:[#allocation29_spill] sm:$0xff] %v6573_v59 }
 0x120   : > { %v6575_v60 = vpop.f32.mrf.mxu0 }
 0x121   : > { %9478 = vst [vmem:[#allocation30_spill] sm:$0xff] %v6575_v60 }
 0x122   : > { %v559_v61 = vpop.f32.mrf.mxu0 }
 0x124   : > { %v561_v62 = vpop.f32.mrf.mxu0 }
 0x126   : > { %v565_v63 = vpop.f32.mrf.mxu0 }
 0x128   : > { %v567_v1 = vpop.f32.mrf.mxu0 }
 0x12a   : > { %v571_v2 = vpop.f32.mrf.mxu0 }
 0x12c   : > { %v573_v3 = vpop.f32.mrf.mxu0 }
 0x12e   : > { %v577_v4 = vpop.f32.mrf.mxu0 }
 0x130   : > { %v579_v5 = vpop.f32.mrf.mxu0 }
 0x131   : > { %1086 = vmatprep.subr.mxu1 %v579_v5 }
 0x132   : > { %1087 = vmatpush1.msra.mxu1 %v577_v4 }
 0x133   : > { %1088 = vmatprep.subr.mxu1 %v573_v3 }
 0x134   : > { %1089 = vmatpush1.msra.mxu1 %v571_v2 }
 0x135   : > { %1090 = vmatprep.subr.mxu1 %v567_v1 }
 0x136   : > { %1091 = vmatpush1.msra.mxu1 %v565_v63 }
 0x137   : > { %1092 = vmatprep.subr.mxu1 %v561_v62 }
 0x138   : > { %1093 = vmatpush1.msra.mxu1 %v559_v61 }
 0x15f   : > { %v886_v6 = vpop.trf.xlu0 }
 0x160   : > { %v934_v7 = vmul.f32 0.17677669, %v886_v6 }
 0x161   : > { %v918_v22 = vpop.trf.xlu1 }
 0x162   : > { %5334 = vmatmul.mubr.msk.f32.vlgmr.msra.gmra.mxu1 %vm252_vm0, %v934_v7  ;;  %v950_v5 = vmul.f32 0.17677669, %v918_v22 }
 0x163   : > { %v887_v8 = vpop.trf.xlu0  ;;  %1132 = vmatprep.mubr.f32.mxu1 %v9337_v0 }
 0x164   : > { %v935_v9 = vmul.f32 0.17677669, %v887_v8 }
 0x165   : > { %v919_v26 = vpop.trf.xlu1 }
 0x166   : > { %5335 = vmatmul.mubr.msk.f32.gmra.mxu1 %vm252_vm0, %v935_v9  ;;  %v951_v7 = vmul.f32 0.17677669, %v919_v26 }
 0x167   : > { %v888_v10 = vpop.trf.xlu0  ;;  %1138 = vmatprep.mubr.f32.mxu1 %v9337_v0 }
 0x168   : > { %v936_v11 = vmul.f32 0.17677669, %v888_v10 }
 0x169   : > { %v920_v30 = vpop.trf.xlu1 }
 0x16a   : > { %5336 = vmatmul.mubr.msk.f32.gmra.mxu1 %vm252_vm0, %v936_v11  ;;  %v952_v8 = vmul.f32 0.17677669, %v920_v30 }
 0x16b   : > { %v889_v12 = vpop.trf.xlu0  ;;  %1144 = vmatprep.mubr.f32.mxu1 %v9337_v0 }
 0x16c   : > { %v937_v13 = vmul.f32 0.17677669, %v889_v12 }
 0x16d   : > { %v921_v34 = vpop.trf.xlu1 }
 0x16e   : > { %5337 = vmatmul.mubr.msk.f32.gmra.mxu1 %vm252_vm0, %v937_v13  ;;  %v953_v10 = vmul.f32 0.17677669, %v921_v34 }
 0x16f   : > { %v890_v14 = vpop.trf.xlu0  ;;  %1150 = vmatprep.mubr.f32.mxu1 %v9337_v0 }
 0x170   : > { %v938_v15 = vmul.f32 0.17677669, %v890_v14 }
 0x171   : > { %v922_v62 = vpop.trf.xlu1 }
 0x172   : > { %5338 = vmatmul.mubr.msk.f32.gmra.mxu1 %vm252_vm0, %v938_v15  ;;  %v954_v12 = vmul.f32 0.17677669, %v922_v62 }
 0x173   : > { %v891_v16 = vpop.trf.xlu0  ;;  %1156 = vmatprep.mubr.f32.mxu1 %v9337_v0 }
 0x174   : > { %v939_v17 = vmul.f32 0.17677669, %v891_v16 }
 0x175   : > { %v923_v3 = vpop.trf.xlu1 }
 0x176   : > { %5339 = vmatmul.mubr.msk.f32.gmra.mxu1 %vm252_vm0, %v939_v17  ;;  %v955_v13 = vmul.f32 0.17677669, %v923_v3 }
 0x177   : > { %v892_v18 = vpop.trf.xlu0  ;;  %1162 = vmatprep.mubr.f32.mxu1 %v9337_v0 }
 0x178   : > { %v940_v19 = vmul.f32 0.17677669, %v892_v18 }
 0x179   : > { %v924_v6 = vpop.trf.xlu1 }
 0x17a   : > { %5340 = vmatmul.mubr.msk.f32.gmra.mxu1 %vm252_vm0, %v940_v19  ;;  %v956_v15 = vmul.f32 0.17677669, %v924_v6 }
 0x17b   : > { %v893_v20 = vpop.trf.xlu0  ;;  %1168 = vmatprep.mubr.f32.mxu1 %v9337_v0 }
 0x17c   : > { %v941_v21 = vmul.f32 0.17677669, %v893_v20 }
 0x17d   : > { %v925_v9 = vpop.trf.xlu1 }
 0x17e   : > { %5341 = vmatmul.mubr.msk.f32.gmra.mxu1 %vm252_vm0, %v941_v21  ;;  %v957_v17 = vmul.f32 0.17677669, %v925_v9 }
 0x17f   : > { %v894_v23 = vpop.trf.xlu0  ;;  %1174 = vmatprep.mubr.f32.mxu1 %v9337_v0 }
 0x180   : > { %v942_v24 = vmul.f32 0.17677669, %v894_v23 }
 0x181   : > { %v926_v11 = vpop.trf.xlu1 }
 0x182   : > { %5342 = vmatmul.mubr.msk.f32.gmra.mxu1 %vm252_vm0, %v942_v24  ;;  %v958_v18 = vmul.f32 0.17677669, %v926_v11 }
 0x183   : > { %v895_v25 = vpop.trf.xlu0  ;;  %1180 = vmatprep.mubr.f32.mxu1 %v9337_v0 }
 0x184   : > { %v943_v27 = vmul.f32 0.17677669, %v895_v25 }
 0x185   : > { %v927_v14 = vpop.trf.xlu1 }
 0x186   : > { %5343 = vmatmul.mubr.msk.f32.gmra.mxu1 %vm252_vm0, %v943_v27  ;;  %v959_v20 = vmul.f32 0.17677669, %v927_v14 }
 0x187   : > { %v896_v28 = vpop.trf.xlu0  ;;  %1186 = vmatprep.mubr.f32.mxu1 %v9337_v0 }
 0x188   : > { %v944_v29 = vmul.f32 0.17677669, %v896_v28 }
 0x189   : > { %v928_v16 = vpop.trf.xlu1 }
 0x18a   : > { %5344 = vmatmul.mubr.msk.f32.gmra.mxu1 %vm252_vm0, %v944_v29  ;;  %v960_v22 = vmul.f32 0.17677669, %v928_v16 }
 0x18b   : > { %v897_v31 = vpop.trf.xlu0  ;;  %1192 = vmatprep.mubr.f32.mxu1 %v9337_v0 }
 0x18c   : > { %v945_v32 = vmul.f32 0.17677669, %v897_v31 }
 0x18d   : > { %v929_v19 = vpop.trf.xlu1 }
 0x18e   : > { %5345 = vmatmul.mubr.msk.f32.gmra.mxu1 %vm252_vm0, %v945_v32  ;;  %v961_v23 = vmul.f32 0.17677669, %v929_v19 }
 0x18f   : > { %v898_v33 = vpop.trf.xlu0  ;;  %1198 = vmatprep.mubr.f32.mxu1 %v9337_v0 }
 0x190   : > { %v946_v35 = vmul.f32 0.17677669, %v898_v33 }
 0x191   : > { %v930_v21 = vpop.trf.xlu1 }
 0x192   : > { %5346 = vmatmul.mubr.msk.f32.gmra.mxu1 %vm252_vm0, %v946_v35  ;;  %v962_v25 = vmul.f32 0.17677669, %v930_v21 }
 0x193   : > { %v899_v36 = vpop.trf.xlu0  ;;  %1204 = vmatprep.mubr.f32.mxu1 %v9337_v0 }
 0x194   : > { %v947_v61 = vmul.f32 0.17677669, %v899_v36 }
 0x195   : > { %v931_v24 = vpop.trf.xlu1 }
 0x196   : > { %5347 = vmatmul.mubr.msk.f32.gmra.mxu1 %vm252_vm0, %v947_v61  ;;  %v963_v27 = vmul.f32 0.17677669, %v931_v24 }
 0x197   : > { %v900_v63 = vpop.trf.xlu0  ;;  %1210 = vmatprep.mubr.f32.mxu1 %v9337_v0 }
 0x198   : > { %v948_v1 = vmul.f32 0.17677669, %v900_v63 }
 0x199   : > { %v932_v26 = vpop.trf.xlu1 }
 0x19a   : > { %5348 = vmatmul.mubr.msk.f32.gmra.mxu1 %vm252_vm0, %v948_v1  ;;  %v964_v28 = vmul.f32 0.17677669, %v932_v26 }
 0x19b   : > { %v901_v2 = vpop.trf.xlu0  ;;  %1216 = vmatprep.mubr.f32.mxu1 %v9337_v0 }
 0x19c   : > { %v949_v4 = vmul.f32 0.17677669, %v901_v2 }
 0x19d   : > { %v933_v29 = vpop.trf.xlu1 }
 0x19e   : > { %5349 = vmatmul.mubr.msk.f32.gmra.mxu1 %vm252_vm0, %v949_v4  ;;  %v965_v30 = vmul.f32 0.17677669, %v933_v29 }
 0x19f   : > { %1222 = vmatprep.mubr.f32.mxu1 %v9337_v0 }
 0x1a2   : > { %5350 = vmatmul.mubr.msk.f32.gmra.mxu1 %vm252_vm0, %v950_v5 }
 0x1a3   : > { %1228 = vmatprep.mubr.f32.mxu1 %v9337_v0 }
 0x1a6   : > { %5351 = vmatmul.mubr.msk.f32.gmra.mxu1 %vm252_vm0, %v951_v7 }
 0x1a7   : > { %1234 = vmatprep.mubr.f32.mxu1 %v9337_v0 }
 0x1aa   : > { %5352 = vmatmul.mubr.msk.f32.gmra.mxu1 %vm252_vm0, %v952_v8 }
 0x1ab   : > { %1240 = vmatprep.mubr.f32.mxu1 %v9337_v0 }
 0x1ae   : > { %5353 = vmatmul.mubr.msk.f32.gmra.mxu1 %vm252_vm0, %v953_v10 }
 0x1af   : > { %1246 = vmatprep.mubr.f32.mxu1 %v9337_v0 }
 0x1b2   : > { %5354 = vmatmul.mubr.msk.f32.gmra.mxu1 %vm252_vm0, %v954_v12 }
 0x1b3   : > { %1252 = vmatprep.mubr.f32.mxu1 %v9337_v0 }
 0x1b6   : > { %5355 = vmatmul.mubr.msk.f32.gmra.mxu1 %vm252_vm0, %v955_v13 }
 0x1b7   : > { %1258 = vmatprep.mubr.f32.mxu1 %v9337_v0 }
 0x1ba   : > { %5356 = vmatmul.mubr.msk.f32.gmra.mxu1 %vm252_vm0, %v956_v15 }
 0x1bb   : > { %1264 = vmatprep.mubr.f32.mxu1 %v9337_v0 }
 0x1be   : > { %5357 = vmatmul.mubr.msk.f32.gmra.mxu1 %vm252_vm0, %v957_v17 }
 0x1bf   : > { %1270 = vmatprep.mubr.f32.mxu1 %v9337_v0 }
 0x1c2   : > { %5358 = vmatmul.mubr.msk.f32.gmra.mxu1 %vm252_vm0, %v958_v18 }
 0x1c3   : > { %1276 = vmatprep.mubr.f32.mxu1 %v9337_v0 }
 0x1c6   : > { %5359 = vmatmul.mubr.msk.f32.gmra.mxu1 %vm252_vm0, %v959_v20 }
 0x1c7   : > { %1282 = vmatprep.mubr.f32.mxu1 %v9337_v0 }
 0x1ca   : > { %5360 = vmatmul.mubr.msk.f32.gmra.mxu1 %vm252_vm0, %v960_v22 }
 0x1cb   : > { %1288 = vmatprep.mubr.f32.mxu1 %v9337_v0 }
 0x1ce   : > { %5361 = vmatmul.mubr.msk.f32.gmra.mxu1 %vm252_vm0, %v961_v23 }
 0x1cf   : > { %1294 = vmatprep.mubr.f32.mxu1 %v9337_v0 }
 0x1d2   : > { %5362 = vmatmul.mubr.msk.f32.gmra.mxu1 %vm252_vm0, %v962_v25 }
 0x1d3   : > { %1300 = vmatprep.mubr.f32.mxu1 %v9337_v0 }
 0x1d6   : > { %5363 = vmatmul.mubr.msk.f32.gmra.mxu1 %vm252_vm0, %v963_v27 }
 0x1d7   : > { %1306 = vmatprep.mubr.f32.mxu1 %v9337_v0 }
 0x1da   : > { %5364 = vmatmul.mubr.msk.f32.gmra.mxu1 %vm252_vm0, %v964_v28 }
 0x1db   : > { %1312 = vmatprep.mubr.f32.mxu1 %v9337_v0 }
 0x1de   : > { %5365 = vmatmul.mubr.msk.f32.gmra.mxu1 %vm252_vm0, %v965_v30 }
 0x222   : > { %v6640_v31 = vpop.f32.mrf.mxu1 }
 0x223   : > { %9479 = vst [vmem:[#allocation31_spill] sm:$0xff] %v6640_v31 }
 0x224   : > { %v6642_v32 = vpop.f32.mrf.mxu1 }
 0x225   : > { %9480 = vst [vmem:[#allocation32_spill] sm:$0xff] %v6642_v32  ;;  %v1319_v48 = vmax.f32 %v6640_v31, %v6642_v32 }
 0x226   : > { %v6644_v33 = vpop.f32.mrf.mxu1 }
 0x228   : > { %v6646_v34 = vpop.f32.mrf.mxu1 }
 0x22a   : > { %v6648_v35 = vpop.f32.mrf.mxu1 }
 0x22b   : > { %9481 = vst [vmem:[#allocation33_spill] sm:$0xff] %v6648_v35 }
 0x22c   : > { %v6650_v36 = vpop.f32.mrf.mxu1 }
 0x22d   : > { %9482 = vst [vmem:[#allocation34_spill] sm:$0xff] %v6650_v36  ;;  %v1325_v52 = vmax.f32 %v6648_v35, %v6650_v36  ;;  %v224_v35 = vld [vmem:[%s9333_s1 + $0xa0] sm:$0xff] }
 0x22e   : > { %v6652_v61 = vpop.f32.mrf.mxu1  ;;  %5306 = vmatmul.mubr.msk.f32.gmra.mxu0 %vm252_vm0, %v224_v35 }
 0x230   : > { %v6654_v62 = vpop.f32.mrf.mxu1 }
 0x232   : > { %v6656_v63 = vpop.f32.mrf.mxu1 }
 0x234   : > { %v6658_v1 = vpop.f32.mrf.mxu1 }
 0x235   : > { %v1331_v55 = vmax.f32 %v6656_v63, %v6658_v1 }
 0x236   : > { %v6660_v2 = vpop.f32.mrf.mxu1 }
 0x238   : > { %v6662_v3 = vpop.f32.mrf.mxu1 }
 0x23a   : > { %v6664_v4 = vpop.f32.mrf.mxu1 }
 0x23c   : > { %v6666_v5 = vpop.f32.mrf.mxu1 }
 0x23d   : > { %v1337_v54 = vmax.f32 %v6664_v4, %v6666_v5 }
 0x23e   : > { %v6668_v6 = vpop.f32.mrf.mxu1 }
 0x240   : > { %v6670_v7 = vpop.f32.mrf.mxu1 }
 0x242   : > { %v6672_v8 = vpop.f32.mrf.mxu1 }
 0x244   : > { %v6674_v9 = vpop.f32.mrf.mxu1 }
 0x245   : > { %v1343_v56 = vmax.f32 %v6672_v8, %v6674_v9 }
 0x246   : > { %v6676_v10 = vpop.f32.mrf.mxu1 }
 0x248   : > { %v6678_v11 = vpop.f32.mrf.mxu1 }
 0x24a   : > { %v6680_v12 = vpop.f32.mrf.mxu1 }
 0x24c   : > { %v6682_v13 = vpop.f32.mrf.mxu1 }
 0x24d   : > { %v1349_v60 = vmax.f32 %v6680_v12, %v6682_v13 }
 0x24e   : > { %v6684_v14 = vpop.f32.mrf.mxu1 }
 0x250   : > { %v6686_v15 = vpop.f32.mrf.mxu1 }
 0x251   : > { %v1352_v30 = vmax.f32 %v6684_v14, %v6686_v15 }
 0x252   : > { %v6688_v16 = vpop.f32.mrf.mxu1 }
 0x254   : > { %v6690_v17 = vpop.f32.mrf.mxu1 }
 0x255   : > { %v1355_v29 = vmax.f32 %v6688_v16, %v6690_v17 }
 0x256   : > { %v6692_v18 = vpop.f32.mrf.mxu1 }
 0x258   : > { %v6694_v19 = vpop.f32.mrf.mxu1 }
 0x259   : > { %v1358_v25 = vmax.f32 %v6692_v18, %v6694_v19 }
 0x25a   : > { %v6696_v20 = vpop.f32.mrf.mxu1 }
 0x25c   : > { %v6698_v21 = vpop.f32.mrf.mxu1 }
 0x25d   : > { %v1361_v22 = vmax.f32 %v6696_v20, %v6698_v21 }
 0x25e   : > { %v6702_v23 = vpop.f32.mrf.mxu1 }
 0x25f   : > { %1362 = vmax.xlane.f32.xlu1 %v1361_v22 }
 0x260   : > { %v6704_v24 = vpop.f32.mrf.mxu1 }
 0x261   : > { %v1364_v26 = vmax.f32 %v6702_v23, %v6704_v24 }
 0x262   : > { %v6710_v27 = vpop.f32.mrf.mxu1 }
 0x263   : > { %9483 = vst [vmem:[#allocation35_spill] sm:$0xff] %v6710_v27  ;;  %1359 = vmax.xlane.f32.xlu1 %v1358_v25  ;;  %1365 = vmax.xlane.f32.xlu0 %v1364_v26  ;;  %v1346_v25 = vmax.f32 %v6676_v10, %v6678_v11 }
 0x264   : > { %v6712_v28 = vpop.f32.mrf.mxu1 }
 0x265   : > { %9484 = vst [vmem:[#allocation36_spill] sm:$0xff] %v6712_v28 }
 0x266   : > { %v6718_v22 = vpop.f32.mrf.mxu1 }
 0x267   : > { %9485 = vst [vmem:[#allocation37_spill] sm:$0xff] %v6718_v22  ;;  %1356 = vmax.xlane.f32.xlu1 %v1355_v29  ;;  %1353 = vmax.xlane.f32.xlu0 %v1352_v30  ;;  %v1340_v29 = vmax.f32 %v6668_v6, %v6670_v7 }
 0x268   : > { %v6720_v0 = vpop.f32.mrf.mxu1 }
 0x269   : > { %9486 = vst [vmem:[#allocation38_spill] sm:$0xff] %v6720_v0 }
 0x26a   : > { %v6726_v26 = vpop.f32.mrf.mxu1 }
 0x26b   : > { %9487 = vst [vmem:[#allocation39_spill] sm:$0xff] %v6726_v26  ;;  %1350 = vmax.xlane.f32.xlu1 %v1349_v60  ;;  %1347 = vmax.xlane.f32.xlu0 %v1346_v25  ;;  %v1334_v60 = vmax.f32 %v6660_v2, %v6662_v3 }
 0x26c   : > { %v6728_v58 = vpop.f32.mrf.mxu1 }
 0x26d   : > { %9488 = vst [vmem:[#allocation40_spill] sm:$0xff] %v6728_v58 }
 0x26e   : > { %v6734_v30 = vpop.f32.mrf.mxu1 }
 0x26f   : > { %9489 = vst [vmem:[#allocation41_spill] sm:$0xff] %v6734_v30  ;;  %1344 = vmax.xlane.f32.xlu1 %v1343_v56  ;;  %1341 = vmax.xlane.f32.xlu0 %v1340_v29  ;;  %v1328_v56 = vmax.f32 %v6652_v61, %v6654_v62 }
 0x270   : > { %v6736_v59 = vpop.f32.mrf.mxu1 }
 0x271   : > { %9490 = vst [vmem:[#allocation42_spill] sm:$0xff] %v6736_v59 }
 0x272   : > { %v6742_v25 = vpop.f32.mrf.mxu1 }
 0x273   : > { %1338 = vmax.xlane.f32.xlu1 %v1337_v54  ;;  %1335 = vmax.xlane.f32.xlu0 %v1334_v60  ;;  %v1322_v54 = vmax.f32 %v6644_v33, %v6646_v34 }
 0x274   : > { %v6744_v57 = vpop.f32.mrf.mxu1 }
 0x275   : > { %9491 = vst [vmem:[#allocation43_spill] sm:$0xff] %v6744_v57 }
 0x276   : > { %v6750_v29 = vpop.f32.mrf.mxu1 }
 0x277   : > { %1332 = vmax.xlane.f32.xlu1 %v1331_v55  ;;  %1329 = vmax.xlane.f32.xlu0 %v1328_v56 }
 0x278   : > { %v6752_v53 = vpop.f32.mrf.mxu1 }
 0x27a   : > { %v6758_v60 = vpop.f32.mrf.mxu1 }
 0x27b   : > { %1326 = vmax.xlane.f32.xlu1 %v1325_v52  ;;  %1323 = vmax.xlane.f32.xlu0 %v1322_v54 }
 0x27c   : > { %v6760_v50 = vpop.f32.mrf.mxu1 }
 0x27e   : > { %v6764_v51 = vpop.f32.mrf.mxu1 }
 0x27f   : > { %1320 = vmax.xlane.f32.xlu1 %v1319_v48 }
 0x280   : > { %v6766_v55 = vpop.f32.mrf.mxu1 }
 0x282   : > { %v6768_v56 = vpop.f32.mrf.mxu1 }
 0x284   : > { %v6770_v46 = vpop.f32.mrf.mxu1 }
 0x285   : > { %v1391_v35 = vmax.f32 %v6768_v56, %v6770_v46 }
 0x286   : > { %v6772_v49 = vpop.f32.mrf.mxu1 }
 0x288   : > { %v6774_v47 = vpop.f32.mrf.mxu1 }
 0x28a   : > { %v6776_v52 = vpop.f32.mrf.mxu1 }
 0x28c   : > { %v6778_v54 = vpop.f32.mrf.mxu1 }
 0x28d   : > { %9492 = vst [vmem:[#allocation44_spill] sm:$0xff] %v6778_v54 }
 0x28e   : > { %v6780_v45 = vpop.f32.mrf.mxu1 }
 0x290   : > { %v6782_v44 = vpop.f32.mrf.mxu1 }
 0x292   : > { %v6784_v42 = vpop.f32.mrf.mxu1 }
 0x294   : > { %v6786_v48 = vpop.f32.mrf.mxu1 }
 0x295   : > { %v1403_v31 = vmax.f32 %v6784_v42, %v6786_v48 }
 0x296   : > { %v6788_v40 = vpop.f32.mrf.mxu1 }
 0x298   : > { %v6790_v43 = vpop.f32.mrf.mxu1 }
 0x29a   : > { %v6792_v38 = vpop.f32.mrf.mxu1 }
 0x29b   : > { %9493 = vst [vmem:[#allocation45_spill] sm:$0xff] %v6792_v38 }
 0x29c   : > { %v6794_v41 = vpop.f32.mrf.mxu1 }
 0x29d   : > { %9494 = vst [vmem:[#allocation46_spill] sm:$0xff] %v6794_v41  ;;  %v1409_v39 = vmax.f32 %v6792_v38, %v6794_v41  ;;  %v1397_v41 = vmax.f32 %v6776_v52, %v6778_v54  ;;  %v9495_v38 = vmov 0.0   ;;  %v1394_v54 = vmax.f32 %v6772_v49, %v6774_v47 }
 0x29e   : > { %v6798_v37 = vpop.f32.mrf.mxu1  ;;  %587 = vmatprep.mubr.f32.mxu0 %v9495_v38 }
 0x29f   : > { %1410 = vmax.xlane.f32.xlu1 %v1409_v39  ;;  %v1406_v39 = vmax.f32 %v6788_v40, %v6790_v43 }
 0x2a0   : > { %v6800_v32 = vpop.f32.mrf.mxu1 }
 0x2a1   : > { %v1412_v36 = vmax.f32 %v6798_v37, %v6800_v32 }
 0x2a3   : > { %1404 = vmax.xlane.f32.xlu1 %v1403_v31  ;;  %1413 = vmax.xlane.f32.xlu0 %v1412_v36  ;;  %v1400_v31 = vmax.f32 %v6780_v45, %v6782_v44  ;;  %v225_v36 = vld [vmem:[%s9333_s1 + $0xa8] sm:$0xff] }
 0x2a4   : > { %5307 = vmatmul.mubr.msk.f32.gmra.mxu0 %vm252_vm0, %v225_v36  ;;  %v1385_v36 = vmax.f32 %v6758_v60, %v6760_v50 }
 0x2a5   : > { %593 = vmatprep.mubr.f32.mxu0 %v9495_v38 }
 0x2a7   : > { %1398 = vmax.xlane.f32.xlu1 %v1397_v41  ;;  %1407 = vmax.xlane.f32.xlu0 %v1406_v39  ;;  %v226_v41 = vld [vmem:[%s9333_s1 + $0xb0] sm:$0xff]  ;;  %v227_v39 = vld [vmem:[%s9333_s1 + $0xb8] sm:$0xff] }
 0x2a8   : > { %5308 = vmatmul.mubr.msk.f32.gmra.mxu0 %vm252_vm0, %v226_v41  ;;  %v229_v41 = vld [vmem:[%s9333_s1 + $0xc8] sm:$0xff] }
 0x2a9   : > { %599 = vmatprep.mubr.f32.mxu0 %v9495_v38 }
 0x2ab   : > { %1401 = vmax.xlane.f32.xlu0 %v1400_v31  ;;  %v228_v31 = vld [vmem:[%s9333_s1 + $0xc0] sm:$0xff] }
 0x2ac   : > { %5309 = vmatmul.mubr.msk.f32.gmra.mxu0 %vm252_vm0, %v227_v39  ;;  %v230_v39 = vld [vmem:[%s9333_s1 + $0xd0] sm:$0xff] }
 0x2ad   : > { %605 = vmatprep.mubr.f32.mxu0 %v9495_v38 }
 0x2af   : > { %1395 = vmax.xlane.f32.xlu0 %v1394_v54  ;;  %v1388_v54 = vmax.f32 %v6764_v51, %v6766_v55 }
 0x2b0   : > { %5310 = vmatmul.mubr.msk.f32.gmra.mxu0 %vm252_vm0, %v228_v31  ;;  %v231_v31 = vld [vmem:[%s9333_s1 + $0xd8] sm:$0xff] }
 0x2b1   : > { %611 = vmatprep.mubr.f32.mxu0 %v9495_v38 }
 0x2b3   : > { %1392 = vmax.xlane.f32.xlu0 %v1391_v35  ;;  %v1382_v35 = vmax.f32 %v6750_v29, %v6752_v53 }
 0x2b4   : > { %5311 = vmatmul.mubr.msk.f32.gmra.mxu0 %vm252_vm0, %v229_v41  ;;  %v232_v41 = vld [vmem:[%s9333_s1 + $0xe0] sm:$0xff] }
 0x2b5   : > { %617 = vmatprep.mubr.f32.mxu0 %v9495_v38 }
 0x2b7   : > { %1389 = vmax.xlane.f32.xlu0 %v1388_v54  ;;  %v1379_v54 = vmax.f32 %v6742_v25, %v6744_v57 }
 0x2b8   : > { %5312 = vmatmul.mubr.msk.f32.gmra.mxu0 %vm252_vm0, %v230_v39  ;;  %v233_v39 = vld [vmem:[%s9333_s1 + $0xe8] sm:$0xff] }
 0x2b9   : > { %623 = vmatprep.mubr.f32.mxu0 %v9495_v38 }
 0x2bb   : > { %1386 = vmax.xlane.f32.xlu0 %v1385_v36  ;;  %v1376_v36 = vmax.f32 %v6734_v30, %v6736_v59 }
 0x2bc   : > { %5313 = vmatmul.mubr.msk.f32.gmra.mxu0 %vm252_vm0, %v231_v31  ;;  %v234_v31 = vld [vmem:[%s9333_s1 + $0xf0] sm:$0xff] }
 0x2bd   : > { %629 = vmatprep.mubr.f32.mxu0 %v9495_v38 }
 0x2bf   : > { %1383 = vmax.xlane.f32.xlu0 %v1382_v35  ;;  %v1373_v35 = vmax.f32 %v6726_v26, %v6728_v58 }
 0x2c0   : > { %5314 = vmatmul.mubr.msk.f32.gmra.mxu0 %vm252_vm0, %v232_v41  ;;  %v235_v41 = vld [vmem:[%s9333_s1 + $0xf8] sm:$0xff] }
 0x2c1   : > { %635 = vmatprep.mubr.f32.mxu0 %v9495_v38 }
 0x2c3   : > { %1380 = vmax.xlane.f32.xlu0 %v1379_v54  ;;  %v1370_v54 = vmax.f32 %v6718_v22, %v6720_v0 }
 0x2c4   : > { %5315 = vmatmul.mubr.msk.f32.gmra.mxu0 %vm252_vm0, %v233_v39  ;;  %v237_v39 = vld [vmem:[%s9333_s1 + $0x108] sm:$0xff] }
 0x2c5   : > { %641 = vmatprep.mubr.f32.mxu0 %v9495_v38 }
 0x2c7   : > { %1377 = vmax.xlane.f32.xlu0 %v1376_v36  ;;  %v1367_v36 = vmax.f32 %v6710_v27, %v6712_v28 }
 0x2c8   : > { %5316 = vmatmul.mubr.msk.f32.gmra.mxu0 %vm252_vm0, %v234_v31  ;;  %v239_v31 = vld [vmem:[%s9333_s1 + $0x118] sm:$0xff] }
 0x2c9   : > { %647 = vmatprep.mubr.f32.mxu0 %v9495_v38 }
 0x2cb   : > { %1374 = vmax.xlane.f32.xlu0 %v1373_v35  ;;  %v236_v35 = vld [vmem:[%s9333_s1 + $0x100] sm:$0xff] }
 0x2cc   : > { %5317 = vmatmul.mubr.msk.f32.gmra.mxu0 %vm252_vm0, %v235_v41 }
 0x2cd   : > { %653 = vmatprep.mubr.f32.mxu0 %v9495_v38 }
 0x2cf   : > { %1371 = vmax.xlane.f32.xlu0 %v1370_v54  ;;  %v238_v54 = vld [vmem:[%s9333_s1 + $0x110] sm:$0xff] }
 0x2d0   : > { %5318 = vmatmul.mubr.msk.f32.gmra.mxu0 %vm252_vm0, %v236_v35 }
 0x2d1   : > { %659 = vmatprep.mubr.f32.mxu0 %v9495_v38 }
 0x2d3   : > { %1368 = vmax.xlane.f32.xlu0 %v1367_v36 }
 0x2d4   : > { %5319 = vmatmul.mubr.msk.f32.gmra.mxu0 %vm252_vm0, %v237_v39 }
 0x2d5   : > { %665 = vmatprep.mubr.f32.mxu0 %v9495_v38 }
 0x2d8   : > { %5320 = vmatmul.mubr.msk.f32.gmra.mxu0 %vm252_vm0, %v238_v54 }
 0x2d9   : > { %671 = vmatprep.mubr.f32.mxu0 %v9495_v38 }
 0x2dc   : > { %5321 = vmatmul.mubr.msk.f32.gmra.mxu0 %vm252_vm0, %v239_v31 }
 0x2dd   : > { %677 = vmatprep.mubr.f32.mxu0 %v9495_v38 }
 0x2e8   : > { %v1363_v36 = vpop.xlane.xlu1 %1362 }
 0x2e9   : > { %v1443_v39 = vsub.f32 %v6696_v20, %v1363_v36  ;;  %v1444_v27 = vsub.f32 %v6698_v21, %v1363_v36 }
 0x2eb   : > { %v1535_v26 = vmul.f32 1.442695, %v1443_v39  ;;  %v1537_v31 = vmul.f32 1.442695, %v1444_v27 }
 0x2ec   : > { %v1360_v41 = vpop.xlane.xlu1 %1359  ;;  %v1366_v35 = vpop.xlane.xlu0 %1365 }
 0x2ed   : > { %v1445_v28 = vsub.f32 %v6702_v23, %v1366_v35  ;;  %v1446_v54 = vsub.f32 %v6704_v24, %v1366_v35  ;;  %v1441_v59 = vsub.f32 %v6692_v18, %v1360_v41  ;;  %v1442_v38 = vsub.f32 %v6694_v19, %v1360_v41 }
 0x2ef   : > { %v1539_v0 = vmul.f32 1.442695, %v1445_v28  ;;  %v1541_v22 = vmul.f32 1.442695, %v1446_v54  ;;  %v1531_v20 = vmul.f32 1.442695, %v1441_v59 }
 0x2f0   : > { %v1354_v58 = vpop.xlane.xlu0 %1353  ;;  %v1357_v30 = vpop.xlane.xlu1 %1356  ;;  %v1533_v21 = vmul.f32 1.442695, %v1442_v38 }
 0x2f1   : > { %5514 = vpow2.f32 %v1539_v0  ;;  %v1439_v23 = vsub.f32 %v6688_v16, %v1357_v30  ;;  %v1440_v24 = vsub.f32 %v6690_v17, %v1357_v30  ;;  %v1437_v27 = vsub.f32 %v6684_v14, %v1354_v58 }
 0x2f2   : > { %5516 = vpow2.f32 %v1541_v22  ;;  %v1438_v0 = vsub.f32 %v6686_v15, %v1354_v58 }
 0x2f3   : > { %5518 = vpow2.f32 %v1535_v26  ;;  %v1527_v18 = vmul.f32 1.442695, %v1439_v23  ;;  %v1529_v19 = vmul.f32 1.442695, %v1440_v24  ;;  %v1523_v59 = vmul.f32 1.442695, %v1437_v27 }
 0x2f4   : > { %v1348_v57 = vpop.xlane.xlu0 %1347  ;;  %5520 = vpow2.f32 %v1537_v31  ;;  %v1351_v28 = vpop.xlane.xlu1 %1350  ;;  %v1525_v17 = vmul.f32 1.442695, %v1438_v0 }
 0x2f5   : > { %5522 = vpow2.f32 %v1531_v20  ;;  %v1435_v16 = vsub.f32 %v6680_v12, %v1351_v28  ;;  %v1436_v26 = vsub.f32 %v6682_v13, %v1351_v28  ;;  %v1433_v39 = vsub.f32 %v6676_v10, %v1348_v57 }
 0x2f6   : > { %5524 = vpow2.f32 %v1533_v21 }
 0x2f7   : > { %5526 = vpow2.f32 %v1527_v18  ;;  %v1519_v12 = vmul.f32 1.442695, %v1435_v16  ;;  %v1521_v13 = vmul.f32 1.442695, %v1436_v26  ;;  %v1515_v24 = vmul.f32 1.442695, %v1433_v39 }
 0x2f8   : > { %v6920_v36 = vpop.xlane.xlu0 %1341  ;;  %5528 = vpow2.f32 %v1529_v19  ;;  %v1345_v30 = vpop.xlane.xlu1 %1344 }
 0x2f9   : > { %5530 = vpow2.f32 %v1523_v59  ;;  %v1432_v19 = vsub.f32 %v6674_v9, %v1345_v30 }
 0x2fa   : > { %5532 = vpow2.f32 %v1525_v17 }
 0x2fb   : > { %v1513_v9 = vmul.f32 1.442695, %v1432_v19  ;;  %v9497_v19 = vld [vmem:[#allocation34_spill] sm:$0xff] }
 0x2fc   : > { %v1336_v22 = vpop.xlane.xlu0 %1335  ;;  %v1339_v28 = vpop.xlane.xlu1 %1338 }
 0x2fd   : > { %v1425_v38 = vsub.f32 %v6660_v2, %v1336_v22  ;;  %v1426_v41 = vsub.f32 %v6662_v3, %v1336_v22  ;;  %v1434_v2 = vsub.f32 %v6678_v11, %v1348_v57  ;;  %v1431_v11 = vsub.f32 %v6672_v8, %v1345_v30 }
 0x2fe   : > { %v6928_v14 = vpop.eup %5514 }
 0x2ff   : > { %v1499_v35 = vmul.f32 1.442695, %v1425_v38  ;;  %v1501_v58 = vmul.f32 1.442695, %v1426_v41  ;;  %v6931_v54 = vpop.eup %5516  ;;  %v1511_v8 = vmul.f32 1.442695, %v1431_v11 }
 0x300   : > { %v1330_v15 = vpop.xlane.xlu0 %1329  ;;  %v6935_v20 = vpop.eup %5518  ;;  %v1652_v23 = vadd.f32 %v6931_v54, %v6928_v14 }
 0x301   : > { %v1421_v31 = vsub.f32 %v6652_v61, %v1330_v15  ;;  %v1422_v3 = vsub.f32 %v6654_v62, %v1330_v15  ;;  %v6940_v10 = vpop.eup %5520  ;;  %5534 = vpow2.f32 %v1499_v35  ;;  %v1517_v61 = vmul.f32 1.442695, %v1434_v2  ;;  %v1333_v26 = vpop.xlane.xlu1 %1332 }
 0x302   : > { %5536 = vpow2.f32 %v1501_v58  ;;  %1653 = vadd.xlane.f32.xlu1 %v1652_v23  ;;  %v6944_v62 = vpop.eup %5522  ;;  %v1649_v22 = vadd.f32 %v6940_v10, %v6935_v20  ;;  %v1428_v15 = vsub.f32 %v6666_v5, %v1339_v28  ;;  %v1423_v2 = vsub.f32 %v6656_v63, %v1333_v26 }
 0x303   : > { %v1491_v21 = vmul.f32 1.442695, %v1421_v31  ;;  %v1493_v18 = vmul.f32 1.442695, %v1422_v3  ;;  %5538 = vpow2.f32 %v1519_v12  ;;  %v6950_v59 = vpop.eup %5524  ;;  %v1424_v3 = vsub.f32 %v6658_v1, %v1333_v26  ;;  %v9499_v26 = vld [vmem:[#allocation31_spill] sm:$0xff] }
 0x304   : > { %v1324_v57 = vpop.xlane.xlu0 %1323  ;;  %5540 = vpow2.f32 %v1521_v13  ;;  %v6954_v17 = vpop.eup %5526  ;;  %v1646_v30 = vadd.f32 %v6950_v59, %v6944_v62  ;;  %v1505_v5 = vmul.f32 1.442695, %v1428_v15 }
 0x305   : > { %v1417_v27 = vsub.f32 %v6644_v33, %v1324_v57  ;;  %v1418_v0 = vsub.f32 %v6646_v34, %v1324_v57  ;;  %5542 = vpow2.f32 %v1491_v21  ;;  %v1429_v33 = vsub.f32 %v6668_v6, %v6920_v36  ;;  %v6960_v41 = vpop.eup %5528  ;;  %v1327_v31 = vpop.xlane.xlu1 %1326 }
 0x306   : > { %5544 = vpow2.f32 %v1493_v18  ;;  %1650 = vadd.xlane.f32.xlu1 %v1649_v22  ;;  %v1430_v34 = vsub.f32 %v6670_v7, %v6920_v36  ;;  %v1427_v6 = vsub.f32 %v6664_v4, %v1339_v28  ;;  %v6963_v39 = vpop.eup %5530  ;;  %v1643_v7 = vadd.f32 %v6960_v41, %v6954_v17 }
 0x307   : > { %v1483_v16 = vmul.f32 1.442695, %v1417_v27  ;;  %v1485_v38 = vmul.f32 1.442695, %v1418_v0  ;;  %5546 = vpow2.f32 %v1515_v24  ;;  %v1507_v35 = vmul.f32 1.442695, %v1429_v33  ;;  %v6968_v36 = vpop.eup %5532 }
 0x308   : > { %5548 = vpow2.f32 %v1517_v61  ;;  %v1509_v58 = vmul.f32 1.442695, %v1430_v34  ;;  %v1503_v4 = vmul.f32 1.442695, %v1427_v6  ;;  %v1640_v21 = vadd.f32 %v6968_v36, %v6963_v39  ;;  %v9496_v61 = vld [vmem:[#allocation33_spill] sm:$0xff] }
 0x309   : > { %5550 = vpow2.f32 %v1483_v16  ;;  %v1495_v18 = vmul.f32 1.442695, %v1423_v2  ;;  %v1497_v1 = vmul.f32 1.442695, %v1424_v3  ;;  %v1419_v11 = vsub.f32 %v9496_v61, %v1327_v31  ;;  %v1321_v22 = vpop.xlane.xlu1 %1320 }
 0x30a   : > { %5552 = vpow2.f32 %v1485_v38  ;;  %1647 = vadd.xlane.f32.xlu1 %v1646_v30  ;;  %v1420_v0 = vsub.f32 %v9497_v19, %v1327_v31  ;;  %v1415_v30 = vsub.f32 %v9499_v26, %v1321_v22 }
 0x30b   : > { %5554 = vpow2.f32 %v1511_v8  ;;  %v1487_v34 = vmul.f32 1.442695, %v1419_v11 }
 0x30c   : > { %5556 = vpow2.f32 %v1513_v9  ;;  %v1489_v6 = vmul.f32 1.442695, %v1420_v0 }
 0x30d   : > { %5558 = vpow2.f32 %v1507_v35 }
 0x30e   : > { %v6970_v12 = vpop.eup %5534  ;;  %1644 = vadd.xlane.f32.xlu1 %v1643_v7  ;;  %5560 = vpow2.f32 %v1509_v58  ;;  %v9500_v58 = vld [vmem:[#allocation32_spill] sm:$0xff] }
 0x30f   : > { %v6973_v13 = vpop.eup %5536  ;;  %5562 = vpow2.f32 %v1503_v4  ;;  %v1416_v15 = vsub.f32 %v9500_v58, %v1321_v22  ;;  %v1479_v4 = vmul.f32 1.442695, %v1415_v30 }
 0x310   : > { %v6976_v23 = vpop.eup %5538  ;;  %v1622_v24 = vadd.f32 %v6973_v13, %v6970_v12  ;;  %5564 = vpow2.f32 %v1505_v5 }
 0x311   : > { %v6982_v28 = vpop.eup %5540  ;;  %5566 = vpow2.f32 %v1495_v18  ;;  %v1481_v5 = vmul.f32 1.442695, %v1416_v15 }
 0x312   : > { %v6984_v63 = vpop.eup %5542  ;;  %1641 = vadd.xlane.f32.xlu1 %v1640_v21  ;;  %1623 = vadd.xlane.f32.xlu0 %v1622_v24  ;;  %v1637_v16 = vadd.f32 %v6982_v28, %v6976_v23  ;;  %5568 = vpow2.f32 %v1497_v1 }
 0x313   : > { %v6986_v57 = vpop.eup %5544  ;;  %5570 = vpow2.f32 %v1487_v34  ;;  %v9502_v34 = vld [vmem:[#allocation46_spill] sm:$0xff] }
 0x314   : > { %v6989_v27 = vpop.eup %5546  ;;  %v1616_v38 = vadd.f32 %v6986_v57, %v6984_v63  ;;  %5572 = vpow2.f32 %v1489_v6 }
 0x315   : > { %v6996_v8 = vpop.eup %5548  ;;  %5574 = vpow2.f32 %v1479_v4 }
 0x316   : > { %v6998_v33 = vpop.eup %5550  ;;  %1638 = vadd.xlane.f32.xlu1 %v1637_v16  ;;  %1617 = vadd.xlane.f32.xlu0 %v1616_v38  ;;  %v1634_v7 = vadd.f32 %v6996_v8, %v6989_v27  ;;  %5576 = vpow2.f32 %v1481_v5  ;;  %v9501_v16 = vld [vmem:[#allocation45_spill] sm:$0xff] }
 0x317   : > { %9498 = vst [vmem:[#allocation33_spill] sm:$0xff] %v6998_v33  ;;  %v7000_v9 = vpop.eup %5552 }
 0x318   : > { %v7003_v35 = vpop.eup %5554  ;;  %v1610_v2 = vadd.f32 %v7000_v9, %v6998_v33 }
 0x319   : > { %v7010_v31 = vpop.eup %5556 }
 0x31a   : > { %1635 = vadd.xlane.f32.xlu1 %v1634_v7  ;;  %1611 = vadd.xlane.f32.xlu0 %v1610_v2  ;;  %v7012_v3 = vpop.eup %5558  ;;  %v1631_v21 = vadd.f32 %v7010_v31, %v7003_v35 }
 0x31b   : > { %v7016_v24 = vpop.eup %5560 }
 0x31c   : > { %v7018_v18 = vpop.eup %5562  ;;  %v1628_v1 = vadd.f32 %v7016_v24, %v7012_v3 }
 0x31d   : > { %v7022_v61 = vpop.eup %5564 }
 0x31e   : > { %1632 = vadd.xlane.f32.xlu1 %v1631_v21  ;;  %v7024_v11 = vpop.eup %5566  ;;  %v1625_v0 = vadd.f32 %v7022_v61, %v7018_v18 }
 0x31f   : > { %v7026_v19 = vpop.eup %5568 }
 0x320   : > { %v7032_v30 = vpop.eup %5570  ;;  %v1619_v6 = vadd.f32 %v7026_v19, %v7024_v11 }
 0x321   : > { %v7036_v58 = vpop.eup %5572 }
 0x322   : > { %1629 = vadd.xlane.f32.xlu1 %v1628_v1 }
 0x326   : > { %1626 = vadd.xlane.f32.xlu1 %v1625_v0  ;;  %v7041_v0 = vpop.eup %5574 }
 0x328   : > { %v1411_v22 = vpop.xlane.xlu1 %1410 }
 0x329   : > { %v1475_v38 = vsub.f32 %v9501_v16, %v1411_v22  ;;  %v1476_v26 = vsub.f32 %v9502_v34, %v1411_v22  ;;  %v1613_v16 = vadd.f32 %v7036_v58, %v7032_v30 }
 0x32a   : > { %1620 = vadd.xlane.f32.xlu1 %v1619_v6 }
 0x32b   : > { %v1599_v15 = vmul.f32 1.442695, %v1475_v38  ;;  %v1601_v7 = vmul.f32 1.442695, %v1476_v26  ;;  %v7046_v38 = vpop.eup %5576 }
 0x32c   : > { %v1405_v2 = vpop.xlane.xlu1 %1404  ;;  %v1414_v4 = vpop.xlane.xlu0 %1413 }
 0x32d   : > { %5578 = vpow2.f32 %v1599_v15  ;;  %v1471_v5 = vsub.f32 %v6784_v42, %v1405_v2  ;;  %v1472_v21 = vsub.f32 %v6786_v48, %v1405_v2  ;;  %v1477_v1 = vsub.f32 %v6798_v37, %v1414_v4  ;;  %v9503_v48 = vld [vmem:[#allocation44_spill] sm:$0xff] }
 0x32e   : > { %5580 = vpow2.f32 %v1601_v7  ;;  %v1478_v22 = vsub.f32 %v6800_v32, %v1414_v4  ;;  %1614 = vadd.xlane.f32.xlu1 %v1613_v16  ;;  %v1607_v4 = vadd.f32 %v7046_v38, %v7041_v0 }
 0x32f   : > { %v1591_v34 = vmul.f32 1.442695, %v1471_v5  ;;  %v1593_v26 = vmul.f32 1.442695, %v1472_v21  ;;  %v1603_v6 = vmul.f32 1.442695, %v1477_v1 }
 0x330   : > { %v1605_v15 = vmul.f32 1.442695, %v1478_v22  ;;  %v1399_v42 = vpop.xlane.xlu1 %1398  ;;  %v1408_v33 = vpop.xlane.xlu0 %1407 }
 0x331   : > { %5582 = vpow2.f32 %v1591_v34  ;;  %v1467_v37 = vsub.f32 %v6776_v52, %v1399_v42  ;;  %v1468_v2 = vsub.f32 %v9503_v48, %v1399_v42  ;;  %v1473_v7 = vsub.f32 %v6788_v40, %v1408_v33 }
 0x332   : > { %5584 = vpow2.f32 %v1593_v26  ;;  %v1474_v32 = vsub.f32 %v6790_v43, %v1408_v33  ;;  %1608 = vadd.xlane.f32.xlu1 %v1607_v4 }
 0x333   : > { %5586 = vpow2.f32 %v1603_v6  ;;  %v1583_v5 = vmul.f32 1.442695, %v1467_v37  ;;  %v1585_v21 = vmul.f32 1.442695, %v1468_v2  ;;  %v1595_v1 = vmul.f32 1.442695, %v1473_v7 }
 0x334   : > { %5588 = vpow2.f32 %v1605_v15  ;;  %v1597_v22 = vmul.f32 1.442695, %v1474_v32  ;;  %v1402_v16 = vpop.xlane.xlu0 %1401 }
 0x335   : > { %5590 = vpow2.f32 %v1583_v5  ;;  %v1469_v52 = vsub.f32 %v6780_v45, %v1402_v16  ;;  %v1470_v34 = vsub.f32 %v6782_v44, %v1402_v16 }
 0x336   : > { %5592 = vpow2.f32 %v1585_v21 }
 0x337   : > { %5594 = vpow2.f32 %v1595_v1  ;;  %v1587_v40 = vmul.f32 1.442695, %v1469_v52  ;;  %v1589_v43 = vmul.f32 1.442695, %v1470_v34 }
 0x338   : > { %5596 = vpow2.f32 %v1597_v22  ;;  %v1396_v33 = vpop.xlane.xlu0 %1395 }
 0x339   : > { %5598 = vpow2.f32 %v1587_v40  ;;  %v1465_v26 = vsub.f32 %v6772_v49, %v1396_v33  ;;  %v1466_v6 = vsub.f32 %v6774_v47, %v1396_v33 }
 0x33a   : > { %v7058_v15 = vpop.eup %5578  ;;  %5600 = vpow2.f32 %v1589_v43 }
 0x33b   : > { %v7060_v42 = vpop.eup %5580  ;;  %v1579_v37 = vmul.f32 1.442695, %v1465_v26  ;;  %v1581_v45 = vmul.f32 1.442695, %v1466_v6 }
 0x33c   : > { %v1393_v48 = vpop.xlane.xlu0 %1392  ;;  %v1697_v44 = vadd.f32 %v7060_v42, %v7058_v15 }
 0x33d   : > { %5602 = vpow2.f32 %v1579_v37  ;;  %v1463_v2 = vsub.f32 %v6768_v56, %v1393_v48  ;;  %v1464_v7 = vsub.f32 %v6770_v46, %v1393_v48 }
 0x33e   : > { %v7066_v32 = vpop.eup %5582  ;;  %5604 = vpow2.f32 %v1581_v45  ;;  %1698 = vadd.xlane.f32.xlu1 %v1697_v44 }
 0x33f   : > { %v7068_v47 = vpop.eup %5584  ;;  %v1575_v49 = vmul.f32 1.442695, %v1463_v2  ;;  %v1577_v4 = vmul.f32 1.442695, %v1464_v7 }
 0x340   : > { %v7070_v5 = vpop.eup %5586  ;;  %v1390_v21 = vpop.xlane.xlu0 %1389  ;;  %v1691_v1 = vadd.f32 %v7068_v47, %v7066_v32 }
 0x341   : > { %v7074_v22 = vpop.eup %5588  ;;  %5606 = vpow2.f32 %v1575_v49  ;;  %v1461_v56 = vsub.f32 %v6764_v51, %v1390_v21  ;;  %v1462_v46 = vsub.f32 %v6766_v55, %v1390_v21 }
 0x342   : > { %v7078_v16 = vpop.eup %5590  ;;  %5608 = vpow2.f32 %v1577_v4  ;;  %1692 = vadd.xlane.f32.xlu1 %v1691_v1  ;;  %v1700_v52 = vadd.f32 %v7074_v22, %v7070_v5 }
 0x343   : > { %v7082_v34 = vpop.eup %5592  ;;  %v1571_v40 = vmul.f32 1.442695, %v1461_v56  ;;  %v1573_v43 = vmul.f32 1.442695, %v1462_v46 }
 0x344   : > { %v7084_v33 = vpop.eup %5594  ;;  %1701 = vadd.xlane.f32.xlu0 %v1700_v52  ;;  %v1387_v26 = vpop.xlane.xlu0 %1386  ;;  %v1685_v51 = vadd.f32 %v7082_v34, %v7078_v16 }
 0x345   : > { %v7088_v6 = vpop.eup %5596  ;;  %5610 = vpow2.f32 %v1571_v40  ;;  %v1459_v55 = vsub.f32 %v6758_v60, %v1387_v26  ;;  %v1460_v37 = vsub.f32 %v6760_v50, %v1387_v26  ;;  %v9504_v26 = vld [vmem:[#allocation43_spill] sm:$0xff] }
 0x346   : > { %v7092_v45 = vpop.eup %5598  ;;  %5612 = vpow2.f32 %v1573_v43  ;;  %1686 = vadd.xlane.f32.xlu1 %v1685_v51  ;;  %v1694_v48 = vadd.f32 %v7088_v6, %v7084_v33 }
 0x347   : > { %v7096_v44 = vpop.eup %5600  ;;  %v1567_v2 = vmul.f32 1.442695, %v1459_v55  ;;  %v1569_v7 = vmul.f32 1.442695, %v1460_v37 }
 0x348   : > { %1695 = vadd.xlane.f32.xlu0 %v1694_v48  ;;  %v1384_v49 = vpop.xlane.xlu0 %1383  ;;  %v1688_v4 = vadd.f32 %v7096_v44, %v7092_v45 }
 0x349   : > { %5614 = vpow2.f32 %v1567_v2  ;;  %v1457_v60 = vsub.f32 %v6750_v29, %v1384_v49  ;;  %v1458_v50 = vsub.f32 %v6752_v53, %v1384_v49 }
 0x34a   : > { %v7102_v21 = vpop.eup %5602  ;;  %5616 = vpow2.f32 %v1569_v7  ;;  %v9505_v7 = vld [vmem:[#allocation41_spill] sm:$0xff] }
 0x34b   : > { %v7104_v1 = vpop.eup %5604  ;;  %v1563_v56 = vmul.f32 1.442695, %v1457_v60  ;;  %v1565_v46 = vmul.f32 1.442695, %v1458_v50 }
 0x34c   : > { %1689 = vadd.xlane.f32.xlu0 %v1688_v4  ;;  %v1381_v52 = vpop.xlane.xlu0 %1380  ;;  %v1682_v40 = vadd.f32 %v7104_v1, %v7102_v21  ;;  %v9506_v4 = vld [vmem:[#allocation42_spill] sm:$0xff] }
 0x34d   : > { %5618 = vpow2.f32 %v1563_v56  ;;  %v1455_v43 = vsub.f32 %v6742_v25, %v1381_v52  ;;  %v1456_v51 = vsub.f32 %v9504_v26, %v1381_v52 }
 0x34e   : > { %v7110_v29 = vpop.eup %5606  ;;  %5620 = vpow2.f32 %v1565_v46 }
 0x34f   : > { %v7112_v53 = vpop.eup %5608  ;;  %v1559_v55 = vmul.f32 1.442695, %v1455_v43  ;;  %v1561_v37 = vmul.f32 1.442695, %v1456_v51  ;;  %v9509_v43 = vld [vmem:[#allocation39_spill] sm:$0xff]  ;;  %v9510_v51 = vld [vmem:[#allocation40_spill] sm:$0xff] }
 0x350   : > { %1683 = vadd.xlane.f32.xlu0 %v1682_v40  ;;  %v1378_v48 = vpop.xlane.xlu0 %1377  ;;  %v1679_v2 = vadd.f32 %v7112_v53, %v7110_v29 }
 0x351   : > { %5622 = vpow2.f32 %v1559_v55  ;;  %v1453_v49 = vsub.f32 %v9505_v7, %v1378_v48  ;;  %v1454_v60 = vsub.f32 %v9506_v4, %v1378_v48 }
 0x352   : > { %v7118_v25 = vpop.eup %5610  ;;  %5624 = vpow2.f32 %v1561_v37  ;;  %1680 = vadd.xlane.f32.xlu1 %v1679_v2 }
 0x353   : > { %9507 = vst [vmem:[#allocation34_spill] sm:$0xff] %v7118_v25  ;;  %v7120_v50 = vpop.eup %5612  ;;  %v1555_v56 = vmul.f32 1.442695, %v1453_v49  ;;  %v1557_v46 = vmul.f32 1.442695, %v1454_v60  ;;  %v9513_v60 = vld [vmem:[#allocation37_spill] sm:$0xff] }
 0x354   : > { %9508 = vst [vmem:[#allocation31_spill] sm:$0xff] %v7120_v50  ;;  %v1375_v52 = vpop.xlane.xlu0 %1374  ;;  %v1676_v40 = vadd.f32 %v7120_v50, %v7118_v25 }
 0x355   : > { %5626 = vpow2.f32 %v1555_v56  ;;  %v1451_v26 = vsub.f32 %v9509_v43, %v1375_v52  ;;  %v1452_v55 = vsub.f32 %v9510_v51, %v1375_v52  ;;  %v9514_v56 = vld [vmem:[#allocation38_spill] sm:$0xff] }
 0x356   : > { %v7126_v7 = vpop.eup %5614  ;;  %5628 = vpow2.f32 %v1557_v46  ;;  %1677 = vadd.xlane.f32.xlu0 %v1676_v40 }
 0x357   : > { %9511 = vst [vmem:[#allocation32_spill] sm:$0xff] %v7126_v7  ;;  %v7128_v48 = vpop.eup %5616  ;;  %v1551_v37 = vmul.f32 1.442695, %v1451_v26  ;;  %v1553_v2 = vmul.f32 1.442695, %v1452_v55  ;;  %v9515_v55 = vld [vmem:[#allocation35_spill] sm:$0xff] }
 0x358   : > { %9512 = vst [vmem:[#allocation45_spill] sm:$0xff] %v7128_v48  ;;  %v1372_v4 = vpop.xlane.xlu0 %1371  ;;  %v1673_v49 = vadd.f32 %v7128_v48, %v7126_v7 }
 0x359   : > { %5630 = vpow2.f32 %v1551_v37  ;;  %v1449_v25 = vsub.f32 %v9513_v60, %v1372_v4  ;;  %v1450_v50 = vsub.f32 %v9514_v56, %v1372_v4  ;;  %v9516_v37 = vld [vmem:[#allocation36_spill] sm:$0xff] }
 0x35a   : > { %v7134_v43 = vpop.eup %5618  ;;  %5632 = vpow2.f32 %v1553_v2  ;;  %1674 = vadd.xlane.f32.xlu1 %v1673_v49 }
 0x35b   : > { %v7136_v52 = vpop.eup %5620  ;;  %v1547_v46 = vmul.f32 1.442695, %v1449_v25  ;;  %v1549_v40 = vmul.f32 1.442695, %v1450_v50 }
 0x35c   : > { %v1369_v51 = vpop.xlane.xlu0 %1368  ;;  %v1670_v26 = vadd.f32 %v7136_v52, %v7134_v43 }
 0x35d   : > { %5634 = vpow2.f32 %v1547_v46  ;;  %v1447_v7 = vsub.f32 %v9515_v55, %v1369_v51  ;;  %v1448_v48 = vsub.f32 %v9516_v37, %v1369_v51 }
 0x35e   : > { %v7142_v60 = vpop.eup %5622  ;;  %5636 = vpow2.f32 %v1549_v40  ;;  %1671 = vadd.xlane.f32.xlu0 %v1670_v26 }
 0x35f   : > { %v7144_v4 = vpop.eup %5624  ;;  %v1543_v2 = vmul.f32 1.442695, %v1447_v7  ;;  %v1545_v49 = vmul.f32 1.442695, %v1448_v48  ;;  %v7158_v7 = vpop.f32.mrf.mxu0 }
 0x360   : > { %v1667_v25 = vadd.f32 %v7144_v4, %v7142_v60  ;;  %9520 = vst [vmem:[#allocation41_spill] sm:$0xff] %v7158_v7 }
 0x361   : > { %5638 = vpow2.f32 %v1543_v2  ;;  %v7162_v26 = vpop.f32.mrf.mxu0 }
 0x362   : > { %v7148_v50 = vpop.eup %5626  ;;  %5640 = vpow2.f32 %v1545_v49  ;;  %1668 = vadd.xlane.f32.xlu1 %v1667_v25  ;;  %9521 = vst [vmem:[#allocation42_spill] sm:$0xff] %v7162_v26 }
 0x363   : > { %9517 = vst [vmem:[#allocation46_spill] sm:$0xff] %v7148_v50  ;;  %v7150_v56 = vpop.eup %5628 }
 0x364   : > { %v1664_v46 = vadd.f32 %v7150_v56, %v7148_v50  ;;  %v7170_v49 = vpop.f32.mrf.mxu0 }
 0x365   : > { %9524 = vst [vmem:[#allocation37_spill] sm:$0xff] %v7170_v49 }
 0x366   : > { %v7154_v51 = vpop.eup %5630  ;;  %1665 = vadd.xlane.f32.xlu0 %v1664_v46  ;;  %v7174_v46 = vpop.f32.mrf.mxu0 }
 0x367   : > { %9518 = vst [vmem:[#allocation44_spill] sm:$0xff] %v7154_v51  ;;  %v7156_v40 = vpop.eup %5632  ;;  %9526 = vst [vmem:[#allocation35_spill] sm:$0xff] %v7174_v46 }
 0x368   : > { %9519 = vst [vmem:[#allocation43_spill] sm:$0xff] %v7156_v40  ;;  %v1661_v48 = vadd.f32 %v7156_v40, %v7154_v51  ;;  %v7180_v51 = vpop.f32.mrf.mxu0 }
 0x369   : > { %9528 = vst [vmem:[#allocation47_spill] sm:$0xff] %v7180_v51 }
 0x36a   : > { %v7164_v55 = vpop.eup %5634  ;;  %1662 = vadd.xlane.f32.xlu1 %v1661_v48  ;;  %v7182_v48 = vpop.f32.mrf.mxu0 }
 0x36b   : > { %9522 = vst [vmem:[#allocation39_spill] sm:$0xff] %v7164_v55  ;;  %v7166_v37 = vpop.eup %5636  ;;  %9529 = vst [vmem:[#allocation48_spill] sm:$0xff] %v7182_v48 }
 0x36c   : > { %9523 = vst [vmem:[#allocation40_spill] sm:$0xff] %v7166_v37  ;;  %v1658_v2 = vadd.f32 %v7166_v37, %v7164_v55  ;;  %v7184_v40 = vpop.f32.mrf.mxu0 }
 0x36d   : > { %9530 = vst [vmem:[#allocation49_spill] sm:$0xff] %v7184_v40 }
 0x36e   : > { %v7172_v25 = vpop.eup %5638  ;;  %1659 = vadd.xlane.f32.xlu0 %v1658_v2  ;;  %v7186_v55 = vpop.f32.mrf.mxu0 }
 0x36f   : > { %9525 = vst [vmem:[#allocation38_spill] sm:$0xff] %v7172_v25  ;;  %v7176_v7 = vpop.eup %5640  ;;  %9531 = vst [vmem:[#allocation50_spill] sm:$0xff] %v7186_v55 }
 0x370   : > { %9527 = vst [vmem:[#allocation36_spill] sm:$0xff] %v7176_v7  ;;  %v1655_v26 = vadd.f32 %v7176_v7, %v7172_v25  ;;  %v7188_v49 = vpop.f32.mrf.mxu0  ;;  %v9548_v7 = vld [vmem:[#allocation7_spill] sm:$0xff] }
 0x371   : > { %9532 = vst [vmem:[#allocation51_spill] sm:$0xff] %v7188_v49 }
 0x372   : > { %1656 = vadd.xlane.f32.xlu1 %v1655_v26  ;;  %v7190_v37 = vpop.f32.mrf.mxu0 }
 0x373   : > { %9533 = vst [vmem:[#allocation52_spill] sm:$0xff] %v7190_v37 }
 0x374   : > { %v7192_v2 = vpop.f32.mrf.mxu0 }
 0x375   : > { %9534 = vst [vmem:[#allocation53_spill] sm:$0xff] %v7192_v2 }
 0x376   : > { %v7194_v46 = vpop.f32.mrf.mxu0 }
 0x377   : > { %9535 = vst [vmem:[#allocation54_spill] sm:$0xff] %v7194_v46 }
 0x378   : > { %v7196_v50 = vpop.f32.mrf.mxu0 }
 0x379   : > { %9536 = vst [vmem:[#allocation55_spill] sm:$0xff] %v7196_v50 }
 0x37a   : > { %v7198_v25 = vpop.f32.mrf.mxu0 }
 0x37b   : > { %9537 = vst [vmem:[#allocation56_spill] sm:$0xff] %v7198_v25 }
 0x37c   : > { %v7200_v51 = vpop.f32.mrf.mxu0 }
 0x37d   : > { %9538 = vst [vmem:[#allocation57_spill] sm:$0xff] %v7200_v51 }
 0x37e   : > { %v7202_v26 = vpop.f32.mrf.mxu0 }
 0x37f   : > { %9539 = vst [vmem:[#allocation58_spill] sm:$0xff] %v7202_v26 }
 0x380   : > { %v7204_v48 = vpop.f32.mrf.mxu0 }
 0x381   : > { %9540 = vst [vmem:[#allocation59_spill] sm:$0xff] %v7204_v48 }
 0x382   : > { %v7206_v40 = vpop.f32.mrf.mxu0 }
 0x383   : > { %9541 = vst [vmem:[#allocation60_spill] sm:$0xff] %v7206_v40 }
 0x384   : > { %v7208_v55 = vpop.f32.mrf.mxu0 }
 0x385   : > { %9542 = vst [vmem:[#allocation61_spill] sm:$0xff] %v7208_v55 }
 0x386   : > { %v7210_v37 = vpop.f32.mrf.mxu0 }
 0x387   : > { %9543 = vst [vmem:[#allocation62_spill] sm:$0xff] %v7210_v37 }
 0x388   : > { %v7212_v2 = vpop.f32.mrf.mxu0 }
 0x389   : > { %9544 = vst [vmem:[#allocation63_spill] sm:$0xff] %v7212_v2 }
 0x38a   : > { %v7214_v50 = vpop.f32.mrf.mxu0 }
 0x38b   : > { %v1654_v49 = vpop.xlane.xlu1 %1653  ;;  %9545 = vst [vmem:[#allocation64_spill] sm:$0xff] %v7214_v50 }
 0x38c   : > { %5642 = vrcp.f32 %v1654_v49  ;;  %v7216_v25 = vpop.f32.mrf.mxu0 }
 0x38d   : > { %9546 = vst [vmem:[#allocation65_spill] sm:$0xff] %v7216_v25 }
 0x38e   : > { %v7218_v26 = vpop.f32.mrf.mxu0 }
 0x38f   : > { %v1651_v46 = vpop.xlane.xlu1 %1650  ;;  %9547 = vst [vmem:[#allocation66_spill] sm:$0xff] %v7218_v26 }
 0x390   : > { %5644 = vrcp.f32 %v1651_v46  ;;  %v7220_v48 = vpop.f32.mrf.mxu0 }
 0x392   : > { %v657_v55 = vpop.f32.mrf.mxu0 }
 0x393   : > { %v1648_v51 = vpop.xlane.xlu1 %1647  ;;  %1863 = vmatprep.mubr.f32.mxu1 %v657_v55  ;;  %v9550_v55 = vld [vmem:[#allocation11_spill] sm:$0xff] }
 0x394   : > { %5646 = vrcp.f32 %v1648_v51  ;;  %v9549_v51 = vld [vmem:[#allocation9_spill] sm:$0xff] }
 0x397   : > { %v1645_v40 = vpop.xlane.xlu1 %1644 }
 0x398   : > { %5648 = vrcp.f32 %v1645_v40 }
 0x399   : > { %v5643_v49 = vpop.eup %5642 }
 0x39a   : > { %v1766_v37 = vmul.f32 %v5643_v49, %v6931_v54  ;;  %v1765_v46 = vmul.f32 %v5643_v49, %v6928_v14 }
 0x39b   : > { %1920 = vxpose.xlu0.b32.start [1/4] (short) %v9548_v7, 128  ;;  %v1642_v2 = vpop.xlane.xlu1 %1641 }
 0x39c   : > { %5650 = vrcp.f32 %v1642_v2  ;;  %1799 = vmatprep.subr.mxu1 %v1766_v37  ;;  %v9551_v2 = vld [vmem:[#allocation8_spill] sm:$0xff] }
 0x39d   : > { %v5645_v50 = vpop.eup %5644  ;;  %1800 = vmatpush1.xpose.msra.mxu1 %v1765_v46 }
 0x39e   : > { %v1764_v25 = vmul.f32 %v5645_v50, %v6940_v10  ;;  %v1763_v40 = vmul.f32 %v5645_v50, %v6935_v20  ;;  %v9552_v10 = vld [vmem:[#allocation13_spill] sm:$0xff] }
 0x39f   : > { %1921 = vxpose.xlu0.b32.cont [2/4] (short) %v9549_v51, 128  ;;  %v1639_v26 = vpop.xlane.xlu1 %1638 }
 0x3a0   : > { %5652 = vrcp.f32 %v1639_v26  ;;  %1801 = vmatprep.subr.mxu1 %v1764_v25  ;;  %v9553_v26 = vld [vmem:[#allocation10_spill] sm:$0xff] }
 0x3a1   : > { %v5647_v7 = vpop.eup %5646  ;;  %1802 = vmatpush1.xpose.msra.mxu1 %v1763_v40  ;;  %v9554_v40 = vld [vmem:[#allocation12_spill] sm:$0xff] }
 0x3a2   : > { %v1762_v14 = vmul.f32 %v5647_v7, %v6950_v59  ;;  %v1761_v54 = vmul.f32 %v5647_v7, %v6944_v62  ;;  %v1624_v7 = vpop.xlane.xlu0 %1623 }
 0x3a3   : > { %1922 = vxpose.xlu0.b32.cont [3/4] (short) %v9550_v55, 128  ;;  %v1636_v37 = vpop.xlane.xlu1 %1635 }
 0x3a4   : > { %5654 = vrcp.f32 %v1636_v37  ;;  %1803 = vmatprep.subr.mxu1 %v1762_v14 }
 0x3a5   : > { %1952 = vxpose.xlu1.b32.start [1/4] (short) %v9551_v2, 128  ;;  %v5649_v49 = vpop.eup %5648  ;;  %1804 = vmatpush1.xpose.msra.mxu1 %v1761_v54  ;;  %v9555_v54 = vld [vmem:[#allocation14_spill] sm:$0xff] }
 0x3a6   : > { %v1760_v20 = vmul.f32 %v5649_v49, %v6960_v41  ;;  %v1759_v50 = vmul.f32 %v5649_v49, %v6954_v17 }
 0x3a7   : > { %1923 = vxpose.xlu0.b32.end [4/4] (short) %v9552_v10, 128  ;;  %v1633_v25 = vpop.xlane.xlu1 %1632  ;;  %v1618_v10 = vpop.xlane.xlu0 %1617 }
 0x3a8   : > { %5656 = vrcp.f32 %v1633_v25  ;;  %1805 = vmatprep.subr.mxu1 %v1760_v20 }
 0x3a9   : > { %1953 = vxpose.xlu1.b32.cont [2/4] (short) %v9553_v26, 128  ;;  %v5651_v59 = vpop.eup %5650  ;;  %1806 = vmatpush1.xpose.msra.mxu1 %v1759_v50 }
 0x3aa   : > { %v1758_v62 = vmul.f32 %v5651_v59, %v6968_v36  ;;  %v1757_v46 = vmul.f32 %v5651_v59, %v6963_v39 }
 0x3ab   : > { %v1630_v51 = vpop.xlane.xlu1 %1629  ;;  %v1612_v59 = vpop.xlane.xlu0 %1611 }
 0x3ac   : > { %5658 = vrcp.f32 %v1630_v51  ;;  %1807 = vmatprep.subr.mxu1 %v1758_v62 }
 0x3ad   : > { %1954 = vxpose.xlu1.b32.cont [3/4] (short) %v9554_v40, 128  ;;  %v5653_v41 = vpop.eup %5652  ;;  %1808 = vmatpush1.xpose.msra.mxu1 %v1757_v46  ;;  %5660 = vrcp.f32 %v1624_v7 }
 0x3ae   : > { %v1756_v17 = vmul.f32 %v5653_v41, %v6982_v28  ;;  %v1755_v55 = vmul.f32 %v5653_v41, %v6976_v23 }
 0x3af   : > { %v1627_v14 = vpop.xlane.xlu1 %1626 }
 0x3b0   : > { %5662 = vrcp.f32 %v1627_v14  ;;  %1809 = vmatprep.subr.mxu1 %v1756_v17 }
 0x3b1   : > { %1955 = vxpose.xlu1.b32.end [4/4] (short) %v9555_v54, 128  ;;  %v5655_v36 = vpop.eup %5654  ;;  %1810 = vmatpush1.xpose.msra.mxu1 %v1755_v55 }
 0x3b2   : > { %v1754_v39 = vmul.f32 %v5655_v36, %v6996_v8  ;;  %v1753_v37 = vmul.f32 %v5655_v36, %v6989_v27  ;;  %v9556_v36 = vld [vmem:[#allocation33_spill] sm:$0xff] }
 0x3b3   : > { %v1621_v2 = vpop.xlane.xlu1 %1620 }
 0x3b4   : > { %5664 = vrcp.f32 %v1621_v2  ;;  %1811 = vmatprep.subr.mxu1 %v1754_v39 }
 0x3b5   : > { %v5657_v49 = vpop.eup %5656  ;;  %1812 = vmatpush1.xpose.msra.mxu1 %v1753_v37  ;;  %5666 = vrcp.f32 %v1618_v10 }
 0x3b6   : > { %v1752_v23 = vmul.f32 %v5657_v49, %v7010_v31  ;;  %v1751_v28 = vmul.f32 %v5657_v49, %v7003_v35 }
 0x3b7   : > { %v1615_v50 = vpop.xlane.xlu1 %1614 }
 0x3b8   : > { %1813 = vmatprep.subr.mxu1 %v1752_v23  ;;  %5668 = vrcp.f32 %v1615_v50 }
 0x3b9   : > { %v5659_v20 = vpop.eup %5658  ;;  %1814 = vmatpush1.xpose.msra.mxu1 %v1751_v28  ;;  %5670 = vrcp.f32 %v1612_v59 }
 0x3ba   : > { %v1750_v25 = vmul.f32 %v5659_v20, %v7016_v24  ;;  %v1749_v8 = vmul.f32 %v5659_v20, %v7012_v3  ;;  %v5661_v27 = vpop.eup %5660 }
 0x3bb   : > { %v1746_v35 = vmul.f32 %v5661_v27, %v6973_v13  ;;  %v1609_v51 = vpop.xlane.xlu1 %1608  ;;  %v1745_v3 = vmul.f32 %v5661_v27, %v6970_v12 }
 0x3bc   : > { %1815 = vmatprep.subr.mxu1 %v1750_v25  ;;  %5672 = vrcp.f32 %v1609_v51 }
 0x3bd   : > { %v5663_v26 = vpop.eup %5662  ;;  %1816 = vmatpush1.xpose.msra.mxu1 %v1749_v8 }
 0x3be   : > { %v1748_v62 = vmul.f32 %v5663_v26, %v7022_v61  ;;  %v1747_v31 = vmul.f32 %v5663_v26, %v7018_v18 }
 0x3c0   : > { %1817 = vmatprep.subr.mxu1 %v1748_v62 }
 0x3c1   : > { %v5665_v46 = vpop.eup %5664  ;;  %1818 = vmatpush1.xpose.msra.mxu1 %v1747_v31 }
 0x3c2   : > { %1819 = vmatprep.subr.mxu1 %v1746_v35  ;;  %v1744_v24 = vmul.f32 %v5665_v46, %v7026_v19  ;;  %v5667_v40 = vpop.eup %5666  ;;  %v1743_v61 = vmul.f32 %v5665_v46, %v7024_v11 }
 0x3c3   : > { %v1742_v18 = vmul.f32 %v5667_v40, %v6986_v57  ;;  %v1741_v17 = vmul.f32 %v5667_v40, %v6984_v63 }
 0x3c5   : > { %1820 = vmatpush1.xpose.msra.mxu1 %v1745_v3  ;;  %v5669_v41 = vpop.eup %5668 }
 0x3c6   : > { %1821 = vmatprep.subr.mxu1 %v1744_v24  ;;  %v1740_v12 = vmul.f32 %v5669_v41, %v7036_v58  ;;  %v5671_v55 = vpop.eup %5670  ;;  %v1739_v14 = vmul.f32 %v5669_v41, %v7032_v30 }
 0x3c7   : > { %v1699_v7 = vpop.xlane.xlu1 %1698  ;;  %v1738_v11 = vmul.f32 %v5671_v55, %v7000_v9  ;;  %v1737_v39 = vmul.f32 %v5671_v55, %v9556_v36 }
 0x3c8   : > { %5674 = vrcp.f32 %v1699_v7 }
 0x3c9   : > { %1822 = vmatpush1.xpose.msra.mxu1 %v1743_v61  ;;  %v5673_v57 = vpop.eup %5672  ;;  %v9558_v61 = vld [vmem:[#allocation34_spill] sm:$0xff] }
 0x3ca   : > { %1823 = vmatprep.subr.mxu1 %v1742_v18  ;;  %v1736_v63 = vmul.f32 %v5673_v57, %v7046_v38  ;;  %v1735_v58 = vmul.f32 %v5673_v57, %v7041_v0 }
 0x3cb   : > { %v1693_v54 = vpop.xlane.xlu1 %1692 }
 0x3cd   : > { %v1702_v13 = vpop.xlane.xlu0 %1701  ;;  %1824 = vmatpush1.xpose.msra.mxu1 %v1741_v17 }
 0x3ce   : > { %5676 = vrcp.f32 %v1702_v13  ;;  %1825 = vmatprep.subr.mxu1 %v1740_v12  ;;  %v9560_v13 = vld [vmem:[#allocation32_spill] sm:$0xff] }
 0x3cf   : > { %v1687_v49 = vpop.xlane.xlu1 %1686 }
 0x3d1   : > { %v1696_v19 = vpop.xlane.xlu0 %1695  ;;  %1826 = vmatpush1.xpose.msra.mxu1 %v1739_v14 }
 0x3d2   : > { %5678 = vrcp.f32 %v1696_v19  ;;  %1827 = vmatprep.subr.mxu1 %v1738_v11 }
 0x3d3   : > { %5680 = vrcp.f32 %v1693_v54 }
 0x3d5   : > { %v1690_v37 = vpop.xlane.xlu0 %1689  ;;  %1828 = vmatpush1.xpose.msra.mxu1 %v1737_v39  ;;  %v5675_v2 = vpop.eup %5674 }
 0x3d6   : > { %1829 = vmatprep.subr.mxu1 %v1736_v63  ;;  %5682 = vrcp.f32 %v1690_v37  ;;  %v1796_v23 = vmul.f32 %v5675_v2, %v7060_v42  ;;  %v1795_v20 = vmul.f32 %v5675_v2, %v7058_v15  ;;  %v9562_v63 = vld [vmem:[#allocation43_spill] sm:$0xff]  ;;  %v9563_v2 = vld [vmem:[#allocation44_spill] sm:$0xff] }
 0x3d7   : > { %5684 = vrcp.f32 %v1687_v49 }
 0x3d9   : > { %1830 = vmatpush1.xpose.msra.mxu1 %v1735_v58  ;;  %v1684_v38 = vpop.xlane.xlu0 %1683 }
 0x3da   : > { %5686 = vrcp.f32 %v1684_v38 }
 0x3db   : > { %v5677_v30 = vpop.eup %5676  ;;  %v1681_v25 = vpop.xlane.xlu1 %1680 }
 0x3dc   : > { %v1798_v9 = vmul.f32 %v5677_v30, %v7074_v22  ;;  %v1797_v10 = vmul.f32 %v5677_v30, %v7070_v5  ;;  %5688 = vrcp.f32 %v1681_v25  ;;  %v9564_v30 = vld [vmem:[#allocation40_spill] sm:$0xff] }
 0x3de   : > { %1831 = vmatprep.subr.mxu1 %v1798_v9 }
 0x3df   : > { %v5679_v28 = vpop.eup %5678  ;;  %1832 = vmatpush2.xpose.msra.mxu1 %v1797_v10  ;;  %v1678_v42 = vpop.xlane.xlu0 %1677 }
 0x3e0   : > { %1833 = vmatprep.subr.mxu1 %v1796_v23  ;;  %v1794_v0 = vmul.f32 %v5679_v28, %v7088_v6  ;;  %v5681_v50 = vpop.eup %5680  ;;  %v1793_v22 = vmul.f32 %v5679_v28, %v7084_v33  ;;  %5690 = vrcp.f32 %v1678_v42  ;;  %v9566_v23 = vld [vmem:[#allocation36_spill] sm:$0xff] }
 0x3e1   : > { %v1792_v5 = vmul.f32 %v5681_v50, %v7068_v47  ;;  %v1791_v27 = vmul.f32 %v5681_v50, %v7066_v32 }
 0x3e3   : > { %1834 = vmatpush2.xpose.msra.mxu1 %v1795_v20  ;;  %v5683_v8 = vpop.eup %5682  ;;  %v1675_v6 = vpop.xlane.xlu1 %1674 }
 0x3e4   : > { %1835 = vmatprep.subr.mxu1 %v1794_v0  ;;  %v1790_v15 = vmul.f32 %v5683_v8, %v7096_v44  ;;  %v5685_v26 = vpop.eup %5684  ;;  %v1789_v59 = vmul.f32 %v5683_v8, %v7092_v45  ;;  %5692 = vrcp.f32 %v1675_v6  ;;  %v9567_v0 = vld [vmem:[#allocation38_spill] sm:$0xff]  ;;  %v9569_v8 = vld [vmem:[#allocation49_spill] sm:$0xff]  ;;  %v9572_v6 = vld [vmem:[#allocation35_spill] sm:$0xff] }
 0x3e5   : > { %v1788_v33 = vmul.f32 %v5685_v26, %v7082_v34  ;;  %v1787_v31 = vmul.f32 %v5685_v26, %v7078_v16  ;;  %v9557_v16 = vld [vmem:[#allocation31_spill] sm:$0xff] }
 0x3e6   : > { %v9571_v26 = vld [vmem:[#allocation47_spill] sm:$0xff] }
 0x3e7   : > { %1836 = vmatpush2.xpose.msra.mxu1 %v1793_v22  ;;  %v5687_v62 = vpop.eup %5686  ;;  %v1672_v47 = vpop.xlane.xlu0 %1671  ;;  %v9568_v22 = vld [vmem:[#allocation50_spill] sm:$0xff] }
 0x3e8   : > { %1837 = vmatprep.subr.mxu1 %v1792_v5  ;;  %5694 = vrcp.f32 %v1672_v47  ;;  %v1786_v32 = vmul.f32 %v5687_v62, %v7104_v1  ;;  %v1785_v46 = vmul.f32 %v5687_v62, %v7102_v21  ;;  %v9559_v21 = vld [vmem:[#allocation45_spill] sm:$0xff]  ;;  %v9574_v62 = vld [vmem:[#allocation42_spill] sm:$0xff] }
 0x3e9   : > { %v5689_v35 = vpop.eup %5688 }
 0x3ea   : > { %v1784_v45 = vmul.f32 %v5689_v35, %v7112_v53  ;;  %v1783_v3 = vmul.f32 %v5689_v35, %v7110_v29  ;;  %v9576_v35 = vmov 0.0  }
 0x3eb   : > { %1838 = vmatpush2.xpose.msra.mxu1 %v1791_v27  ;;  %v1669_v44 = vpop.xlane.xlu1 %1668  ;;  %v9570_v27 = vld [vmem:[#allocation48_spill] sm:$0xff] }
 0x3ec   : > { %1839 = vmatprep.subr.mxu1 %v1790_v15  ;;  %5696 = vrcp.f32 %v1669_v44 }
 0x3ed   : > { %v5691_v51 = vpop.eup %5690 }
 0x3ee   : > { %v1782_v24 = vmul.f32 %v5691_v51, %v9557_v16  ;;  %v1781_v7 = vmul.f32 %v5691_v51, %v9558_v61 }
 0x3ef   : > { %1840 = vmatpush2.xpose.msra.mxu1 %v1789_v59  ;;  %v1666_v34 = vpop.xlane.xlu0 %1665  ;;  %v9573_v59 = vld [vmem:[#allocation37_spill] sm:$0xff] }
 0x3f0   : > { %1841 = vmatprep.subr.mxu1 %v1788_v33  ;;  %5698 = vrcp.f32 %v1666_v34 }
 0x3f1   : > { %v5693_v40 = vpop.eup %5692 }
 0x3f2   : > { %v1780_v18 = vmul.f32 %v5693_v40, %v9559_v21  ;;  %v1779_v17 = vmul.f32 %v5693_v40, %v9560_v13 }
 0x3f3   : > { %1842 = vmatpush2.xpose.msra.mxu1 %v1787_v31  ;;  %v1663_v1 = vpop.xlane.xlu1 %1662 }
 0x3f4   : > { %1843 = vmatprep.subr.mxu1 %v1786_v32  ;;  %5700 = vrcp.f32 %v1663_v1 }
 0x3f5   : > { %v5695_v41 = vpop.eup %5694 }
 0x3f6   : > { %v1778_v29 = vmul.f32 %v5695_v41, %v7136_v52  ;;  %v1777_v19 = vmul.f32 %v5695_v41, %v7134_v43  ;;  %v9561_v52 = vld [vmem:[#allocation46_spill] sm:$0xff]  ;;  %v661_v43 = vpop.f32.mrf.mxu0 }
 0x3f7   : > { %1844 = vmatpush2.xpose.msra.mxu1 %v1785_v46  ;;  %v1660_v53 = vpop.xlane.xlu0 %1659 }
 0x3f8   : > { %1845 = vmatprep.subr.mxu1 %v1784_v45  ;;  %5702 = vrcp.f32 %v1660_v53 }
 0x3f9   : > { %v5697_v12 = vpop.eup %5696 }
 0x3fa   : > { %v1776_v14 = vmul.f32 %v5697_v12, %v7144_v4  ;;  %v1775_v57 = vmul.f32 %v5697_v12, %v7142_v60  ;;  %v663_v60 = vpop.f32.mrf.mxu0 }
 0x3fb   : > { %1846 = vmatpush2.xpose.msra.mxu1 %v1783_v3  ;;  %v1657_v55 = vpop.xlane.xlu1 %1656 }
 0x3fc   : > { %1847 = vmatprep.subr.mxu1 %v1782_v24  ;;  %5704 = vrcp.f32 %v1657_v55  ;;  %v667_v20 = vpop.f32.mrf.mxu0 }
 0x3fd   : > { %v5699_v11 = vpop.eup %5698 }
 0x3fe   : > { %v1774_v54 = vmul.f32 %v5699_v11, %v7150_v56  ;;  %v1773_v39 = vmul.f32 %v5699_v11, %v9561_v52  ;;  %v9565_v56 = vld [vmem:[#allocation39_spill] sm:$0xff]  ;;  %v669_v5 = vpop.f32.mrf.mxu0 }
 0x3ff   : > { %1848 = vmatpush2.xpose.msra.mxu1 %v1781_v7 }
 0x400   : > { %1849 = vmatprep.subr.mxu1 %v1780_v18  ;;  %v673_v15 = vpop.f32.mrf.mxu0 }
 0x401   : > { %v5701_v36 = vpop.eup %5700 }
 0x402   : > { %v1772_v37 = vmul.f32 %v5701_v36, %v9562_v63  ;;  %v1771_v4 = vmul.f32 %v5701_v36, %v9563_v2  ;;  %v675_v47 = vpop.f32.mrf.mxu0 }
 0x403   : > { %1850 = vmatpush2.xpose.msra.mxu1 %v1779_v17 }
 0x404   : > { %1851 = vmatprep.subr.mxu1 %v1778_v29 }
 0x405   : > { %v5703_v58 = vpop.eup %5702 }
 0x406   : > { %v1770_v49 = vmul.f32 %v5703_v58, %v9564_v30  ;;  %v1769_v10 = vmul.f32 %v5703_v58, %v9565_v56 }
 0x407   : > { %1852 = vmatpush2.xpose.msra.mxu1 %v1777_v19 }
 0x408   : > { %1853 = vmatprep.subr.mxu1 %v1776_v14 }
 0x409   : > { %v5705_v9 = vpop.eup %5704 }
 0x40a   : > { %v1768_v28 = vmul.f32 %v5705_v9, %v9566_v23  ;;  %v1767_v50 = vmul.f32 %v5705_v9, %v9567_v0 }
 0x40b   : > { %1854 = vmatpush2.xpose.msra.mxu1 %v1775_v57 }
 0x40c   : > { %1855 = vmatprep.subr.mxu1 %v1774_v54 }
 0x40f   : > { %1856 = vmatpush2.xpose.msra.mxu1 %v1773_v39 }
 0x410   : > { %1857 = vmatprep.subr.mxu1 %v1772_v37 }
 0x413   : > { %1858 = vmatpush2.xpose.msra.mxu1 %v1771_v4 }
 0x414   : > { %1859 = vmatprep.subr.mxu1 %v1770_v49 }
 0x417   : > { %1860 = vmatpush2.xpose.msra.mxu1 %v1769_v10  ;;  %v1936_v38 = vpop.trf.xlu0 }
 0x418   : > { %1861 = vmatprep.subr.mxu1 %v1768_v28  ;;  %v1984_v32 = vmul.f32 0.17677669, %v1936_v38 }
 0x41b   : > { %1862 = vmatpush2.xpose.msra.mxu1 %v1767_v50  ;;  %v1937_v25 = vpop.trf.xlu0 }
 0x41c   : > { %2136 = vmatprep.subr.mxu1 %v9568_v22  ;;  %v1985_v46 = vmul.f32 0.17677669, %v1937_v25 }
 0x41e   : > { %1864 = vmatmul.mubr.f32.vlgmr.msra.gmra.mxu1 %v7220_v48  ;;  %v9575_v48 = vld [vmem:[#allocation41_spill] sm:$0xff] }
 0x41f   : > { %1869 = vmatprep.mubr.f32.mxu1 %v663_v60  ;;  %2137 = vmatpush1.msra.mxu1 %v9569_v8  ;;  %v1938_v42 = vpop.trf.xlu0 }
 0x420   : > { %2138 = vmatprep.subr.mxu1 %v9570_v27  ;;  %v1986_v51 = vmul.f32 0.17677669, %v1938_v42 }
 0x421   : > { %2139 = vmatpush1.msra.mxu1 %v9571_v26  ;;  %v1968_v18 = vpop.trf.xlu1 }
 0x422   : > { %1870 = vmatmul.mubr.f32.gmra.mxu1 %v661_v43  ;;  %2140 = vmatprep.subr.mxu1 %v9572_v6  ;;  %v2000_v43 = vmul.f32 0.17677669, %v1968_v18 }
 0x423   : > { %1875 = vmatprep.mubr.f32.mxu1 %v669_v5  ;;  %2141 = vmatpush1.msra.mxu1 %v9573_v59  ;;  %v1939_v33 = vpop.trf.xlu0 }
 0x424   : > { %2142 = vmatprep.subr.mxu1 %v9574_v62  ;;  %v1987_v3 = vmul.f32 0.17677669, %v1939_v33 }
 0x425   : > { %2143 = vmatpush1.msra.mxu1 %v9575_v48  ;;  %v1969_v17 = vpop.trf.xlu1 }
 0x426   : > { %1876 = vmatmul.mubr.f32.gmra.mxu1 %v667_v20  ;;  %v2001_v4 = vmul.f32 0.17677669, %v1969_v17 }
 0x427   : > { %1881 = vmatprep.mubr.f32.mxu1 %v675_v47  ;;  %v1940_v31 = vpop.trf.xlu0 }
 0x428   : > { %v1988_v24 = vmul.f32 0.17677669, %v1940_v31 }
 0x429   : > { %v1970_v55 = vpop.trf.xlu1 }
 0x42a   : > { %1882 = vmatmul.mubr.f32.gmra.mxu1 %v673_v15  ;;  %v2002_v30 = vmul.f32 0.17677669, %v1970_v55 }
 0x42b   : > { %2176 = vmatprep.mubr.f32.mxu1 %v9576_v35  ;;  %v1941_v44 = vpop.trf.xlu0 }
 0x42c   : > { %v1989_v40 = vmul.f32 0.17677669, %v1941_v44 }
 0x42d   : > { %v1971_v57 = vpop.trf.xlu1 }
 0x42e   : > { %5366 = vmatmul.mubr.msk.f32.vlgmr.msra.gmra.mxu1 %vm252_vm0, %v1984_v32  ;;  %v2003_v9 = vmul.f32 0.17677669, %v1971_v57 }
 0x42f   : > { %2182 = vmatprep.mubr.f32.mxu1 %v9576_v35  ;;  %v1942_v45 = vpop.trf.xlu0 }
 0x430   : > { %v1990_v61 = vmul.f32 0.17677669, %v1942_v45 }
 0x431   : > { %v1972_v52 = vpop.trf.xlu1 }
 0x432   : > { %5367 = vmatmul.mubr.msk.f32.gmra.mxu1 %vm252_vm0, %v1985_v46  ;;  %v2004_v56 = vmul.f32 0.17677669, %v1972_v52 }
 0x433   : > { %2188 = vmatprep.mubr.f32.mxu1 %v9576_v35  ;;  %v1943_v34 = vpop.trf.xlu0 }
 0x434   : > { %v1991_v21 = vmul.f32 0.17677669, %v1943_v34 }
 0x435   : > { %v1973_v58 = vpop.trf.xlu1 }
 0x436   : > { %5368 = vmatmul.mubr.msk.f32.gmra.mxu1 %vm252_vm0, %v1986_v51  ;;  %v2005_v10 = vmul.f32 0.17677669, %v1973_v58 }
 0x437   : > { %2194 = vmatprep.mubr.f32.mxu1 %v9576_v35  ;;  %v1944_v16 = vpop.trf.xlu0 }
 0x438   : > { %v1992_v41 = vmul.f32 0.17677669, %v1944_v16 }
 0x439   : > { %v1974_v2 = vpop.trf.xlu1 }
 0x43a   : > { %5369 = vmatmul.mubr.msk.f32.gmra.mxu1 %vm252_vm0, %v1987_v3  ;;  %v2006_v28 = vmul.f32 0.17677669, %v1974_v2 }
 0x43b   : > { %2200 = vmatprep.mubr.f32.mxu1 %v9576_v35  ;;  %v1945_v1 = vpop.trf.xlu0 }
 0x43c   : > { %v1993_v13 = vmul.f32 0.17677669, %v1945_v1 }
 0x43d   : > { %v1975_v49 = vpop.trf.xlu1 }
 0x43e   : > { %5370 = vmatmul.mubr.msk.f32.gmra.mxu1 %vm252_vm0, %v1988_v24  ;;  %v2007_v20 = vmul.f32 0.17677669, %v1975_v49 }
 0x43f   : > { %2206 = vmatprep.mubr.f32.mxu1 %v9576_v35  ;;  %v1946_v7 = vpop.trf.xlu0 }
 0x440   : > { %v1994_v12 = vmul.f32 0.17677669, %v1946_v7 }
 0x441   : > { %v1976_v60 = vpop.trf.xlu1 }
 0x442   : > { %5371 = vmatmul.mubr.msk.f32.gmra.mxu1 %vm252_vm0, %v1989_v40  ;;  %v2008_v0 = vmul.f32 0.17677669, %v1976_v60 }
 0x443   : > { %2212 = vmatprep.mubr.f32.mxu1 %v9576_v35  ;;  %v1947_v53 = vpop.trf.xlu0 }
 0x444   : > { %v1995_v19 = vmul.f32 0.17677669, %v1947_v53 }
 0x445   : > { %v1977_v23 = vpop.trf.xlu1 }
 0x446   : > { %5372 = vmatmul.mubr.msk.f32.gmra.mxu1 %vm252_vm0, %v1990_v61  ;;  %v2009_v25 = vmul.f32 0.17677669, %v1977_v23 }
 0x447   : > { %2218 = vmatprep.mubr.f32.mxu1 %v9576_v35  ;;  %v1948_v29 = vpop.trf.xlu0 }
 0x448   : > { %v1996_v11 = vmul.f32 0.17677669, %v1948_v29 }
 0x449   : > { %v1978_v38 = vpop.trf.xlu1 }
 0x44a   : > { %5373 = vmatmul.mubr.msk.f32.gmra.mxu1 %vm252_vm0, %v1991_v21  ;;  %v2010_v5 = vmul.f32 0.17677669, %v1978_v38 }
 0x44b   : > { %2224 = vmatprep.mubr.f32.mxu1 %v9576_v35  ;;  %v1949_v14 = vpop.trf.xlu0 }
 0x44c   : > { %v1997_v36 = vmul.f32 0.17677669, %v1949_v14 }
 0x44d   : > { %v1979_v50 = vpop.trf.xlu1 }
 0x44e   : > { %5374 = vmatmul.mubr.msk.f32.gmra.mxu1 %vm252_vm0, %v1992_v41  ;;  %v2011_v8 = vmul.f32 0.17677669, %v1979_v50 }
 0x44f   : > { %2230 = vmatprep.mubr.f32.mxu1 %v9576_v35  ;;  %v1950_v54 = vpop.trf.xlu0 }
 0x450   : > { %v1998_v39 = vmul.f32 0.17677669, %v1950_v54 }
 0x451   : > { %v1980_v22 = vpop.trf.xlu1 }
 0x452   : > { %5375 = vmatmul.mubr.msk.f32.gmra.mxu1 %vm252_vm0, %v1993_v13  ;;  %v2012_v27 = vmul.f32 0.17677669, %v1980_v22 }
 0x453   : > { %2236 = vmatprep.mubr.f32.mxu1 %v9576_v35  ;;  %v1951_v63 = vpop.trf.xlu0 }
 0x454   : > { %v1999_v37 = vmul.f32 0.17677669, %v1951_v63 }
 0x455   : > { %v1981_v42 = vpop.trf.xlu1 }
 0x456   : > { %5376 = vmatmul.mubr.msk.f32.gmra.mxu1 %vm252_vm0, %v1994_v12  ;;  %v2013_v26 = vmul.f32 0.17677669, %v1981_v42 }
 0x457   : > { %2242 = vmatprep.mubr.f32.mxu1 %v9576_v35 }
 0x459   : > { %v1982_v15 = vpop.trf.xlu1 }
 0x45a   : > { %5377 = vmatmul.mubr.msk.f32.gmra.mxu1 %vm252_vm0, %v1995_v19  ;;  %v2014_v6 = vmul.f32 0.17677669, %v1982_v15 }
 0x45b   : > { %2248 = vmatprep.mubr.f32.mxu1 %v9576_v35 }
 0x45d   : > { %v1983_v59 = vpop.trf.xlu1 }
 0x45e   : > { %5378 = vmatmul.mubr.msk.f32.gmra.mxu1 %vm252_vm0, %v1996_v11  ;;  %v2015_v33 = vmul.f32 0.17677669, %v1983_v59 }
 0x45f   : > { %2254 = vmatprep.mubr.f32.mxu1 %v9576_v35 }
 0x462   : > { %5379 = vmatmul.mubr.msk.f32.gmra.mxu1 %vm252_vm0, %v1997_v36 }
 0x463   : > { %2260 = vmatprep.mubr.f32.mxu1 %v9576_v35 }
 0x466   : > { %5380 = vmatmul.mubr.msk.f32.gmra.mxu1 %vm252_vm0, %v1998_v39 }
 0x467   : > { %2266 = vmatprep.mubr.f32.mxu1 %v9576_v35 }
 0x46a   : > { %5381 = vmatmul.mubr.msk.f32.gmra.mxu1 %vm252_vm0, %v1999_v37 }
 0x46b   : > { %2272 = vmatprep.mubr.f32.mxu1 %v9576_v35 }
 0x46e   : > { %5382 = vmatmul.mubr.msk.f32.gmra.mxu1 %vm252_vm0, %v2000_v43 }
 0x46f   : > { %2278 = vmatprep.mubr.f32.mxu1 %v9576_v35 }
 0x472   : > { %5383 = vmatmul.mubr.msk.f32.gmra.mxu1 %vm252_vm0, %v2001_v4 }
 0x473   : > { %2284 = vmatprep.mubr.f32.mxu1 %v9576_v35 }
 0x476   : > { %5384 = vmatmul.mubr.msk.f32.gmra.mxu1 %vm252_vm0, %v2002_v30 }
 0x477   : > { %2290 = vmatprep.mubr.f32.mxu1 %v9576_v35 }
 0x47a   : > { %5385 = vmatmul.mubr.msk.f32.gmra.mxu1 %vm252_vm0, %v2003_v9 }
 0x47b   : > { %2296 = vmatprep.mubr.f32.mxu1 %v9576_v35 }
 0x47e   : > { %5386 = vmatmul.mubr.msk.f32.gmra.mxu1 %vm252_vm0, %v2004_v56 }
 0x47f   : > { %2302 = vmatprep.mubr.f32.mxu1 %v9576_v35 }
 0x482   : > { %5387 = vmatmul.mubr.msk.f32.gmra.mxu1 %vm252_vm0, %v2005_v10 }
 0x483   : > { %2308 = vmatprep.mubr.f32.mxu1 %v9576_v35 }
 0x486   : > { %5388 = vmatmul.mubr.msk.f32.gmra.mxu1 %vm252_vm0, %v2006_v28 }
 0x487   : > { %2314 = vmatprep.mubr.f32.mxu1 %v9576_v35 }
 0x48a   : > { %5389 = vmatmul.mubr.msk.f32.gmra.mxu1 %vm252_vm0, %v2007_v20 }
 0x48b   : > { %2320 = vmatprep.mubr.f32.mxu1 %v9576_v35 }
 0x48e   : > { %5390 = vmatmul.mubr.msk.f32.gmra.mxu1 %vm252_vm0, %v2008_v0 }
 0x48f   : > { %2326 = vmatprep.mubr.f32.mxu1 %v9576_v35 }
 0x492   : > { %5391 = vmatmul.mubr.msk.f32.gmra.mxu1 %vm252_vm0, %v2009_v25 }
 0x493   : > { %2332 = vmatprep.mubr.f32.mxu1 %v9576_v35 }
 0x496   : > { %5392 = vmatmul.mubr.msk.f32.gmra.mxu1 %vm252_vm0, %v2010_v5 }
 0x497   : > { %2338 = vmatprep.mubr.f32.mxu1 %v9576_v35 }
 0x49a   : > { %5393 = vmatmul.mubr.msk.f32.gmra.mxu1 %vm252_vm0, %v2011_v8 }
 0x49b   : > { %2344 = vmatprep.mubr.f32.mxu1 %v9576_v35 }
 0x49e   : > { %5394 = vmatmul.mubr.msk.f32.gmra.mxu1 %vm252_vm0, %v2012_v27 }
 0x49f   : > { %2350 = vmatprep.mubr.f32.mxu1 %v9576_v35 }
 0x4a2   : > { %5395 = vmatmul.mubr.msk.f32.gmra.mxu1 %vm252_vm0, %v2013_v26 }
 0x4a3   : > { %2356 = vmatprep.mubr.f32.mxu1 %v9576_v35 }
 0x4a6   : > { %5396 = vmatmul.mubr.msk.f32.gmra.mxu1 %vm252_vm0, %v2014_v6 }
 0x4a7   : > { %2362 = vmatprep.mubr.f32.mxu1 %v9576_v35 }
 0x4aa   : > { %5397 = vmatmul.mubr.msk.f32.gmra.mxu1 %vm252_vm0, %v2015_v33 }
 0x4de   : > { %v7367_v62 = vpop.f32.mrf.mxu1 }
 0x4df   : > { %9577 = vst [vmem:[#allocation7_spill] sm:$0xff] %v7367_v62 }
 0x4e0   : > { %v7369_v47 = vpop.f32.mrf.mxu1 }
 0x4e1   : > { %9578 = vst [vmem:[#allocation9_spill] sm:$0xff] %v7369_v47 }
 0x4e2   : > { %v7371_v48 = vpop.f32.mrf.mxu1 }
 0x4e3   : > { %9579 = vst [vmem:[#allocation11_spill] sm:$0xff] %v7371_v48 }
 0x4e4   : > { %v7373_v31 = vpop.f32.mrf.mxu1 }
 0x4e5   : > { %9580 = vst [vmem:[#allocation8_spill] sm:$0xff] %v7373_v31 }
 0x4e6   : > { %v7375_v32 = vpop.f32.mrf.mxu1 }
 0x4e7   : > { %9581 = vst [vmem:[#allocation13_spill] sm:$0xff] %v7375_v32 }
 0x4e8   : > { %v7377_v44 = vpop.f32.mrf.mxu1 }
 0x4e9   : > { %9582 = vst [vmem:[#allocation10_spill] sm:$0xff] %v7377_v44 }
 0x4ea   : > { %v7379_v46 = vpop.f32.mrf.mxu1 }
 0x4eb   : > { %9583 = vst [vmem:[#allocation12_spill] sm:$0xff] %v7379_v46 }
 0x4ec   : > { %v7381_v45 = vpop.f32.mrf.mxu1 }
 0x4ed   : > { %9584 = vst [vmem:[#allocation14_spill] sm:$0xff] %v7381_v45 }
 0x4ee   : > { %v7383_v51 = vpop.f32.mrf.mxu1 }
 0x4ef   : > { %9585 = vst [vmem:[#allocation33_spill] sm:$0xff] %v7383_v51 }
 0x4f0   : > { %v7385_v34 = vpop.f32.mrf.mxu1 }
 0x4f1   : > { %9586 = vst [vmem:[#allocation31_spill] sm:$0xff] %v7385_v34 }
 0x4f2   : > { %v7387_v3 = vpop.f32.mrf.mxu1 }
 0x4f4   : > { %v7389_v16 = vpop.f32.mrf.mxu1 }
 0x4f6   : > { %v7391_v24 = vpop.f32.mrf.mxu1 }
 0x4f7   : > { %9587 = vst [vmem:[#allocation34_spill] sm:$0xff] %v7391_v24 }
 0x4f8   : > { %v7393_v40 = vpop.f32.mrf.mxu1 }
 0x4f9   : > { %9588 = vst [vmem:[#allocation45_spill] sm:$0xff] %v7393_v40  ;;  %v2375_v59 = vmax.f32 %v7391_v24, %v7393_v40 }
 0x4fa   : > { %v7395_v1 = vpop.f32.mrf.mxu1 }
 0x4fc   : > { %v7397_v61 = vpop.f32.mrf.mxu1 }
 0x4fe   : > { %v7399_v7 = vpop.f32.mrf.mxu1 }
 0x4ff   : > { %9589 = vst [vmem:[#allocation32_spill] sm:$0xff] %v7399_v7 }
 0x500   : > { %v7401_v21 = vpop.f32.mrf.mxu1 }
 0x501   : > { %9590 = vst [vmem:[#allocation46_spill] sm:$0xff] %v7401_v21  ;;  %v2381_v27 = vmax.f32 %v7399_v7, %v7401_v21 }
 0x502   : > { %v7403_v18 = vpop.f32.mrf.mxu1 }
 0x504   : > { %v7405_v41 = vpop.f32.mrf.mxu1 }
 0x505   : > { %v2384_v33 = vmax.f32 %v7403_v18, %v7405_v41 }
 0x506   : > { %v7407_v53 = vpop.f32.mrf.mxu1 }
 0x508   : > { %v7409_v13 = vpop.f32.mrf.mxu1 }
 0x509   : > { %v2387_v22 = vmax.f32 %v7407_v53, %v7409_v13 }
 0x50a   : > { %v7411_v17 = vpop.f32.mrf.mxu1 }
 0x50c   : > { %v7413_v29 = vpop.f32.mrf.mxu1 }
 0x50d   : > { %v2390_v15 = vmax.f32 %v7411_v17, %v7413_v29 }
 0x50e   : > { %v7415_v12 = vpop.f32.mrf.mxu1 }
 0x510   : > { %v7417_v55 = vpop.f32.mrf.mxu1 }
 0x511   : > { %v2393_v20 = vmax.f32 %v7415_v12, %v7417_v55 }
 0x512   : > { %v7419_v19 = vpop.f32.mrf.mxu1 }
 0x514   : > { %v7421_v14 = vpop.f32.mrf.mxu1 }
 0x515   : > { %v2396_v5 = vmax.f32 %v7419_v19, %v7421_v14 }
 0x516   : > { %v7423_v11 = vpop.f32.mrf.mxu1 }
 0x518   : > { %v7425_v57 = vpop.f32.mrf.mxu1 }
 0x519   : > { %v2399_v10 = vmax.f32 %v7423_v11, %v7425_v57 }
 0x51a   : > { %v7427_v54 = vpop.f32.mrf.mxu1 }
 0x51c   : > { %v7429_v36 = vpop.f32.mrf.mxu1 }
 0x51d   : > { %v2402_v0 = vmax.f32 %v7427_v54, %v7429_v36 }
 0x51e   : > { %v7431_v52 = vpop.f32.mrf.mxu1 }
 0x520   : > { %v7433_v39 = vpop.f32.mrf.mxu1 }
 0x521   : > { %v2405_v49 = vmax.f32 %v7431_v52, %v7433_v39 }
 0x522   : > { %v7435_v63 = vpop.f32.mrf.mxu1 }
 0x524   : > { %v7437_v37 = vpop.f32.mrf.mxu1 }
 0x525   : > { %v2408_v23 = vmax.f32 %v7435_v63, %v7437_v37 }
 0x526   : > { %v7439_v58 = vpop.f32.mrf.mxu1 }
 0x528   : > { %v7441_v43 = vpop.f32.mrf.mxu1 }
 0x529   : > { %v2411_v2 = vmax.f32 %v7439_v58, %v7441_v43 }
 0x52a   : > { %v7445_v4 = vpop.f32.mrf.mxu1 }
 0x52b   : > { %2412 = vmax.xlane.f32.xlu1 %v2411_v2 }
 0x52c   : > { %v7447_v30 = vpop.f32.mrf.mxu1 }
 0x52d   : > { %v2414_v9 = vmax.f32 %v7445_v4, %v7447_v30 }
 0x52e   : > { %v7453_v60 = vpop.f32.mrf.mxu1 }
 0x52f   : > { %9591 = vst [vmem:[#allocation43_spill] sm:$0xff] %v7453_v60  ;;  %2406 = vmax.xlane.f32.xlu1 %v2405_v49  ;;  %2415 = vmax.xlane.f32.xlu0 %v2414_v9  ;;  %v2369_v9 = vmax.f32 %v7383_v51, %v7385_v34 }
 0x530   : > { %v7455_v56 = vpop.f32.mrf.mxu1 }
 0x531   : > { %9592 = vst [vmem:[#allocation44_spill] sm:$0xff] %v7455_v56 }
 0x532   : > { %v7461_v28 = vpop.f32.mrf.mxu1 }
 0x533   : > { %9593 = vst [vmem:[#allocation40_spill] sm:$0xff] %v7461_v28  ;;  %2400 = vmax.xlane.f32.xlu1 %v2399_v10  ;;  %2409 = vmax.xlane.f32.xlu0 %v2408_v23  ;;  %v2378_v10 = vmax.f32 %v7395_v1, %v7397_v61 }
 0x534   : > { %v7463_v38 = vpop.f32.mrf.mxu1 }
 0x535   : > { %9594 = vst [vmem:[#allocation39_spill] sm:$0xff] %v7463_v38 }
 0x536   : > { %v7469_v50 = vpop.f32.mrf.mxu1 }
 0x537   : > { %9595 = vst [vmem:[#allocation36_spill] sm:$0xff] %v7469_v50  ;;  %2394 = vmax.xlane.f32.xlu1 %v2393_v20  ;;  %2403 = vmax.xlane.f32.xlu0 %v2402_v0  ;;  %v2372_v0 = vmax.f32 %v7387_v3, %v7389_v16 }
 0x538   : > { %v7471_v25 = vpop.f32.mrf.mxu1 }
 0x539   : > { %9596 = vst [vmem:[#allocation38_spill] sm:$0xff] %v7471_v25 }
 0x53a   : > { %v7477_v8 = vpop.f32.mrf.mxu1 }
 0x53b   : > { %9597 = vst [vmem:[#allocation50_spill] sm:$0xff] %v7477_v8  ;;  %2388 = vmax.xlane.f32.xlu1 %v2387_v22  ;;  %2397 = vmax.xlane.f32.xlu0 %v2396_v5 }
 0x53c   : > { %v7479_v42 = vpop.f32.mrf.mxu1 }
 0x53d   : > { %9598 = vst [vmem:[#allocation49_spill] sm:$0xff] %v7479_v42 }
 0x53e   : > { %v7485_v26 = vpop.f32.mrf.mxu1 }
 0x53f   : > { %2382 = vmax.xlane.f32.xlu1 %v2381_v27  ;;  %2391 = vmax.xlane.f32.xlu0 %v2390_v15 }
 0x540   : > { %v7487_v6 = vpop.f32.mrf.mxu1 }
 0x541   : > { %9599 = vst [vmem:[#allocation48_spill] sm:$0xff] %v7487_v6 }
 0x542   : > { %v7493_v2 = vpop.f32.mrf.mxu1 }
 0x543   : > { %2376 = vmax.xlane.f32.xlu1 %v2375_v59  ;;  %2385 = vmax.xlane.f32.xlu0 %v2384_v33 }
 0x544   : > { %v7495_v49 = vpop.f32.mrf.mxu1 }
 0x546   : > { %v7501_v23 = vpop.f32.mrf.mxu1 }
 0x547   : > { %2370 = vmax.xlane.f32.xlu1 %v2369_v9  ;;  %2379 = vmax.xlane.f32.xlu0 %v2378_v10 }
 0x548   : > { %v7503_v20 = vpop.f32.mrf.mxu1 }
 0x54a   : > { %v7507_v22 = vpop.f32.mrf.mxu1 }
 0x54b   : > { %2373 = vmax.xlane.f32.xlu0 %v2372_v0 }
 0x54c   : > { %v7509_v5 = vpop.f32.mrf.mxu1 }
 0x54e   : > { %v7511_v27 = vpop.f32.mrf.mxu1 }
 0x550   : > { %v7513_v15 = vpop.f32.mrf.mxu1 }
 0x552   : > { %v7515_v59 = vpop.f32.mrf.mxu1 }
 0x554   : > { %v7517_v33 = vpop.f32.mrf.mxu1 }
 0x556   : > { %v7519_v9 = vpop.f32.mrf.mxu1 }
 0x558   : > { %v7521_v10 = vpop.f32.mrf.mxu1 }
 0x559   : > { %v2447_v21 = vmax.f32 %v7519_v9, %v7521_v10 }
 0x55a   : > { %v7523_v62 = vpop.f32.mrf.mxu1 }
 0x55c   : > { %v7525_v47 = vpop.f32.mrf.mxu1 }
 0x55e   : > { %v7527_v48 = vpop.f32.mrf.mxu1 }
 0x560   : > { %v7529_v0 = vpop.f32.mrf.mxu1 }
 0x561   : > { %9600 = vst [vmem:[#allocation47_spill] sm:$0xff] %v7529_v0  ;;  %v2453_v40 = vmax.f32 %v7527_v48, %v7529_v0  ;;  %v2444_v0 = vmax.f32 %v7515_v59, %v7517_v33 }
 0x562   : > { %v7531_v31 = vpop.f32.mrf.mxu1 }
 0x564   : > { %v7533_v32 = vpop.f32.mrf.mxu1 }
 0x565   : > { %v2456_v7 = vmax.f32 %v7531_v31, %v7533_v32 }
 0x566   : > { %v7535_v44 = vpop.f32.mrf.mxu1 }
 0x568   : > { %v7537_v46 = vpop.f32.mrf.mxu1 }
 0x569   : > { %v2459_v45 = vmax.f32 %v7535_v44, %v7537_v46 }
 0x56a   : > { %v7541_v34 = vpop.f32.mrf.mxu1 }
 0x56b   : > { %2460 = vmax.xlane.f32.xlu1 %v2459_v45  ;;  %v2450_v45 = vmax.f32 %v7523_v62, %v7525_v47 }
 0x56c   : > { %v7543_v51 = vpop.f32.mrf.mxu1 }
 0x56d   : > { %v2462_v24 = vmax.f32 %v7541_v34, %v7543_v51 }
 0x56f   : > { %2454 = vmax.xlane.f32.xlu1 %v2453_v40  ;;  %2463 = vmax.xlane.f32.xlu0 %v2462_v24  ;;  %v2441_v40 = vmax.f32 %v7511_v27, %v7513_v15  ;;  %v2438_v24 = vmax.f32 %v7507_v22, %v7509_v5 }
 0x573   : > { %2448 = vmax.xlane.f32.xlu1 %v2447_v21  ;;  %2457 = vmax.xlane.f32.xlu0 %v2456_v7  ;;  %v2435_v21 = vmax.f32 %v7501_v23, %v7503_v20  ;;  %v2432_v7 = vmax.f32 %v7493_v2, %v7495_v49 }
 0x577   : > { %2451 = vmax.xlane.f32.xlu0 %v2450_v45  ;;  %v2429_v45 = vmax.f32 %v7485_v26, %v7487_v6 }
 0x57b   : > { %2445 = vmax.xlane.f32.xlu0 %v2444_v0  ;;  %v2426_v0 = vmax.f32 %v7477_v8, %v7479_v42 }
 0x57f   : > { %2442 = vmax.xlane.f32.xlu0 %v2441_v40  ;;  %v2423_v40 = vmax.f32 %v7469_v50, %v7471_v25 }
 0x583   : > { %2439 = vmax.xlane.f32.xlu0 %v2438_v24  ;;  %v2420_v24 = vmax.f32 %v7461_v28, %v7463_v38 }
 0x587   : > { %2436 = vmax.xlane.f32.xlu0 %v2435_v21  ;;  %v2417_v21 = vmax.f32 %v7453_v60, %v7455_v56 }
 0x58b   : > { %2433 = vmax.xlane.f32.xlu0 %v2432_v7  ;;  %v240_v7 = vld [vmem:[%s9333_s1 + $0x120] sm:$0xff] }
 0x58c   : > { %5322 = vmatmul.mubr.msk.f32.gmra.mxu0 %vm252_vm0, %v240_v7 }
 0x58d   : > { %683 = vmatprep.mubr.f32.mxu0 %v9576_v35 }
 0x58f   : > { %2430 = vmax.xlane.f32.xlu0 %v2429_v45  ;;  %v241_v45 = vld [vmem:[%s9333_s1 + $0x128] sm:$0xff] }
 0x590   : > { %5323 = vmatmul.mubr.msk.f32.gmra.mxu0 %vm252_vm0, %v241_v45 }
 0x591   : > { %689 = vmatprep.mubr.f32.mxu0 %v9576_v35 }
 0x593   : > { %2427 = vmax.xlane.f32.xlu0 %v2426_v0  ;;  %v242_v0 = vld [vmem:[%s9333_s1 + $0x130] sm:$0xff] }
 0x594   : > { %5324 = vmatmul.mubr.msk.f32.gmra.mxu0 %vm252_vm0, %v242_v0 }
 0x595   : > { %695 = vmatprep.mubr.f32.mxu0 %v9576_v35 }
 0x597   : > { %2424 = vmax.xlane.f32.xlu0 %v2423_v40  ;;  %v243_v40 = vld [vmem:[%s9333_s1 + $0x138] sm:$0xff] }
 0x598   : > { %5325 = vmatmul.mubr.msk.f32.gmra.mxu0 %vm252_vm0, %v243_v40 }
 0x599   : > { %701 = vmatprep.mubr.f32.mxu0 %v9576_v35 }
 0x59b   : > { %2421 = vmax.xlane.f32.xlu0 %v2420_v24 }
 0x59f   : > { %2418 = vmax.xlane.f32.xlu0 %v2417_v21 }
 0x5b4   : > { %v2413_v24 = vpop.xlane.xlu1 %2412 }
 0x5b5   : > { %v2493_v7 = vsub.f32 %v7439_v58, %v2413_v24  ;;  %v2494_v60 = vsub.f32 %v7441_v43, %v2413_v24 }
 0x5b7   : > { %v2585_v50 = vmul.f32 1.442695, %v2493_v7  ;;  %v2587_v40 = vmul.f32 1.442695, %v2494_v60 }
 0x5b8   : > { %v2416_v21 = vpop.xlane.xlu0 %2415  ;;  %v2407_v45 = vpop.xlane.xlu1 %2406 }
 0x5b9   : > { %v2495_v56 = vsub.f32 %v7445_v4, %v2416_v21  ;;  %v2496_v0 = vsub.f32 %v7447_v30, %v2416_v21  ;;  %v2489_v4 = vsub.f32 %v7431_v52, %v2407_v45  ;;  %v2490_v43 = vsub.f32 %v7433_v39, %v2407_v45 }
 0x5bb   : > { %v2589_v38 = vmul.f32 1.442695, %v2495_v56  ;;  %v2591_v28 = vmul.f32 1.442695, %v2496_v0  ;;  %v2577_v24 = vmul.f32 1.442695, %v2489_v4 }
 0x5bc   : > { %v2410_v25 = vpop.xlane.xlu0 %2409  ;;  %v2401_v8 = vpop.xlane.xlu1 %2400  ;;  %v2579_v60 = vmul.f32 1.442695, %v2490_v43 }
 0x5bd   : > { %v2491_v42 = vsub.f32 %v7435_v63, %v2410_v25  ;;  %v2492_v35 = vsub.f32 %v7437_v37, %v2410_v25  ;;  %5706 = vpow2.f32 %v2589_v38  ;;  %v2486_v38 = vsub.f32 %v7425_v57, %v2401_v8 }
 0x5be   : > { %5708 = vpow2.f32 %v2591_v28  ;;  %v2485_v28 = vsub.f32 %v7423_v11, %v2401_v8 }
 0x5bf   : > { %5710 = vpow2.f32 %v2585_v50  ;;  %v2581_v6 = vmul.f32 1.442695, %v2491_v42  ;;  %v2583_v30 = vmul.f32 1.442695, %v2492_v35 }
 0x5c0   : > { %v2404_v58 = vpop.xlane.xlu0 %2403  ;;  %5712 = vpow2.f32 %v2587_v40  ;;  %v2395_v21 = vpop.xlane.xlu1 %2394  ;;  %v2569_v42 = vmul.f32 1.442695, %v2485_v28 }
 0x5c1   : > { %5714 = vpow2.f32 %v2581_v6  ;;  %v2487_v63 = vsub.f32 %v7427_v54, %v2404_v58  ;;  %v2488_v37 = vsub.f32 %v7429_v36, %v2404_v58  ;;  %v2481_v52 = vsub.f32 %v7415_v12, %v2395_v21 }
 0x5c2   : > { %5716 = vpow2.f32 %v2583_v30  ;;  %v2482_v35 = vsub.f32 %v7417_v55, %v2395_v21  ;;  %v2571_v6 = vmul.f32 1.442695, %v2486_v38 }
 0x5c3   : > { %5718 = vpow2.f32 %v2577_v24  ;;  %v2573_v39 = vmul.f32 1.442695, %v2487_v63  ;;  %v2575_v25 = vmul.f32 1.442695, %v2488_v37  ;;  %v2561_v7 = vmul.f32 1.442695, %v2481_v52 }
 0x5c4   : > { %v2398_v56 = vpop.xlane.xlu0 %2397  ;;  %5720 = vpow2.f32 %v2579_v60  ;;  %v2563_v11 = vmul.f32 1.442695, %v2482_v35  ;;  %v2389_v43 = vpop.xlane.xlu1 %2388 }
 0x5c5   : > { %5722 = vpow2.f32 %v2573_v39  ;;  %v2483_v12 = vsub.f32 %v7419_v19, %v2398_v56  ;;  %v2484_v55 = vsub.f32 %v7421_v14, %v2398_v56 }
 0x5c6   : > { %5724 = vpow2.f32 %v2575_v25 }
 0x5c7   : > { %5726 = vpow2.f32 %v2569_v42 }
 0x5c8   : > { %v7608_v50 = vpop.xlane.xlu0 %2391  ;;  %5728 = vpow2.f32 %v2571_v6  ;;  %v2383_v35 = vpop.xlane.xlu1 %2382 }
 0x5c9   : > { %5730 = vpow2.f32 %v2561_v7  ;;  %v2480_v39 = vsub.f32 %v7413_v29, %v7608_v50 }
 0x5ca   : > { %v7611_v54 = vpop.eup %5706  ;;  %5732 = vpow2.f32 %v2563_v11 }
 0x5cb   : > { %v7613_v45 = vpop.eup %5708  ;;  %v2559_v11 = vmul.f32 1.442695, %v2480_v39 }
 0x5cc   : > { %v2386_v36 = vpop.xlane.xlu0 %2385  ;;  %v7617_v8 = vpop.eup %5710  ;;  %v2702_v40 = vadd.f32 %v7613_v45, %v7611_v54 }
 0x5cd   : > { %v2475_v57 = vsub.f32 %v7403_v18, %v2386_v36  ;;  %v2476_v0 = vsub.f32 %v7405_v41, %v2386_v36  ;;  %v7623_v58 = vpop.eup %5712  ;;  %v2565_v18 = vmul.f32 1.442695, %v2483_v12  ;;  %v2567_v41 = vmul.f32 1.442695, %v2484_v55 }
 0x5ce   : > { %2703 = vadd.xlane.f32.xlu1 %v2702_v40  ;;  %v7626_v21 = vpop.eup %5714  ;;  %v2699_v56 = vadd.f32 %v7623_v58, %v7617_v8  ;;  %v2478_v36 = vsub.f32 %v7409_v13, %v2389_v43 }
 0x5cf   : > { %v2549_v4 = vmul.f32 1.442695, %v2475_v57  ;;  %v2551_v30 = vmul.f32 1.442695, %v2476_v0  ;;  %v7631_v63 = vpop.eup %5716  ;;  %v9601_v57 = vld [vmem:[#allocation32_spill] sm:$0xff]  ;;  %v2377_v0 = vpop.xlane.xlu1 %2376 }
 0x5d0   : > { %v2380_v19 = vpop.xlane.xlu0 %2379  ;;  %v2696_v25 = vadd.f32 %v7631_v63, %v7626_v21  ;;  %v2473_v55 = vsub.f32 %v9601_v57, %v2383_v35  ;;  %v9607_v57 = vld [vmem:[#allocation31_spill] sm:$0xff] }
 0x5d1   : > { %v2471_v24 = vsub.f32 %v7395_v1, %v2380_v19  ;;  %v2472_v14 = vsub.f32 %v7397_v61, %v2380_v19  ;;  %5734 = vpow2.f32 %v2549_v4  ;;  %v2479_v1 = vsub.f32 %v7411_v17, %v7608_v50  ;;  %v7637_v61 = vpop.eup %5718  ;;  %v9602_v4 = vld [vmem:[#allocation46_spill] sm:$0xff] }
 0x5d2   : > { %5736 = vpow2.f32 %v2551_v30  ;;  %2700 = vadd.xlane.f32.xlu1 %v2699_v56  ;;  %v7643_v42 = vpop.eup %5720  ;;  %v2474_v30 = vsub.f32 %v9602_v4, %v2383_v35 }
 0x5d3   : > { %v2541_v60 = vmul.f32 1.442695, %v2471_v24  ;;  %v2543_v37 = vmul.f32 1.442695, %v2472_v14  ;;  %5738 = vpow2.f32 %v2565_v18  ;;  %v7646_v17 = vpop.eup %5722  ;;  %v2693_v29 = vadd.f32 %v7643_v42, %v7637_v61 }
 0x5d4   : > { %v2374_v28 = vpop.xlane.xlu0 %2373  ;;  %5740 = vpow2.f32 %v2567_v41  ;;  %v7651_v50 = vpop.eup %5724  ;;  %v2545_v41 = vmul.f32 1.442695, %v2473_v55  ;;  %v2547_v56 = vmul.f32 1.442695, %v2474_v30 }
 0x5d5   : > { %v2467_v38 = vsub.f32 %v7387_v3, %v2374_v28  ;;  %v2468_v52 = vsub.f32 %v7389_v16, %v2374_v28  ;;  %5742 = vpow2.f32 %v2541_v60  ;;  %v2477_v3 = vsub.f32 %v7407_v53, %v2389_v43  ;;  %v7653_v12 = vpop.eup %5726  ;;  %v9603_v60 = vld [vmem:[#allocation34_spill] sm:$0xff] }
 0x5d6   : > { %5744 = vpow2.f32 %v2543_v37  ;;  %2697 = vadd.xlane.f32.xlu1 %v2696_v25  ;;  %v2557_v16 = vmul.f32 1.442695, %v2479_v1  ;;  %v7656_v53 = vpop.eup %5728  ;;  %v2555_v43 = vmul.f32 1.442695, %v2478_v36  ;;  %v2690_v19 = vadd.f32 %v7651_v50, %v7646_v17  ;;  %v9604_v1 = vld [vmem:[#allocation45_spill] sm:$0xff] }
 0x5d7   : > { %v2533_v6 = vmul.f32 1.442695, %v2467_v38  ;;  %v2535_v7 = vmul.f32 1.442695, %v2468_v52  ;;  %v2553_v40 = vmul.f32 1.442695, %v2477_v3  ;;  %v7659_v13 = vpop.eup %5730  ;;  %v2469_v37 = vsub.f32 %v9603_v60, %v2377_v0  ;;  %v2371_v52 = vpop.xlane.xlu1 %2370 }
 0x5d8   : > { %v7663_v18 = vpop.eup %5732  ;;  %v2470_v38 = vsub.f32 %v9604_v1, %v2377_v0  ;;  %v2687_v35 = vadd.f32 %v7656_v53, %v7653_v12  ;;  %v2466_v55 = vsub.f32 %v9607_v57, %v2371_v52 }
 0x5d9   : > { %5746 = vpow2.f32 %v2533_v6  ;;  %v2537_v3 = vmul.f32 1.442695, %v2469_v37 }
 0x5da   : > { %5748 = vpow2.f32 %v2535_v7  ;;  %2694 = vadd.xlane.f32.xlu1 %v2693_v29  ;;  %v2539_v29 = vmul.f32 1.442695, %v2470_v38 }
 0x5db   : > { %5750 = vpow2.f32 %v2557_v16  ;;  %v9605_v16 = vld [vmem:[#allocation33_spill] sm:$0xff] }
 0x5dc   : > { %5752 = vpow2.f32 %v2559_v11  ;;  %v2465_v36 = vsub.f32 %v9605_v16, %v2371_v52 }
 0x5dd   : > { %5754 = vpow2.f32 %v2553_v40 }
 0x5de   : > { %v7665_v24 = vpop.eup %5734  ;;  %2691 = vadd.xlane.f32.xlu1 %v2690_v19  ;;  %5756 = vpow2.f32 %v2555_v43  ;;  %v2529_v43 = vmul.f32 1.442695, %v2465_v36 }
 0x5df   : > { %v7667_v14 = vpop.eup %5736  ;;  %5758 = vpow2.f32 %v2545_v41  ;;  %v2531_v41 = vmul.f32 1.442695, %v2466_v55 }
 0x5e0   : > { %v7670_v28 = vpop.eup %5738  ;;  %v2672_v39 = vadd.f32 %v7667_v14, %v7665_v24  ;;  %5760 = vpow2.f32 %v2547_v56  ;;  %v2681_v56 = vadd.f32 %v7663_v18, %v7659_v13 }
 0x5e1   : > { %v7677_v25 = vpop.eup %5740  ;;  %5762 = vpow2.f32 %v2537_v3 }
 0x5e2   : > { %v7679_v6 = vpop.eup %5742  ;;  %2688 = vadd.xlane.f32.xlu1 %v2687_v35  ;;  %2673 = vadd.xlane.f32.xlu0 %v2672_v39  ;;  %v2684_v0 = vadd.f32 %v7677_v25, %v7670_v28  ;;  %5764 = vpow2.f32 %v2539_v29 }
 0x5e3   : > { %v7681_v7 = vpop.eup %5744  ;;  %5766 = vpow2.f32 %v2529_v43 }
 0x5e4   : > { %v2666_v40 = vadd.f32 %v7681_v7, %v7679_v6  ;;  %5768 = vpow2.f32 %v2531_v41 }
 0x5e6   : > { %v7684_v11 = vpop.eup %5746  ;;  %2685 = vadd.xlane.f32.xlu1 %v2684_v0  ;;  %2667 = vadd.xlane.f32.xlu0 %v2666_v40 }
 0x5e7   : > { %9606 = vst [vmem:[#allocation35_spill] sm:$0xff] %v7684_v11  ;;  %v7691_v4 = vpop.eup %5748 }
 0x5e8   : > { %9608 = vst [vmem:[#allocation37_spill] sm:$0xff] %v7691_v4  ;;  %v2660_v30 = vadd.f32 %v7691_v4, %v7684_v11  ;;  %v7695_v19 = vpop.eup %5750 }
 0x5e9   : > { %v7699_v60 = vpop.eup %5752 }
 0x5ea   : > { %2682 = vadd.xlane.f32.xlu1 %v2681_v56  ;;  %2661 = vadd.xlane.f32.xlu0 %v2660_v30  ;;  %v7701_v37 = vpop.eup %5754  ;;  %v2678_v1 = vadd.f32 %v7699_v60, %v7695_v19  ;;  %v9609_v56 = vld [vmem:[#allocation47_spill] sm:$0xff] }
 0x5eb   : > { %v7705_v38 = vpop.eup %5756 }
 0x5ec   : > { %v7707_v52 = vpop.eup %5758  ;;  %v2675_v39 = vadd.f32 %v7705_v38, %v7701_v37 }
 0x5ed   : > { %v7709_v35 = vpop.eup %5760 }
 0x5ee   : > { %2679 = vadd.xlane.f32.xlu1 %v2678_v1  ;;  %v7715_v29 = vpop.eup %5762  ;;  %v2669_v57 = vadd.f32 %v7709_v35, %v7707_v52 }
 0x5ef   : > { %v7719_v55 = vpop.eup %5764 }
 0x5f2   : > { %2676 = vadd.xlane.f32.xlu1 %v2675_v39 }
 0x5f4   : > { %v2461_v3 = vpop.xlane.xlu1 %2460 }
 0x5f5   : > { %v2525_v16 = vsub.f32 %v7535_v44, %v2461_v3  ;;  %v2526_v36 = vsub.f32 %v7537_v46, %v2461_v3  ;;  %v7724_v46 = vpop.eup %5766  ;;  %v2663_v3 = vadd.f32 %v7719_v55, %v7715_v29 }
 0x5f6   : > { %2670 = vadd.xlane.f32.xlu1 %v2669_v57 }
 0x5f7   : > { %v2649_v0 = vmul.f32 1.442695, %v2525_v16  ;;  %v2651_v40 = vmul.f32 1.442695, %v2526_v36  ;;  %v7729_v16 = vpop.eup %5768 }
 0x5f8   : > { %v2455_v30 = vpop.xlane.xlu1 %2454  ;;  %v2464_v43 = vpop.xlane.xlu0 %2463 }
 0x5f9   : > { %5770 = vpow2.f32 %v2649_v0  ;;  %v2521_v41 = vsub.f32 %v7527_v48, %v2455_v30  ;;  %v2522_v1 = vsub.f32 %v9609_v56, %v2455_v30  ;;  %v2527_v44 = vsub.f32 %v7541_v34, %v2464_v43 }
 0x5fa   : > { %5772 = vpow2.f32 %v2651_v40  ;;  %v2528_v39 = vsub.f32 %v7543_v51, %v2464_v43  ;;  %2664 = vadd.xlane.f32.xlu1 %v2663_v3  ;;  %v2657_v43 = vadd.f32 %v7729_v16, %v7724_v46 }
 0x5fb   : > { %v2641_v36 = vmul.f32 1.442695, %v2521_v41  ;;  %v2643_v57 = vmul.f32 1.442695, %v2522_v1  ;;  %v2653_v11 = vmul.f32 1.442695, %v2527_v44 }
 0x5fc   : > { %v2655_v0 = vmul.f32 1.442695, %v2528_v39  ;;  %v2449_v48 = vpop.xlane.xlu1 %2448  ;;  %v2458_v4 = vpop.xlane.xlu0 %2457 }
 0x5fd   : > { %5774 = vpow2.f32 %v2641_v36  ;;  %v2517_v34 = vsub.f32 %v7519_v9, %v2449_v48  ;;  %v2518_v30 = vsub.f32 %v7521_v10, %v2449_v48  ;;  %v2523_v40 = vsub.f32 %v7531_v31, %v2458_v4 }
 0x5fe   : > { %5776 = vpow2.f32 %v2643_v57  ;;  %v2524_v51 = vsub.f32 %v7533_v32, %v2458_v4  ;;  %2658 = vadd.xlane.f32.xlu1 %v2657_v43 }
 0x5ff   : > { %5778 = vpow2.f32 %v2653_v11  ;;  %v2633_v41 = vmul.f32 1.442695, %v2517_v34  ;;  %v2635_v56 = vmul.f32 1.442695, %v2518_v30  ;;  %v2645_v1 = vmul.f32 1.442695, %v2523_v40 }
 0x600   : > { %5780 = vpow2.f32 %v2655_v0  ;;  %v2647_v44 = vmul.f32 1.442695, %v2524_v51  ;;  %v2452_v39 = vpop.xlane.xlu0 %2451 }
 0x601   : > { %5782 = vpow2.f32 %v2633_v41  ;;  %v2519_v9 = vsub.f32 %v7523_v62, %v2452_v39  ;;  %v2520_v10 = vsub.f32 %v7525_v47, %v2452_v39 }
 0x602   : > { %5784 = vpow2.f32 %v2635_v56 }
 0x603   : > { %5786 = vpow2.f32 %v2645_v1  ;;  %v2637_v31 = vmul.f32 1.442695, %v2519_v9  ;;  %v2639_v32 = vmul.f32 1.442695, %v2520_v10 }
 0x604   : > { %5788 = vpow2.f32 %v2647_v44  ;;  %v2446_v4 = vpop.xlane.xlu0 %2445 }
 0x605   : > { %5790 = vpow2.f32 %v2637_v31  ;;  %v2515_v11 = vsub.f32 %v7515_v59, %v2446_v4  ;;  %v2516_v3 = vsub.f32 %v7517_v33, %v2446_v4 }
 0x606   : > { %v7741_v36 = vpop.eup %5770  ;;  %5792 = vpow2.f32 %v2639_v32 }
 0x607   : > { %v7743_v57 = vpop.eup %5772  ;;  %v2629_v0 = vmul.f32 1.442695, %v2515_v11  ;;  %v2631_v62 = vmul.f32 1.442695, %v2516_v3 }
 0x608   : > { %v2443_v48 = vpop.xlane.xlu0 %2442  ;;  %v2747_v47 = vadd.f32 %v7743_v57, %v7741_v36 }
 0x609   : > { %5794 = vpow2.f32 %v2629_v0  ;;  %v2513_v34 = vsub.f32 %v7511_v27, %v2443_v48  ;;  %v2514_v30 = vsub.f32 %v7513_v15, %v2443_v48 }
 0x60a   : > { %v7749_v40 = vpop.eup %5774  ;;  %5796 = vpow2.f32 %v2631_v62  ;;  %2748 = vadd.xlane.f32.xlu1 %v2747_v47 }
 0x60b   : > { %v7751_v59 = vpop.eup %5776  ;;  %v2625_v33 = vmul.f32 1.442695, %v2513_v34  ;;  %v2627_v51 = vmul.f32 1.442695, %v2514_v30 }
 0x60c   : > { %v7753_v43 = vpop.eup %5778  ;;  %v2440_v41 = vpop.xlane.xlu0 %2439  ;;  %v2741_v56 = vadd.f32 %v7751_v59, %v7749_v40 }
 0x60d   : > { %v7757_v1 = vpop.eup %5780  ;;  %5798 = vpow2.f32 %v2625_v33  ;;  %v2511_v27 = vsub.f32 %v7507_v22, %v2440_v41  ;;  %v2512_v15 = vsub.f32 %v7509_v5, %v2440_v41 }
 0x60e   : > { %v7761_v44 = vpop.eup %5782  ;;  %5800 = vpow2.f32 %v2627_v51  ;;  %2742 = vadd.xlane.f32.xlu1 %v2741_v56  ;;  %v2750_v39 = vadd.f32 %v7757_v1, %v7753_v43 }
 0x60f   : > { %v7765_v9 = vpop.eup %5784  ;;  %v2621_v10 = vmul.f32 1.442695, %v2511_v27  ;;  %v2623_v31 = vmul.f32 1.442695, %v2512_v15 }
 0x610   : > { %v7767_v32 = vpop.eup %5786  ;;  %2751 = vadd.xlane.f32.xlu0 %v2750_v39  ;;  %v2437_v4 = vpop.xlane.xlu0 %2436  ;;  %v2735_v22 = vadd.f32 %v7765_v9, %v7761_v44 }
 0x611   : > { %v7771_v11 = vpop.eup %5788  ;;  %5802 = vpow2.f32 %v2621_v10  ;;  %v2509_v5 = vsub.f32 %v7501_v23, %v2437_v4  ;;  %v2510_v3 = vsub.f32 %v7503_v20, %v2437_v4 }
 0x612   : > { %v7775_v0 = vpop.eup %5790  ;;  %5804 = vpow2.f32 %v2623_v31  ;;  %2736 = vadd.xlane.f32.xlu1 %v2735_v22  ;;  %v2744_v62 = vadd.f32 %v7771_v11, %v7767_v32  ;;  %v9610_v31 = vld [vmem:[#allocation48_spill] sm:$0xff] }
 0x613   : > { %v7779_v48 = vpop.eup %5792  ;;  %v2617_v47 = vmul.f32 1.442695, %v2509_v5  ;;  %v2619_v34 = vmul.f32 1.442695, %v2510_v3 }
 0x614   : > { %2745 = vadd.xlane.f32.xlu0 %v2744_v62  ;;  %v2434_v30 = vpop.xlane.xlu0 %2433  ;;  %v2738_v33 = vadd.f32 %v7779_v48, %v7775_v0 }
 0x615   : > { %5806 = vpow2.f32 %v2617_v47  ;;  %v2507_v23 = vsub.f32 %v7493_v2, %v2434_v30  ;;  %v2508_v20 = vsub.f32 %v7495_v49, %v2434_v30  ;;  %v9611_v47 = vld [vmem:[#allocation50_spill] sm:$0xff]  ;;  %v9612_v30 = vld [vmem:[#allocation49_spill] sm:$0xff] }
 0x616   : > { %v7785_v51 = vpop.eup %5794  ;;  %5808 = vpow2.f32 %v2619_v34 }
 0x617   : > { %v7787_v41 = vpop.eup %5796  ;;  %v2613_v56 = vmul.f32 1.442695, %v2507_v23  ;;  %v2615_v27 = vmul.f32 1.442695, %v2508_v20 }
 0x618   : > { %2739 = vadd.xlane.f32.xlu0 %v2738_v33  ;;  %v2431_v15 = vpop.xlane.xlu0 %2430  ;;  %v2732_v39 = vadd.f32 %v7787_v41, %v7785_v51 }
 0x619   : > { %5810 = vpow2.f32 %v2613_v56  ;;  %v2505_v10 = vsub.f32 %v7485_v26, %v2431_v15  ;;  %v2506_v4 = vsub.f32 %v9610_v31, %v2431_v15  ;;  %v9615_v31 = vld [vmem:[#allocation38_spill] sm:$0xff] }
 0x61a   : > { %v7793_v2 = vpop.eup %5798  ;;  %5812 = vpow2.f32 %v2615_v27 }
 0x61b   : > { %v7795_v49 = vpop.eup %5800  ;;  %v2609_v22 = vmul.f32 1.442695, %v2505_v10  ;;  %v2611_v5 = vmul.f32 1.442695, %v2506_v4 }
 0x61c   : > { %2733 = vadd.xlane.f32.xlu0 %v2732_v39  ;;  %v2428_v3 = vpop.xlane.xlu0 %2427  ;;  %v2729_v62 = vadd.f32 %v7795_v49, %v7793_v2  ;;  %v9614_v39 = vld [vmem:[#allocation36_spill] sm:$0xff] }
 0x61d   : > { %5814 = vpow2.f32 %v2609_v22  ;;  %v2503_v34 = vsub.f32 %v9611_v47, %v2428_v3  ;;  %v2504_v33 = vsub.f32 %v9612_v30, %v2428_v3  ;;  %v9618_v30 = vld [vmem:[#allocation40_spill] sm:$0xff] }
 0x61e   : > { %v7801_v26 = vpop.eup %5802  ;;  %5816 = vpow2.f32 %v2611_v5  ;;  %2730 = vadd.xlane.f32.xlu1 %v2729_v62 }
 0x61f   : > { %9613 = vst [vmem:[#allocation42_spill] sm:$0xff] %v7801_v26  ;;  %v7803_v23 = vpop.eup %5804  ;;  %v2605_v20 = vmul.f32 1.442695, %v2503_v34  ;;  %v2607_v56 = vmul.f32 1.442695, %v2504_v33 }
 0x620   : > { %v2425_v27 = vpop.xlane.xlu0 %2424  ;;  %v2726_v15 = vadd.f32 %v7803_v23, %v7801_v26 }
 0x621   : > { %5818 = vpow2.f32 %v2605_v20  ;;  %v2501_v10 = vsub.f32 %v9614_v39, %v2425_v27  ;;  %v2502_v4 = vsub.f32 %v9615_v31, %v2425_v27  ;;  %v9619_v20 = vld [vmem:[#allocation39_spill] sm:$0xff] }
 0x622   : > { %v7809_v22 = vpop.eup %5806  ;;  %5820 = vpow2.f32 %v2607_v56  ;;  %2727 = vadd.xlane.f32.xlu0 %v2726_v15 }
 0x623   : > { %9616 = vst [vmem:[#allocation41_spill] sm:$0xff] %v7809_v22  ;;  %v7811_v3 = vpop.eup %5808  ;;  %v2601_v5 = vmul.f32 1.442695, %v2501_v10  ;;  %v2603_v62 = vmul.f32 1.442695, %v2502_v4  ;;  %v9620_v4 = vld [vmem:[#allocation43_spill] sm:$0xff] }
 0x624   : > { %9617 = vst [vmem:[#allocation32_spill] sm:$0xff] %v7811_v3  ;;  %v2422_v47 = vpop.xlane.xlu0 %2421  ;;  %v2723_v34 = vadd.f32 %v7811_v3, %v7809_v22 }
 0x625   : > { %5822 = vpow2.f32 %v2601_v5  ;;  %v2499_v33 = vsub.f32 %v9618_v30, %v2422_v47  ;;  %v2500_v26 = vsub.f32 %v9619_v20, %v2422_v47  ;;  %v9621_v5 = vld [vmem:[#allocation44_spill] sm:$0xff] }
 0x626   : > { %v7817_v39 = vpop.eup %5810  ;;  %5824 = vpow2.f32 %v2603_v62  ;;  %2724 = vadd.xlane.f32.xlu1 %v2723_v34 }
 0x627   : > { %v7819_v27 = vpop.eup %5812  ;;  %v2597_v56 = vmul.f32 1.442695, %v2499_v33  ;;  %v2599_v15 = vmul.f32 1.442695, %v2500_v26 }
 0x628   : > { %v2419_v31 = vpop.xlane.xlu0 %2418  ;;  %v2720_v10 = vadd.f32 %v7819_v27, %v7817_v39 }
 0x629   : > { %5826 = vpow2.f32 %v2597_v56  ;;  %v2497_v22 = vsub.f32 %v9620_v4, %v2419_v31  ;;  %v2498_v3 = vsub.f32 %v9621_v5, %v2419_v31 }
 0x62a   : > { %v7825_v30 = vpop.eup %5814  ;;  %5828 = vpow2.f32 %v2599_v15  ;;  %2721 = vadd.xlane.f32.xlu0 %v2720_v10 }
 0x62b   : > { %v7827_v47 = vpop.eup %5816  ;;  %v2593_v62 = vmul.f32 1.442695, %v2497_v22  ;;  %v2595_v34 = vmul.f32 1.442695, %v2498_v3 }
 0x62c   : > { %v2717_v26 = vadd.f32 %v7827_v47, %v7825_v30 }
 0x62d   : > { %5830 = vpow2.f32 %v2593_v62 }
 0x62e   : > { %v7831_v33 = vpop.eup %5818  ;;  %5832 = vpow2.f32 %v2595_v34  ;;  %2718 = vadd.xlane.f32.xlu1 %v2717_v26  ;;  %v244_v26 = vld [vmem:[%s9333_s1 + $0x140] sm:$0xff] }
 0x62f   : > { %v7833_v20 = vpop.eup %5820  ;;  %5326 = vmatmul.mubr.msk.f32.gmra.mxu0 %vm252_vm0, %v244_v26  ;;  %v248_v26 = vld [vmem:[%s9333_s1 + $0x160] sm:$0xff] }
 0x630   : > { %v2714_v56 = vadd.f32 %v7833_v20, %v7831_v33 }
 0x632   : > { %v7837_v31 = vpop.eup %5822  ;;  %2715 = vadd.xlane.f32.xlu0 %v2714_v56  ;;  %v9628_v56 = vmov 0.0  }
 0x633   : > { %9622 = vst [vmem:[#allocation46_spill] sm:$0xff] %v7837_v31  ;;  %v7839_v15 = vpop.eup %5824  ;;  %707 = vmatprep.mubr.f32.mxu0 %v9628_v56 }
 0x634   : > { %9623 = vst [vmem:[#allocation34_spill] sm:$0xff] %v7839_v15  ;;  %v2711_v22 = vadd.f32 %v7839_v15, %v7837_v31 }
 0x636   : > { %v7843_v3 = vpop.eup %5826  ;;  %2712 = vadd.xlane.f32.xlu1 %v2711_v22  ;;  %v245_v22 = vld [vmem:[%s9333_s1 + $0x148] sm:$0xff] }
 0x637   : > { %9624 = vst [vmem:[#allocation45_spill] sm:$0xff] %v7843_v3  ;;  %v7845_v10 = vpop.eup %5828  ;;  %5327 = vmatmul.mubr.msk.f32.gmra.mxu0 %vm252_vm0, %v245_v22 }
 0x638   : > { %9625 = vst [vmem:[#allocation33_spill] sm:$0xff] %v7845_v10  ;;  %v2708_v4 = vadd.f32 %v7845_v10, %v7843_v3  ;;  %713 = vmatprep.mubr.f32.mxu0 %v9628_v56  ;;  %v9630_v3 = vld [vmem:[#allocation15_spill] sm:$0xff] }
 0x63a   : > { %v7849_v5 = vpop.eup %5830  ;;  %2709 = vadd.xlane.f32.xlu0 %v2708_v4  ;;  %v246_v4 = vld [vmem:[%s9333_s1 + $0x150] sm:$0xff] }
 0x63b   : > { %9626 = vst [vmem:[#allocation31_spill] sm:$0xff] %v7849_v5  ;;  %v7851_v62 = vpop.eup %5832  ;;  %5328 = vmatmul.mubr.msk.f32.gmra.mxu0 %vm252_vm0, %v246_v4  ;;  %v249_v4 = vld [vmem:[%s9333_s1 + $0x168] sm:$0xff] }
 0x63c   : > { %9627 = vst [vmem:[#allocation47_spill] sm:$0xff] %v7851_v62  ;;  %v2705_v34 = vadd.f32 %v7851_v62, %v7849_v5  ;;  %719 = vmatprep.mubr.f32.mxu0 %v9628_v56 }
 0x63e   : > { %2706 = vadd.xlane.f32.xlu1 %v2705_v34  ;;  %v247_v34 = vld [vmem:[%s9333_s1 + $0x158] sm:$0xff] }
 0x63f   : > { %5329 = vmatmul.mubr.msk.f32.gmra.mxu0 %vm252_vm0, %v247_v34  ;;  %v250_v34 = vld [vmem:[%s9333_s1 + $0x170] sm:$0xff] }
 0x640   : > { %725 = vmatprep.mubr.f32.mxu0 %v9628_v56 }
 0x643   : > { %5330 = vmatmul.mubr.msk.f32.gmra.mxu0 %vm252_vm0, %v248_v26 }
 0x644   : > { %731 = vmatprep.mubr.f32.mxu0 %v9628_v56 }
 0x647   : > { %5331 = vmatmul.mubr.msk.f32.gmra.mxu0 %vm252_vm0, %v249_v4 }
 0x648   : > { %737 = vmatprep.mubr.f32.mxu0 %v9628_v56 }
 0x64b   : > { %5332 = vmatmul.mubr.msk.f32.gmra.mxu0 %vm252_vm0, %v250_v34 }
 0x64c   : > { %743 = vmatprep.mubr.f32.mxu0 %v9628_v56  ;;  %v7890_v26 = vpop.f32.mrf.mxu0 }
 0x64d   : > { %9629 = vst [vmem:[#allocation48_spill] sm:$0xff] %v7890_v26  ;;  %v9631_v26 = vld [vmem:[#allocation17_spill] sm:$0xff] }
 0x64e   : > { %v681_v10 = vpop.f32.mrf.mxu0 }
 0x657   : > { %v2704_v22 = vpop.xlane.xlu1 %2703 }
 0x658   : > { %5834 = vrcp.f32 %v2704_v22  ;;  %v251_v22 = vld [vmem:[%s9333_s1 + $0x178] sm:$0xff] }
 0x659   : > { %5333 = vmatmul.mubr.msk.f32.gmra.mxu0 %vm252_vm0, %v251_v22 }
 0x65a   : > { %2913 = vmatprep.mubr.f32.mxu0 %v681_v10 }
 0x65b   : > { %v2701_v5 = vpop.xlane.xlu1 %2700 }
 0x65c   : > { %5836 = vrcp.f32 %v2701_v5 }
 0x65f   : > { %v2698_v62 = vpop.xlane.xlu1 %2697 }
 0x660   : > { %5838 = vrcp.f32 %v2698_v62 }
 0x663   : > { %v2695_v4 = vpop.xlane.xlu1 %2694 }
 0x664   : > { %5840 = vrcp.f32 %v2695_v4 }
 0x665   : > { %v5835_v5 = vpop.eup %5834 }
 0x666   : > { %v2816_v31 = vmul.f32 %v5835_v5, %v7613_v45  ;;  %v2815_v62 = vmul.f32 %v5835_v5, %v7611_v54  ;;  %v9632_v45 = vld [vmem:[#allocation19_spill] sm:$0xff]  ;;  %v9633_v5 = vld [vmem:[#allocation16_spill] sm:$0xff] }
 0x667   : > { %2970 = vxpose.xlu0.b32.start [1/4] (short) %v9630_v3, 128  ;;  %v2692_v34 = vpop.xlane.xlu1 %2691 }
 0x668   : > { %5842 = vrcp.f32 %v2692_v34  ;;  %2849 = vmatprep.subr.mxu0 %v2816_v31 }
 0x669   : > { %v5837_v56 = vpop.eup %5836  ;;  %2850 = vmatpush1.xpose.msra.mxu0 %v2815_v62  ;;  %v9635_v62 = vld [vmem:[#allocation18_spill] sm:$0xff] }
 0x66a   : > { %v2814_v15 = vmul.f32 %v5837_v56, %v7623_v58  ;;  %v2813_v22 = vmul.f32 %v5837_v56, %v7617_v8  ;;  %v9634_v58 = vld [vmem:[#allocation21_spill] sm:$0xff] }
 0x66b   : > { %2971 = vxpose.xlu0.b32.cont [2/4] (short) %v9631_v26, 128  ;;  %v2689_v4 = vpop.xlane.xlu1 %2688 }
 0x66c   : > { %5844 = vrcp.f32 %v2689_v4  ;;  %2851 = vmatprep.subr.mxu0 %v2814_v15  ;;  %v9636_v4 = vld [vmem:[#allocation20_spill] sm:$0xff] }
 0x66d   : > { %v5839_v3 = vpop.eup %5838  ;;  %2852 = vmatpush1.xpose.msra.mxu0 %v2813_v22 }
 0x66e   : > { %v2812_v54 = vmul.f32 %v5839_v3, %v7631_v63  ;;  %v2811_v10 = vmul.f32 %v5839_v3, %v7626_v21  ;;  %v2674_v3 = vpop.xlane.xlu0 %2673 }
 0x66f   : > { %2972 = vxpose.xlu0.b32.cont [3/4] (short) %v9632_v45, 128  ;;  %v2686_v31 = vpop.xlane.xlu1 %2685 }
 0x670   : > { %5846 = vrcp.f32 %v2686_v31  ;;  %2853 = vmatprep.subr.mxu0 %v2812_v54 }
 0x671   : > { %3002 = vxpose.xlu1.b32.start [1/4] (short) %v9633_v5, 128  ;;  %v5841_v26 = vpop.eup %5840  ;;  %2854 = vmatpush1.xpose.msra.mxu0 %v2811_v10  ;;  %v9637_v10 = vld [vmem:[#allocation22_spill] sm:$0xff] }
 0x672   : > { %v2810_v8 = vmul.f32 %v5841_v26, %v7643_v42  ;;  %v2809_v15 = vmul.f32 %v5841_v26, %v7637_v61 }
 0x673   : > { %2973 = vxpose.xlu0.b32.end [4/4] (short) %v9634_v58, 128  ;;  %v2683_v56 = vpop.xlane.xlu1 %2682  ;;  %v2668_v58 = vpop.xlane.xlu0 %2667 }
 0x674   : > { %5848 = vrcp.f32 %v2683_v56  ;;  %2855 = vmatprep.subr.mxu0 %v2810_v8 }
 0x675   : > { %3003 = vxpose.xlu1.b32.cont [2/4] (short) %v9635_v62, 128  ;;  %v5843_v63 = vpop.eup %5842  ;;  %2856 = vmatpush1.xpose.msra.mxu0 %v2809_v15 }
 0x676   : > { %v2808_v21 = vmul.f32 %v5843_v63, %v7651_v50  ;;  %v2807_v34 = vmul.f32 %v5843_v63, %v7646_v17 }
 0x677   : > { %v2680_v22 = vpop.xlane.xlu1 %2679  ;;  %v2662_v63 = vpop.xlane.xlu0 %2661 }
 0x678   : > { %5850 = vrcp.f32 %v2680_v22  ;;  %2857 = vmatprep.subr.mxu0 %v2808_v21 }
 0x679   : > { %3004 = vxpose.xlu1.b32.cont [3/4] (short) %v9636_v4, 128  ;;  %v5845_v42 = vpop.eup %5844  ;;  %2858 = vmatpush1.xpose.msra.mxu0 %v2807_v34  ;;  %5852 = vrcp.f32 %v2674_v3 }
 0x67a   : > { %v2806_v61 = vmul.f32 %v5845_v42, %v7656_v53  ;;  %v2805_v45 = vmul.f32 %v5845_v42, %v7653_v12 }
 0x67b   : > { %v2677_v54 = vpop.xlane.xlu1 %2676 }
 0x67c   : > { %5854 = vrcp.f32 %v2677_v54  ;;  %2859 = vmatprep.subr.mxu0 %v2806_v61 }
 0x67d   : > { %3005 = vxpose.xlu1.b32.end [4/4] (short) %v9637_v10, 128  ;;  %v5847_v50 = vpop.eup %5846  ;;  %2860 = vmatpush1.xpose.msra.mxu0 %v2805_v45 }
 0x67e   : > { %v2804_v17 = vmul.f32 %v5847_v50, %v7677_v25  ;;  %v2803_v31 = vmul.f32 %v5847_v50, %v7670_v28 }
 0x67f   : > { %v2671_v5 = vpop.xlane.xlu1 %2670 }
 0x680   : > { %5856 = vrcp.f32 %v2671_v5  ;;  %2861 = vmatprep.subr.mxu0 %v2804_v17  ;;  %v9639_v17 = vld [vmem:[#allocation35_spill] sm:$0xff] }
 0x681   : > { %v5849_v26 = vpop.eup %5848  ;;  %2862 = vmatpush1.xpose.msra.mxu0 %v2803_v31  ;;  %5858 = vrcp.f32 %v2668_v58 }
 0x682   : > { %v2802_v12 = vmul.f32 %v5849_v26, %v7663_v18  ;;  %v2801_v53 = vmul.f32 %v5849_v26, %v7659_v13 }
 0x683   : > { %v2665_v15 = vpop.xlane.xlu1 %2664 }
 0x684   : > { %2863 = vmatprep.subr.mxu0 %v2802_v12  ;;  %5860 = vrcp.f32 %v2665_v15 }
 0x685   : > { %v5851_v8 = vpop.eup %5850  ;;  %2864 = vmatpush1.xpose.msra.mxu0 %v2801_v53  ;;  %5862 = vrcp.f32 %v2662_v63 }
 0x686   : > { %v2800_v56 = vmul.f32 %v5851_v8, %v7699_v60  ;;  %v2799_v25 = vmul.f32 %v5851_v8, %v7695_v19  ;;  %v5853_v28 = vpop.eup %5852 }
 0x687   : > { %v2796_v13 = vmul.f32 %v5853_v28, %v7667_v14  ;;  %v2659_v22 = vpop.xlane.xlu1 %2658  ;;  %v2795_v19 = vmul.f32 %v5853_v28, %v7665_v24 }
 0x688   : > { %2865 = vmatprep.subr.mxu0 %v2800_v56  ;;  %5864 = vrcp.f32 %v2659_v22 }
 0x689   : > { %v5855_v62 = vpop.eup %5854  ;;  %2866 = vmatpush1.xpose.msra.mxu0 %v2799_v25 }
 0x68a   : > { %v2798_v21 = vmul.f32 %v5855_v62, %v7705_v38  ;;  %v2797_v18 = vmul.f32 %v5855_v62, %v7701_v37 }
 0x68c   : > { %2867 = vmatprep.subr.mxu0 %v2798_v21 }
 0x68d   : > { %v5857_v34 = vpop.eup %5856  ;;  %2868 = vmatpush1.xpose.msra.mxu0 %v2797_v18 }
 0x68e   : > { %2869 = vmatprep.subr.mxu0 %v2796_v13  ;;  %v2794_v60 = vmul.f32 %v5857_v34, %v7709_v35  ;;  %v5859_v4 = vpop.eup %5858  ;;  %v2793_v38 = vmul.f32 %v5857_v34, %v7707_v52  ;;  %v9638_v52 = vld [vmem:[#allocation37_spill] sm:$0xff] }
 0x68f   : > { %v2792_v37 = vmul.f32 %v5859_v4, %v7681_v7  ;;  %v2791_v61 = vmul.f32 %v5859_v4, %v7679_v6 }
 0x691   : > { %2870 = vmatpush1.xpose.msra.mxu0 %v2795_v19  ;;  %v5861_v42 = vpop.eup %5860 }
 0x692   : > { %2871 = vmatprep.subr.mxu0 %v2794_v60  ;;  %v2790_v24 = vmul.f32 %v5861_v42, %v7719_v55  ;;  %v5863_v45 = vpop.eup %5862  ;;  %v2789_v54 = vmul.f32 %v5861_v42, %v7715_v29 }
 0x693   : > { %v2749_v3 = vpop.xlane.xlu1 %2748  ;;  %v2788_v10 = vmul.f32 %v5863_v45, %v9638_v52  ;;  %v2787_v31 = vmul.f32 %v5863_v45, %v9639_v17  ;;  %v9643_v17 = vld [vmem:[#allocation34_spill] sm:$0xff] }
 0x694   : > { %5866 = vrcp.f32 %v2749_v3  ;;  %v9640_v3 = vld [vmem:[#allocation42_spill] sm:$0xff] }
 0x695   : > { %2872 = vmatpush1.xpose.msra.mxu0 %v2793_v38  ;;  %v5865_v7 = vpop.eup %5864 }
 0x696   : > { %2873 = vmatprep.subr.mxu0 %v2792_v37  ;;  %v2786_v6 = vmul.f32 %v5865_v7, %v7729_v16  ;;  %v2785_v55 = vmul.f32 %v5865_v7, %v7724_v46 }
 0x697   : > { %v2743_v50 = vpop.xlane.xlu1 %2742 }
 0x699   : > { %v2752_v14 = vpop.xlane.xlu0 %2751  ;;  %2874 = vmatpush1.xpose.msra.mxu0 %v2791_v61  ;;  %v9642_v61 = vld [vmem:[#allocation41_spill] sm:$0xff] }
 0x69a   : > { %5868 = vrcp.f32 %v2752_v14  ;;  %2875 = vmatprep.subr.mxu0 %v2790_v24 }
 0x69b   : > { %v2737_v58 = vpop.xlane.xlu1 %2736 }
 0x69d   : > { %v2746_v35 = vpop.xlane.xlu0 %2745  ;;  %2876 = vmatpush1.xpose.msra.mxu0 %v2789_v54 }
 0x69e   : > { %5870 = vrcp.f32 %v2746_v35  ;;  %2877 = vmatprep.subr.mxu0 %v2788_v10 }
 0x69f   : > { %5872 = vrcp.f32 %v2743_v50 }
 0x6a1   : > { %v2740_v5 = vpop.xlane.xlu0 %2739  ;;  %2878 = vmatpush1.xpose.msra.mxu0 %v2787_v31  ;;  %v5867_v26 = vpop.eup %5866 }
 0x6a2   : > { %2879 = vmatprep.subr.mxu0 %v2786_v6  ;;  %5874 = vrcp.f32 %v2740_v5  ;;  %v2846_v8 = vmul.f32 %v5867_v26, %v7743_v57  ;;  %v2845_v56 = vmul.f32 %v5867_v26, %v7741_v36  ;;  %v9644_v5 = vld [vmem:[#allocation46_spill] sm:$0xff] }
 0x6a3   : > { %5876 = vrcp.f32 %v2737_v58 }
 0x6a5   : > { %2880 = vmatpush1.xpose.msra.mxu0 %v2785_v55  ;;  %v2734_v16 = vpop.xlane.xlu0 %2733  ;;  %v9645_v55 = vld [vmem:[#allocation33_spill] sm:$0xff] }
 0x6a6   : > { %5878 = vrcp.f32 %v2734_v16 }
 0x6a7   : > { %v5869_v29 = vpop.eup %5868  ;;  %v2731_v28 = vpop.xlane.xlu1 %2730 }
 0x6a8   : > { %v2848_v12 = vmul.f32 %v5869_v29, %v7757_v1  ;;  %v2847_v53 = vmul.f32 %v5869_v29, %v7753_v43  ;;  %5880 = vrcp.f32 %v2731_v28  ;;  %v9650_v28 = vld [vmem:[#allocation48_spill] sm:$0xff] }
 0x6aa   : > { %2881 = vmatprep.subr.mxu0 %v2848_v12  ;;  %v9647_v12 = vld [vmem:[#allocation47_spill] sm:$0xff] }
 0x6ab   : > { %v5871_v15 = vpop.eup %5870  ;;  %2882 = vmatpush2.xpose.msra.mxu0 %v2847_v53  ;;  %v2728_v57 = vpop.xlane.xlu0 %2727 }
 0x6ac   : > { %2883 = vmatprep.subr.mxu0 %v2846_v8  ;;  %v2844_v46 = vmul.f32 %v5871_v15, %v7771_v11  ;;  %v5873_v25 = vpop.eup %5872  ;;  %v2843_v1 = vmul.f32 %v5871_v15, %v7767_v32  ;;  %5882 = vrcp.f32 %v2728_v57  ;;  %v9648_v15 = vld [vmem:[#allocation31_spill] sm:$0xff] }
 0x6ad   : > { %v2842_v43 = vmul.f32 %v5873_v25, %v7751_v59  ;;  %v2841_v63 = vmul.f32 %v5873_v25, %v7749_v40 }
 0x6af   : > { %2884 = vmatpush2.xpose.msra.mxu0 %v2845_v56  ;;  %v5875_v62 = vpop.eup %5874  ;;  %v2725_v11 = vpop.xlane.xlu1 %2724 }
 0x6b0   : > { %2885 = vmatprep.subr.mxu0 %v2844_v46  ;;  %v2840_v36 = vmul.f32 %v5875_v62, %v7779_v48  ;;  %v5877_v21 = vpop.eup %5876  ;;  %v2839_v18 = vmul.f32 %v5875_v62, %v7775_v0  ;;  %5884 = vrcp.f32 %v2725_v11  ;;  %v9649_v46 = vld [vmem:[#allocation58_spill] sm:$0xff]  ;;  %v9652_v62 = vld [vmem:[#allocation56_spill] sm:$0xff] }
 0x6b1   : > { %v2838_v32 = vmul.f32 %v5877_v21, %v7765_v9  ;;  %v2837_v34 = vmul.f32 %v5877_v21, %v7761_v44  ;;  %v9655_v21 = vld [vmem:[#allocation53_spill] sm:$0xff] }
 0x6b3   : > { %2886 = vmatpush2.xpose.msra.mxu0 %v2843_v1  ;;  %v5879_v13 = vpop.eup %5878  ;;  %v2722_v59 = vpop.xlane.xlu0 %2721  ;;  %v9651_v1 = vld [vmem:[#allocation57_spill] sm:$0xff] }
 0x6b4   : > { %2887 = vmatprep.subr.mxu0 %v2842_v43  ;;  %5886 = vrcp.f32 %v2722_v59  ;;  %v2836_v40 = vmul.f32 %v5879_v13, %v7787_v41  ;;  %v2835_v19 = vmul.f32 %v5879_v13, %v7785_v51  ;;  %v9641_v51 = vld [vmem:[#allocation32_spill] sm:$0xff]  ;;  %v9657_v13 = vld [vmem:[#allocation51_spill] sm:$0xff] }
 0x6b5   : > { %v5881_v22 = vpop.eup %5880 }
 0x6b6   : > { %v2834_v0 = vmul.f32 %v5881_v22, %v7795_v49  ;;  %v2833_v4 = vmul.f32 %v5881_v22, %v7793_v2 }
 0x6b7   : > { %2888 = vmatpush2.xpose.msra.mxu0 %v2841_v63  ;;  %v2719_v48 = vpop.xlane.xlu1 %2718  ;;  %v9653_v63 = vld [vmem:[#allocation55_spill] sm:$0xff] }
 0x6b8   : > { %2889 = vmatprep.subr.mxu0 %v2840_v36  ;;  %5888 = vrcp.f32 %v2719_v48  ;;  %v9654_v36 = vld [vmem:[#allocation54_spill] sm:$0xff] }
 0x6b9   : > { %v5883_v60 = vpop.eup %5882 }
 0x6ba   : > { %v2832_v44 = vmul.f32 %v5883_v60, %v7803_v23  ;;  %v2831_v37 = vmul.f32 %v5883_v60, %v9640_v3 }
 0x6bb   : > { %2890 = vmatpush2.xpose.msra.mxu0 %v2839_v18  ;;  %v2716_v9 = vpop.xlane.xlu0 %2715  ;;  %v9656_v18 = vld [vmem:[#allocation52_spill] sm:$0xff] }
 0x6bc   : > { %2891 = vmatprep.subr.mxu0 %v2838_v32  ;;  %5890 = vrcp.f32 %v2716_v9 }
 0x6bd   : > { %v5885_v38 = vpop.eup %5884 }
 0x6be   : > { %v2830_v42 = vmul.f32 %v5885_v38, %v9641_v51  ;;  %v2829_v24 = vmul.f32 %v5885_v38, %v9642_v61 }
 0x6bf   : > { %2892 = vmatpush2.xpose.msra.mxu0 %v2837_v34  ;;  %v2713_v41 = vpop.xlane.xlu1 %2712 }
 0x6c0   : > { %2893 = vmatprep.subr.mxu0 %v2836_v40  ;;  %5892 = vrcp.f32 %v2713_v41  ;;  %v9658_v40 = vmov 0.0  }
 0x6c1   : > { %v5887_v14 = vpop.eup %5886 }
 0x6c2   : > { %v2828_v2 = vmul.f32 %v5887_v14, %v7819_v27  ;;  %v2827_v35 = vmul.f32 %v5887_v14, %v7817_v39  ;;  %v685_v39 = vpop.f32.mrf.mxu0 }
 0x6c3   : > { %2894 = vmatpush2.xpose.msra.mxu0 %v2835_v19  ;;  %v2710_v49 = vpop.xlane.xlu0 %2709 }
 0x6c4   : > { %2895 = vmatprep.subr.mxu0 %v2834_v0  ;;  %5894 = vrcp.f32 %v2710_v49 }
 0x6c5   : > { %v5889_v45 = vpop.eup %5888 }
 0x6c6   : > { %v2826_v54 = vmul.f32 %v5889_v45, %v7827_v47  ;;  %v2825_v10 = vmul.f32 %v5889_v45, %v7825_v30  ;;  %v687_v30 = vpop.f32.mrf.mxu0 }
 0x6c7   : > { %2896 = vmatpush2.xpose.msra.mxu0 %v2833_v4  ;;  %v2707_v23 = vpop.xlane.xlu1 %2706 }
 0x6c8   : > { %2897 = vmatprep.subr.mxu0 %v2832_v44  ;;  %5896 = vrcp.f32 %v2707_v23  ;;  %v691_v8 = vpop.f32.mrf.mxu0 }
 0x6c9   : > { %v5891_v52 = vpop.eup %5890 }
 0x6ca   : > { %v2824_v7 = vmul.f32 %v5891_v52, %v7833_v20  ;;  %v2823_v27 = vmul.f32 %v5891_v52, %v7831_v33  ;;  %v9646_v20 = vld [vmem:[#allocation45_spill] sm:$0xff]  ;;  %v693_v25 = vpop.f32.mrf.mxu0 }
 0x6cb   : > { %2898 = vmatpush2.xpose.msra.mxu0 %v2831_v37 }
 0x6cc   : > { %2899 = vmatprep.subr.mxu0 %v2830_v42  ;;  %v697_v57 = vpop.f32.mrf.mxu0 }
 0x6cd   : > { %v5893_v50 = vpop.eup %5892 }
 0x6ce   : > { %v2822_v31 = vmul.f32 %v5893_v50, %v9643_v17  ;;  %v2821_v47 = vmul.f32 %v5893_v50, %v9644_v5  ;;  %v699_v32 = vpop.f32.mrf.mxu0 }
 0x6cf   : > { %2900 = vmatpush2.xpose.msra.mxu0 %v2829_v24 }
 0x6d0   : > { %2901 = vmatprep.subr.mxu0 %v2828_v2 }
 0x6d1   : > { %v5895_v6 = vpop.eup %5894 }
 0x6d2   : > { %v2820_v26 = vmul.f32 %v5895_v6, %v9645_v55  ;;  %v2819_v58 = vmul.f32 %v5895_v6, %v9646_v20 }
 0x6d3   : > { %2902 = vmatpush2.xpose.msra.mxu0 %v2827_v35 }
 0x6d4   : > { %2903 = vmatprep.subr.mxu0 %v2826_v54 }
 0x6d5   : > { %v5897_v29 = vpop.eup %5896 }
 0x6d6   : > { %v2818_v53 = vmul.f32 %v5897_v29, %v9647_v12  ;;  %v2817_v16 = vmul.f32 %v5897_v29, %v9648_v15 }
 0x6d7   : > { %2904 = vmatpush2.xpose.msra.mxu0 %v2825_v10 }
 0x6d8   : > { %2905 = vmatprep.subr.mxu0 %v2824_v7 }
 0x6db   : > { %2906 = vmatpush2.xpose.msra.mxu0 %v2823_v27 }
 0x6dc   : > { %2907 = vmatprep.subr.mxu0 %v2822_v31 }
 0x6df   : > { %2908 = vmatpush2.xpose.msra.mxu0 %v2821_v47 }
 0x6e0   : > { %2909 = vmatprep.subr.mxu0 %v2820_v26 }
 0x6e3   : > { %2910 = vmatpush2.xpose.msra.mxu0 %v2819_v58  ;;  %v2986_v33 = vpop.trf.xlu0 }
 0x6e4   : > { %2911 = vmatprep.subr.mxu0 %v2818_v53  ;;  %v3034_v34 = vmul.f32 0.17677669, %v2986_v33 }
 0x6e7   : > { %2912 = vmatpush2.xpose.msra.mxu0 %v2817_v16  ;;  %v2987_v56 = vpop.trf.xlu0 }
 0x6e8   : > { %3186 = vmatprep.subr.mxu0 %v9649_v46  ;;  %v3035_v48 = vmul.f32 0.17677669, %v2987_v56 }
 0x6ea   : > { %2914 = vmatmul.mubr.f32.vlgmr.msra.gmra.mxu0 %v9650_v28 }
 0x6eb   : > { %3187 = vmatpush1.msra.mxu0 %v9651_v1  ;;  %2919 = vmatprep.mubr.f32.mxu0 %v687_v30  ;;  %v2988_v43 = vpop.trf.xlu0 }
 0x6ec   : > { %3188 = vmatprep.subr.mxu0 %v9652_v62  ;;  %v3036_v0 = vmul.f32 0.17677669, %v2988_v43 }
 0x6ed   : > { %3189 = vmatpush1.msra.mxu0 %v9653_v63  ;;  %v3018_v49 = vpop.trf.xlu1 }
 0x6ee   : > { %2920 = vmatmul.mubr.f32.gmra.mxu0 %v685_v39  ;;  %3190 = vmatprep.subr.mxu0 %v9654_v36  ;;  %v3050_v55 = vmul.f32 0.17677669, %v3018_v49 }
 0x6ef   : > { %3191 = vmatpush1.msra.mxu0 %v9655_v21  ;;  %2925 = vmatprep.mubr.f32.mxu0 %v693_v25  ;;  %v2989_v11 = vpop.trf.xlu0  ;;  %v7986_v38 = vpop.f32.mrf.mxu0 }
 0x6f0   : > { %3192 = vmatprep.subr.mxu0 %v9656_v18  ;;  %v3037_v9 = vmul.f32 0.17677669, %v2989_v11  ;;  %9659 = vst [vmem:[#allocation50_spill] sm:$0xff] %v7986_v38 }
 0x6f1   : > { %3193 = vmatpush1.msra.mxu0 %v9657_v13  ;;  %v705_v37 = vpop.f32.mrf.mxu0  ;;  %v3019_v45 = vpop.trf.xlu1 }
 0x6f2   : > { %2926 = vmatmul.mubr.f32.gmra.mxu0 %v691_v8  ;;  %3963 = vmatprep.mubr.f32.mxu1 %v705_v37  ;;  %v3051_v29 = vmul.f32 0.17677669, %v3019_v45 }
 0x6f3   : > { %2931 = vmatprep.mubr.f32.mxu0 %v699_v32  ;;  %v2990_v59 = vpop.trf.xlu0 }
 0x6f4   : > { %v3038_v44 = vmul.f32 0.17677669, %v2990_v59 }
 0x6f5   : > { %v3020_v54 = vpop.trf.xlu1 }
 0x6f6   : > { %2932 = vmatmul.mubr.f32.gmra.mxu0 %v697_v57  ;;  %v3052_v30 = vmul.f32 0.17677669, %v3020_v54 }
 0x6f7   : > { %3226 = vmatprep.mubr.f32.mxu0 %v9658_v40  ;;  %v2991_v22 = vpop.trf.xlu0  ;;  %v8028_v28 = vpop.f32.mrf.mxu0 }
 0x6f8   : > { %v3039_v41 = vmul.f32 0.17677669, %v2991_v22  ;;  %9660 = vst [vmem:[#allocation49_spill] sm:$0xff] %v8028_v28 }
 0x6f9   : > { %v3021_v50 = vpop.trf.xlu1  ;;  %v8032_v43 = vpop.f32.mrf.mxu0 }
 0x6fa   : > { %5398 = vmatmul.mubr.msk.f32.vlgmr.msra.gmra.mxu0 %vm252_vm0, %v3034_v34  ;;  %v3053_v58 = vmul.f32 0.17677669, %v3021_v50  ;;  %9661 = vst [vmem:[#allocation36_spill] sm:$0xff] %v8032_v43 }
 0x6fb   : > { %3232 = vmatprep.mubr.f32.mxu0 %v9658_v40  ;;  %v2992_v19 = vpop.trf.xlu0  ;;  %v8036_v63 = vpop.f32.mrf.mxu0 }
 0x6fc   : > { %v3040_v51 = vmul.f32 0.17677669, %v2992_v19  ;;  %9662 = vst [vmem:[#allocation38_spill] sm:$0xff] %v8036_v63 }
 0x6fd   : > { %v3022_v31 = vpop.trf.xlu1  ;;  %v8040_v11 = vpop.f32.mrf.mxu0 }
 0x6fe   : > { %5399 = vmatmul.mubr.msk.f32.gmra.mxu0 %vm252_vm0, %v3035_v48  ;;  %v3054_v53 = vmul.f32 0.17677669, %v3022_v31  ;;  %9663 = vst [vmem:[#allocation40_spill] sm:$0xff] %v8040_v11 }
 0x6ff   : > { %3238 = vmatprep.mubr.f32.mxu0 %v9658_v40  ;;  %v2993_v60 = vpop.trf.xlu0  ;;  %v8044_v32 = vpop.f32.mrf.mxu0 }
 0x700   : > { %v3041_v14 = vmul.f32 0.17677669, %v2993_v60  ;;  %9664 = vst [vmem:[#allocation39_spill] sm:$0xff] %v8044_v32 }
 0x701   : > { %v3023_v47 = vpop.trf.xlu1  ;;  %v8048_v34 = vpop.f32.mrf.mxu0 }
 0x702   : > { %5400 = vmatmul.mubr.msk.f32.gmra.mxu0 %vm252_vm0, %v3036_v0  ;;  %v3055_v33 = vmul.f32 0.17677669, %v3023_v47  ;;  %9665 = vst [vmem:[#allocation43_spill] sm:$0xff] %v8048_v34 }
 0x703   : > { %3244 = vmatprep.mubr.f32.mxu0 %v9658_v40  ;;  %v2994_v4 = vpop.trf.xlu0  ;;  %v8052_v19 = vpop.f32.mrf.mxu0 }
 0x704   : > { %v3042_v61 = vmul.f32 0.17677669, %v2994_v4  ;;  %9666 = vst [vmem:[#allocation44_spill] sm:$0xff] %v8052_v19 }
 0x705   : > { %v3024_v26 = vpop.trf.xlu1  ;;  %v729_v60 = vpop.f32.mrf.mxu0 }
 0x706   : > { %5401 = vmatmul.mubr.msk.f32.gmra.mxu0 %vm252_vm0, %v3037_v9  ;;  %v3056_v15 = vmul.f32 0.17677669, %v3024_v26 }
 0x707   : > { %3250 = vmatprep.mubr.f32.mxu0 %v9658_v40  ;;  %v2995_v3 = vpop.trf.xlu0  ;;  %v8057_v9 = vpop.f32.mrf.mxu0 }
 0x708   : > { %v3043_v2 = vmul.f32 0.17677669, %v2995_v3  ;;  %9667 = vst [vmem:[#allocation15_spill] sm:$0xff] %v8057_v9 }
 0x709   : > { %v3025_v20 = vpop.trf.xlu1  ;;  %v8059_v4 = vpop.f32.mrf.mxu0 }
 0x70a   : > { %5402 = vmatmul.mubr.msk.f32.gmra.mxu0 %vm252_vm0, %v3038_v44  ;;  %v3057_v56 = vmul.f32 0.17677669, %v3025_v20  ;;  %9668 = vst [vmem:[#allocation17_spill] sm:$0xff] %v8059_v4 }
 0x70b   : > { %3256 = vmatprep.mubr.f32.mxu0 %v9658_v40  ;;  %v2996_v42 = vpop.trf.xlu0  ;;  %v8061_v44 = vpop.f32.mrf.mxu0 }
 0x70c   : > { %v3044_v35 = vmul.f32 0.17677669, %v2996_v42  ;;  %9669 = vst [vmem:[#allocation19_spill] sm:$0xff] %v8061_v44 }
 0x70d   : > { %v3026_v12 = vpop.trf.xlu1 }
 0x70e   : > { %5403 = vmatmul.mubr.msk.f32.gmra.mxu0 %vm252_vm0, %v3039_v41  ;;  %v3058_v46 = vmul.f32 0.17677669, %v3026_v12  ;;  %v8063_v41 = vpop.f32.mrf.mxu0 }
 0x70f   : > { %3262 = vmatprep.mubr.f32.mxu0 %v9658_v40  ;;  %v2997_v24 = vpop.trf.xlu0  ;;  %9670 = vst [vmem:[#allocation16_spill] sm:$0xff] %v8063_v41 }
 0x710   : > { %v3045_v52 = vmul.f32 0.17677669, %v2997_v24 }
 0x711   : > { %v3027_v8 = vpop.trf.xlu1 }
 0x712   : > { %5404 = vmatmul.mubr.msk.f32.gmra.mxu0 %vm252_vm0, %v3040_v51  ;;  %v3059_v1 = vmul.f32 0.17677669, %v3027_v8 }
 0x713   : > { %3268 = vmatprep.mubr.f32.mxu0 %v9658_v40  ;;  %v2998_v23 = vpop.trf.xlu0 }
 0x714   : > { %v3046_v7 = vmul.f32 0.17677669, %v2998_v23 }
 0x715   : > { %v3028_v16 = vpop.trf.xlu1 }
 0x716   : > { %5405 = vmatmul.mubr.msk.f32.gmra.mxu0 %vm252_vm0, %v3041_v14  ;;  %v3060_v57 = vmul.f32 0.17677669, %v3028_v16 }
 0x717   : > { %3274 = vmatprep.mubr.f32.mxu0 %v9658_v40  ;;  %v2999_v10 = vpop.trf.xlu0 }
 0x718   : > { %v3047_v17 = vmul.f32 0.17677669, %v2999_v10 }
 0x719   : > { %v3029_v25 = vpop.trf.xlu1  ;;  %v8065_v3 = vpop.f32.mrf.mxu0 }
 0x71a   : > { %5406 = vmatmul.mubr.msk.f32.gmra.mxu0 %vm252_vm0, %v3042_v61  ;;  %v3061_v36 = vmul.f32 0.17677669, %v3029_v25  ;;  %9671 = vst [vmem:[#allocation21_spill] sm:$0xff] %v8065_v3 }
 0x71b   : > { %3280 = vmatprep.mubr.f32.mxu0 %v9658_v40  ;;  %v3000_v27 = vpop.trf.xlu0  ;;  %v8067_v37 = vpop.f32.mrf.mxu0 }
 0x71c   : > { %v3048_v6 = vmul.f32 0.17677669, %v3000_v27  ;;  %9672 = vst [vmem:[#allocation18_spill] sm:$0xff] %v8067_v37 }
 0x71d   : > { %v3030_v62 = vpop.trf.xlu1 }
 0x71e   : > { %5407 = vmatmul.mubr.msk.f32.gmra.mxu0 %vm252_vm0, %v3043_v2  ;;  %v3062_v18 = vmul.f32 0.17677669, %v3030_v62 }
 0x71f   : > { %3286 = vmatprep.mubr.f32.mxu0 %v9658_v40  ;;  %v3001_v39 = vpop.trf.xlu0 }
 0x720   : > { %v3049_v5 = vmul.f32 0.17677669, %v3001_v39 }
 0x721   : > { %v3031_v21 = vpop.trf.xlu1 }
 0x722   : > { %5408 = vmatmul.mubr.msk.f32.gmra.mxu0 %vm252_vm0, %v3044_v35  ;;  %v3063_v59 = vmul.f32 0.17677669, %v3031_v21 }
 0x723   : > { %3292 = vmatprep.mubr.f32.mxu0 %v9658_v40 }
 0x725   : > { %v3032_v13 = vpop.trf.xlu1 }
 0x726   : > { %5409 = vmatmul.mubr.msk.f32.gmra.mxu0 %vm252_vm0, %v3045_v52  ;;  %v3064_v22 = vmul.f32 0.17677669, %v3032_v13 }
 0x727   : > { %3298 = vmatprep.mubr.f32.mxu0 %v9658_v40 }
 0x729   : > { %v3033_v48 = vpop.trf.xlu1 }
 0x72a   : > { %5410 = vmatmul.mubr.msk.f32.gmra.mxu0 %vm252_vm0, %v3046_v7  ;;  %v3065_v0 = vmul.f32 0.17677669, %v3033_v48 }
 0x72b   : > { %3304 = vmatprep.mubr.f32.mxu0 %v9658_v40 }
 0x72e   : > { %5411 = vmatmul.mubr.msk.f32.gmra.mxu0 %vm252_vm0, %v3047_v17 }
 0x72f   : > { %3310 = vmatprep.mubr.f32.mxu0 %v9658_v40 }
 0x732   : > { %5412 = vmatmul.mubr.msk.f32.gmra.mxu0 %vm252_vm0, %v3048_v6 }
 0x733   : > { %3316 = vmatprep.mubr.f32.mxu0 %v9658_v40 }
 0x736   : > { %5413 = vmatmul.mubr.msk.f32.gmra.mxu0 %vm252_vm0, %v3049_v5 }
 0x737   : > { %3322 = vmatprep.mubr.f32.mxu0 %v9658_v40 }
 0x73a   : > { %5414 = vmatmul.mubr.msk.f32.gmra.mxu0 %vm252_vm0, %v3050_v55 }
 0x73b   : > { %3328 = vmatprep.mubr.f32.mxu0 %v9658_v40 }
 0x73e   : > { %5415 = vmatmul.mubr.msk.f32.gmra.mxu0 %vm252_vm0, %v3051_v29 }
 0x73f   : > { %3334 = vmatprep.mubr.f32.mxu0 %v9658_v40 }
 0x742   : > { %5416 = vmatmul.mubr.msk.f32.gmra.mxu0 %vm252_vm0, %v3052_v30 }
 0x743   : > { %3340 = vmatprep.mubr.f32.mxu0 %v9658_v40 }
 0x746   : > { %5417 = vmatmul.mubr.msk.f32.gmra.mxu0 %vm252_vm0, %v3053_v58 }
 0x747   : > { %3346 = vmatprep.mubr.f32.mxu0 %v9658_v40 }
 0x74a   : > { %5418 = vmatmul.mubr.msk.f32.gmra.mxu0 %vm252_vm0, %v3054_v53 }
 0x74b   : > { %3352 = vmatprep.mubr.f32.mxu0 %v9658_v40 }
 0x74e   : > { %5419 = vmatmul.mubr.msk.f32.gmra.mxu0 %vm252_vm0, %v3055_v33 }
 0x74f   : > { %3358 = vmatprep.mubr.f32.mxu0 %v9658_v40 }
 0x752   : > { %5420 = vmatmul.mubr.msk.f32.gmra.mxu0 %vm252_vm0, %v3056_v15 }
 0x753   : > { %3364 = vmatprep.mubr.f32.mxu0 %v9658_v40 }
 0x756   : > { %5421 = vmatmul.mubr.msk.f32.gmra.mxu0 %vm252_vm0, %v3057_v56 }
 0x757   : > { %3370 = vmatprep.mubr.f32.mxu0 %v9658_v40 }
 0x75a   : > { %5422 = vmatmul.mubr.msk.f32.gmra.mxu0 %vm252_vm0, %v3058_v46 }
 0x75b   : > { %3376 = vmatprep.mubr.f32.mxu0 %v9658_v40 }
 0x75e   : > { %5423 = vmatmul.mubr.msk.f32.gmra.mxu0 %vm252_vm0, %v3059_v1 }
 0x75f   : > { %3382 = vmatprep.mubr.f32.mxu0 %v9658_v40 }
 0x762   : > { %5424 = vmatmul.mubr.msk.f32.gmra.mxu0 %vm252_vm0, %v3060_v57 }
 0x763   : > { %3388 = vmatprep.mubr.f32.mxu0 %v9658_v40 }
 0x766   : > { %5425 = vmatmul.mubr.msk.f32.gmra.mxu0 %vm252_vm0, %v3061_v36 }
 0x767   : > { %3394 = vmatprep.mubr.f32.mxu0 %v9658_v40 }
 0x76a   : > { %5426 = vmatmul.mubr.msk.f32.gmra.mxu0 %vm252_vm0, %v3062_v18 }
 0x76b   : > { %3400 = vmatprep.mubr.f32.mxu0 %v9658_v40 }
 0x76e   : > { %5427 = vmatmul.mubr.msk.f32.gmra.mxu0 %vm252_vm0, %v3063_v59 }
 0x76f   : > { %3406 = vmatprep.mubr.f32.mxu0 %v9658_v40 }
 0x772   : > { %5428 = vmatmul.mubr.msk.f32.gmra.mxu0 %vm252_vm0, %v3064_v22 }
 0x773   : > { %3412 = vmatprep.mubr.f32.mxu0 %v9658_v40 }
 0x776   : > { %5429 = vmatmul.mubr.msk.f32.gmra.mxu0 %vm252_vm0, %v3065_v0 }
 0x777   : > { %5013 = vmatprep.mubr.f32.mxu0 %v729_v60 }
 0x7aa   : > { %v8069_v51 = vpop.f32.mrf.mxu0 }
 0x7ab   : > { %9673 = vst [vmem:[#allocation20_spill] sm:$0xff] %v8069_v51 }
 0x7ac   : > { %v8071_v42 = vpop.f32.mrf.mxu0 }
 0x7ad   : > { %9674 = vst [vmem:[#allocation22_spill] sm:$0xff] %v8071_v42 }
 0x7ae   : > { %v8073_v14 = vpop.f32.mrf.mxu0 }
 0x7af   : > { %9675 = vst [vmem:[#allocation37_spill] sm:$0xff] %v8073_v14 }
 0x7b0   : > { %v8075_v49 = vpop.f32.mrf.mxu0 }
 0x7b1   : > { %9676 = vst [vmem:[#allocation35_spill] sm:$0xff] %v8075_v49 }
 0x7b2   : > { %v8077_v61 = vpop.f32.mrf.mxu0 }
 0x7b3   : > { %9677 = vst [vmem:[#allocation42_spill] sm:$0xff] %v8077_v61 }
 0x7b4   : > { %v8079_v24 = vpop.f32.mrf.mxu0 }
 0x7b5   : > { %9678 = vst [vmem:[#allocation32_spill] sm:$0xff] %v8079_v24 }
 0x7b6   : > { %v8081_v2 = vpop.f32.mrf.mxu0 }
 0x7b7   : > { %9679 = vst [vmem:[#allocation41_spill] sm:$0xff] %v8081_v2 }
 0x7b8   : > { %v8083_v45 = vpop.f32.mrf.mxu0 }
 0x7b9   : > { %9680 = vst [vmem:[#allocation34_spill] sm:$0xff] %v8083_v45 }
 0x7ba   : > { %v8085_v23 = vpop.f32.mrf.mxu0 }
 0x7bb   : > { %9681 = vst [vmem:[#allocation46_spill] sm:$0xff] %v8085_v23 }
 0x7bc   : > { %v8087_v35 = vpop.f32.mrf.mxu0 }
 0x7bd   : > { %9682 = vst [vmem:[#allocation33_spill] sm:$0xff] %v8087_v35  ;;  %v3419_v45 = vmax.f32 %v8085_v23, %v8087_v35 }
 0x7be   : > { %v8089_v54 = vpop.f32.mrf.mxu0 }
 0x7c0   : > { %v8091_v52 = vpop.f32.mrf.mxu0 }
 0x7c1   : > { %v3422_v37 = vmax.f32 %v8089_v54, %v8091_v52 }
 0x7c2   : > { %v8093_v10 = vpop.f32.mrf.mxu0 }
 0x7c3   : > { %9683 = vst [vmem:[#allocation45_spill] sm:$0xff] %v8093_v10 }
 0x7c4   : > { %v8095_v7 = vpop.f32.mrf.mxu0 }
 0x7c5   : > { %9684 = vst [vmem:[#allocation47_spill] sm:$0xff] %v8095_v7  ;;  %v3425_v24 = vmax.f32 %v8093_v10, %v8095_v7 }
 0x7c6   : > { %v8097_v50 = vpop.f32.mrf.mxu0 }
 0x7c8   : > { %v8099_v27 = vpop.f32.mrf.mxu0 }
 0x7ca   : > { %v8101_v17 = vpop.f32.mrf.mxu0 }
 0x7cc   : > { %v8103_v31 = vpop.f32.mrf.mxu0 }
 0x7cd   : > { %9685 = vst [vmem:[#allocation31_spill] sm:$0xff] %v8103_v31  ;;  %v3431_v49 = vmax.f32 %v8101_v17, %v8103_v31 }
 0x7ce   : > { %v8105_v6 = vpop.f32.mrf.mxu0 }
 0x7d0   : > { %v8107_v39 = vpop.f32.mrf.mxu0 }
 0x7d2   : > { %v8109_v5 = vpop.f32.mrf.mxu0 }
 0x7d4   : > { %v8111_v47 = vpop.f32.mrf.mxu0 }
 0x7d5   : > { %v3437_v42 = vmax.f32 %v8109_v5, %v8111_v47 }
 0x7d6   : > { %v8113_v55 = vpop.f32.mrf.mxu0 }
 0x7d8   : > { %v8115_v26 = vpop.f32.mrf.mxu0 }
 0x7da   : > { %v8117_v29 = vpop.f32.mrf.mxu0 }
 0x7dc   : > { %v8119_v30 = vpop.f32.mrf.mxu0 }
 0x7de   : > { %v8121_v20 = vpop.f32.mrf.mxu0 }
 0x7e0   : > { %v8123_v58 = vpop.f32.mrf.mxu0 }
 0x7e2   : > { %v8125_v12 = vpop.f32.mrf.mxu0 }
 0x7e4   : > { %v8127_v53 = vpop.f32.mrf.mxu0 }
 0x7e5   : > { %v3449_v22 = vmax.f32 %v8125_v12, %v8127_v53 }
 0x7e6   : > { %v8129_v33 = vpop.f32.mrf.mxu0 }
 0x7e8   : > { %v8131_v8 = vpop.f32.mrf.mxu0 }
 0x7ea   : > { %v8133_v15 = vpop.f32.mrf.mxu0 }
 0x7ec   : > { %v8135_v16 = vpop.f32.mrf.mxu0 }
 0x7ed   : > { %v3455_v21 = vmax.f32 %v8133_v15, %v8135_v16 }
 0x7ee   : > { %v8137_v56 = vpop.f32.mrf.mxu0 }
 0x7f0   : > { %v8139_v46 = vpop.f32.mrf.mxu0 }
 0x7f1   : > { %v3458_v48 = vmax.f32 %v8137_v56, %v8139_v46 }
 0x7f2   : > { %v8141_v25 = vpop.f32.mrf.mxu0 }
 0x7f4   : > { %v8143_v1 = vpop.f32.mrf.mxu0 }
 0x7f5   : > { %v3461_v62 = vmax.f32 %v8141_v25, %v8143_v1 }
 0x7f6   : > { %v8147_v57 = vpop.f32.mrf.mxu0 }
 0x7f7   : > { %3462 = vmax.xlane.f32.xlu1 %v3461_v62  ;;  %v3443_v62 = vmax.f32 %v8117_v29, %v8119_v30 }
 0x7f8   : > { %v8149_v36 = vpop.f32.mrf.mxu0 }
 0x7f9   : > { %v3464_v18 = vmax.f32 %v8147_v57, %v8149_v36 }
 0x7fa   : > { %v8155_v13 = vpop.f32.mrf.mxu0 }
 0x7fb   : > { %9686 = vst [vmem:[#allocation58_spill] sm:$0xff] %v8155_v13  ;;  %3456 = vmax.xlane.f32.xlu1 %v3455_v21  ;;  %3465 = vmax.xlane.f32.xlu0 %v3464_v18  ;;  %v3452_v21 = vmax.f32 %v8129_v33, %v8131_v8 }
 0x7fc   : > { %v8157_v59 = vpop.f32.mrf.mxu0 }
 0x7fd   : > { %9687 = vst [vmem:[#allocation48_spill] sm:$0xff] %v8157_v59 }
 0x7fe   : > { %v8163_v0 = vpop.f32.mrf.mxu0 }
 0x7ff   : > { %9688 = vst [vmem:[#allocation57_spill] sm:$0xff] %v8163_v0  ;;  %3450 = vmax.xlane.f32.xlu1 %v3449_v22  ;;  %3459 = vmax.xlane.f32.xlu0 %v3458_v48  ;;  %v3446_v22 = vmax.f32 %v8121_v20, %v8123_v58 }
 0x800   : > { %v8165_v60 = vpop.f32.mrf.mxu0 }
 0x801   : > { %9689 = vst [vmem:[#allocation56_spill] sm:$0xff] %v8165_v60 }
 0x802   : > { %v8171_v18 = vpop.f32.mrf.mxu0 }
 0x803   : > { %9690 = vst [vmem:[#allocation55_spill] sm:$0xff] %v8171_v18  ;;  %3444 = vmax.xlane.f32.xlu1 %v3443_v62  ;;  %3453 = vmax.xlane.f32.xlu0 %v3452_v21  ;;  %v3440_v62 = vmax.f32 %v8113_v55, %v8115_v26 }
 0x804   : > { %v8173_v51 = vpop.f32.mrf.mxu0 }
 0x805   : > { %9691 = vst [vmem:[#allocation54_spill] sm:$0xff] %v8173_v51 }
 0x806   : > { %v8179_v48 = vpop.f32.mrf.mxu0 }
 0x807   : > { %9692 = vst [vmem:[#allocation53_spill] sm:$0xff] %v8179_v48  ;;  %3438 = vmax.xlane.f32.xlu1 %v3437_v42  ;;  %3447 = vmax.xlane.f32.xlu0 %v3446_v22  ;;  %v3434_v42 = vmax.f32 %v8105_v6, %v8107_v39 }
 0x808   : > { %v8181_v14 = vpop.f32.mrf.mxu0 }
 0x809   : > { %9693 = vst [vmem:[#allocation52_spill] sm:$0xff] %v8181_v14 }
 0x80a   : > { %v8187_v21 = vpop.f32.mrf.mxu0 }
 0x80b   : > { %3432 = vmax.xlane.f32.xlu1 %v3431_v49  ;;  %3441 = vmax.xlane.f32.xlu0 %v3440_v62  ;;  %v3428_v49 = vmax.f32 %v8097_v50, %v8099_v27 }
 0x80c   : > { %v8189_v61 = vpop.f32.mrf.mxu0 }
 0x80d   : > { %9694 = vst [vmem:[#allocation51_spill] sm:$0xff] %v8189_v61 }
 0x80e   : > { %v8195_v22 = vpop.f32.mrf.mxu0 }
 0x80f   : > { %3426 = vmax.xlane.f32.xlu1 %v3425_v24  ;;  %3435 = vmax.xlane.f32.xlu0 %v3434_v42 }
 0x810   : > { %v8197_v2 = vpop.f32.mrf.mxu0 }
 0x811   : > { %9695 = vst [vmem:[#allocation67_spill] sm:$0xff] %v8197_v2 }
 0x812   : > { %v8203_v62 = vpop.f32.mrf.mxu0 }
 0x813   : > { %3420 = vmax.xlane.f32.xlu1 %v3419_v45  ;;  %3429 = vmax.xlane.f32.xlu0 %v3428_v49 }
 0x814   : > { %v8205_v3 = vpop.f32.mrf.mxu0 }
 0x816   : > { %v8209_v44 = vpop.f32.mrf.mxu0 }
 0x817   : > { %3423 = vmax.xlane.f32.xlu0 %v3422_v37 }
 0x818   : > { %v8211_v24 = vpop.f32.mrf.mxu0 }
 0x81a   : > { %v8213_v42 = vpop.f32.mrf.mxu0 }
 0x81c   : > { %v8215_v41 = vpop.f32.mrf.mxu0 }
 0x81e   : > { %v8217_v9 = vpop.f32.mrf.mxu0 }
 0x820   : > { %v8219_v4 = vpop.f32.mrf.mxu0 }
 0x822   : > { %v8221_v45 = vpop.f32.mrf.mxu0 }
 0x824   : > { %v8223_v49 = vpop.f32.mrf.mxu0 }
 0x825   : > { %v3497_v10 = vmax.f32 %v8221_v45, %v8223_v49 }
 0x826   : > { %v8225_v19 = vpop.f32.mrf.mxu0 }
 0x828   : > { %v8227_v40 = vpop.f32.mrf.mxu0 }
 0x82a   : > { %v8229_v32 = vpop.f32.mrf.mxu0 }
 0x82c   : > { %v8231_v37 = vpop.f32.mrf.mxu0 }
 0x82d   : > { %9696 = vst [vmem:[#allocation68_spill] sm:$0xff] %v8231_v37  ;;  %v3503_v23 = vmax.f32 %v8229_v32, %v8231_v37  ;;  %v3494_v37 = vmax.f32 %v8217_v9, %v8219_v4 }
 0x82e   : > { %v8233_v34 = vpop.f32.mrf.mxu0 }
 0x830   : > { %v8235_v63 = vpop.f32.mrf.mxu0 }
 0x831   : > { %v3506_v31 = vmax.f32 %v8233_v34, %v8235_v63 }
 0x832   : > { %v8237_v11 = vpop.f32.mrf.mxu0 }
 0x834   : > { %v8239_v28 = vpop.f32.mrf.mxu0 }
 0x835   : > { %v3509_v43 = vmax.f32 %v8237_v11, %v8239_v28 }
 0x836   : > { %v8243_v38 = vpop.f32.mrf.mxu0 }
 0x837   : > { %3510 = vmax.xlane.f32.xlu1 %v3509_v43  ;;  %v3500_v43 = vmax.f32 %v8225_v19, %v8227_v40 }
 0x838   : > { %v8245_v35 = vpop.f32.mrf.mxu0 }
 0x839   : > { %v3512_v7 = vmax.f32 %v8243_v38, %v8245_v35 }
 0x83b   : > { %3504 = vmax.xlane.f32.xlu1 %v3503_v23  ;;  %3513 = vmax.xlane.f32.xlu0 %v3512_v7  ;;  %v3491_v23 = vmax.f32 %v8213_v42, %v8215_v41  ;;  %v3488_v7 = vmax.f32 %v8209_v44, %v8211_v24 }
 0x83f   : > { %3498 = vmax.xlane.f32.xlu1 %v3497_v10  ;;  %3507 = vmax.xlane.f32.xlu0 %v3506_v31  ;;  %v3485_v10 = vmax.f32 %v8203_v62, %v8205_v3  ;;  %v3482_v31 = vmax.f32 %v8195_v22, %v8197_v2 }
 0x843   : > { %3501 = vmax.xlane.f32.xlu0 %v3500_v43  ;;  %v3479_v43 = vmax.f32 %v8187_v21, %v8189_v61 }
 0x847   : > { %3495 = vmax.xlane.f32.xlu0 %v3494_v37  ;;  %v3476_v37 = vmax.f32 %v8179_v48, %v8181_v14 }
 0x84b   : > { %3492 = vmax.xlane.f32.xlu0 %v3491_v23  ;;  %v3473_v23 = vmax.f32 %v8171_v18, %v8173_v51 }
 0x84f   : > { %3489 = vmax.xlane.f32.xlu0 %v3488_v7  ;;  %v3470_v7 = vmax.f32 %v8163_v0, %v8165_v60 }
 0x853   : > { %3486 = vmax.xlane.f32.xlu0 %v3485_v10  ;;  %v3467_v10 = vmax.f32 %v8155_v13, %v8157_v59 }
 0x857   : > { %3483 = vmax.xlane.f32.xlu0 %v3482_v31 }
 0x85b   : > { %3480 = vmax.xlane.f32.xlu0 %v3479_v43 }
 0x85f   : > { %3477 = vmax.xlane.f32.xlu0 %v3476_v37 }
 0x863   : > { %3474 = vmax.xlane.f32.xlu0 %v3473_v23 }
 0x867   : > { %3471 = vmax.xlane.f32.xlu0 %v3470_v7 }
 0x86b   : > { %3468 = vmax.xlane.f32.xlu0 %v3467_v10 }
 0x880   : > { %v3463_v31 = vpop.xlane.xlu1 %3462 }
 0x881   : > { %v3543_v43 = vsub.f32 %v8141_v25, %v3463_v31  ;;  %v3544_v37 = vsub.f32 %v8143_v1, %v3463_v31 }
 0x883   : > { %v3635_v60 = vmul.f32 1.442695, %v3543_v43  ;;  %v3637_v0 = vmul.f32 1.442695, %v3544_v37 }
 0x884   : > { %v3466_v2 = vpop.xlane.xlu0 %3465  ;;  %v3457_v61 = vpop.xlane.xlu1 %3456 }
 0x885   : > { %v3545_v14 = vsub.f32 %v8147_v57, %v3466_v2  ;;  %v3546_v51 = vsub.f32 %v8149_v36, %v3466_v2  ;;  %v3539_v57 = vsub.f32 %v8133_v15, %v3457_v61  ;;  %v3540_v2 = vsub.f32 %v8135_v16, %v3457_v61 }
 0x887   : > { %v3639_v23 = vmul.f32 1.442695, %v3545_v14  ;;  %v3641_v18 = vmul.f32 1.442695, %v3546_v51  ;;  %v3627_v1 = vmul.f32 1.442695, %v3539_v57 }
 0x888   : > { %v3460_v48 = vpop.xlane.xlu0 %3459  ;;  %v3451_v59 = vpop.xlane.xlu1 %3450  ;;  %v3629_v31 = vmul.f32 1.442695, %v3540_v2 }
 0x889   : > { %v3541_v7 = vsub.f32 %v8137_v56, %v3460_v48  ;;  %v3542_v10 = vsub.f32 %v8139_v46, %v3460_v48  ;;  %5898 = vpow2.f32 %v3639_v23 }
 0x88a   : > { %5900 = vpow2.f32 %v3641_v18  ;;  %v3535_v18 = vsub.f32 %v8125_v12, %v3451_v59 }
 0x88b   : > { %5902 = vpow2.f32 %v3635_v60  ;;  %v3631_v13 = vmul.f32 1.442695, %v3541_v7  ;;  %v3633_v14 = vmul.f32 1.442695, %v3542_v10  ;;  %v3536_v60 = vsub.f32 %v8127_v53, %v3451_v59 }
 0x88c   : > { %v3454_v25 = vpop.xlane.xlu0 %3453  ;;  %5904 = vpow2.f32 %v3637_v0  ;;  %v3445_v36 = vpop.xlane.xlu1 %3444  ;;  %v3619_v48 = vmul.f32 1.442695, %v3535_v18 }
 0x88d   : > { %5906 = vpow2.f32 %v3631_v13  ;;  %v3537_v56 = vsub.f32 %v8129_v33, %v3454_v25  ;;  %v3538_v46 = vsub.f32 %v8131_v8, %v3454_v25  ;;  %v3531_v15 = vsub.f32 %v8117_v29, %v3445_v36 }
 0x88e   : > { %5908 = vpow2.f32 %v3633_v14  ;;  %v3532_v61 = vsub.f32 %v8119_v30, %v3445_v36  ;;  %v3621_v43 = vmul.f32 1.442695, %v3536_v60 }
 0x88f   : > { %5910 = vpow2.f32 %v3627_v1  ;;  %v3623_v16 = vmul.f32 1.442695, %v3537_v56  ;;  %v3625_v13 = vmul.f32 1.442695, %v3538_v46  ;;  %v3611_v37 = vmul.f32 1.442695, %v3531_v15 }
 0x890   : > { %v3448_v51 = vpop.xlane.xlu0 %3447  ;;  %5912 = vpow2.f32 %v3629_v31  ;;  %v3613_v12 = vmul.f32 1.442695, %v3532_v61  ;;  %v3439_v2 = vpop.xlane.xlu1 %3438 }
 0x891   : > { %5914 = vpow2.f32 %v3623_v16  ;;  %v3533_v29 = vsub.f32 %v8121_v20, %v3448_v51  ;;  %v3534_v30 = vsub.f32 %v8123_v58, %v3448_v51 }
 0x892   : > { %5916 = vpow2.f32 %v3625_v13 }
 0x893   : > { %5918 = vpow2.f32 %v3619_v48 }
 0x894   : > { %v8290_v0 = vpop.xlane.xlu0 %3441  ;;  %5920 = vpow2.f32 %v3621_v43  ;;  %v3433_v61 = vpop.xlane.xlu1 %3432 }
 0x895   : > { %5922 = vpow2.f32 %v3611_v37  ;;  %v3530_v16 = vsub.f32 %v8115_v26, %v8290_v0 }
 0x896   : > { %v8293_v33 = vpop.eup %5898  ;;  %5924 = vpow2.f32 %v3613_v12 }
 0x897   : > { %v8295_v23 = vpop.eup %5900  ;;  %v3609_v12 = vmul.f32 1.442695, %v3530_v16 }
 0x898   : > { %v3436_v8 = vpop.xlane.xlu0 %3435  ;;  %v8299_v59 = vpop.eup %5902  ;;  %v3752_v10 = vadd.f32 %v8295_v23, %v8293_v33 }
 0x899   : > { %v3525_v53 = vsub.f32 %v8105_v6, %v3436_v8  ;;  %v3526_v7 = vsub.f32 %v8107_v39, %v3436_v8  ;;  %v8305_v25 = vpop.eup %5904  ;;  %v3615_v6 = vmul.f32 1.442695, %v3533_v29  ;;  %v3617_v39 = vmul.f32 1.442695, %v3534_v30  ;;  %v3427_v30 = vpop.xlane.xlu1 %3426 }
 0x89a   : > { %3753 = vadd.xlane.f32.xlu1 %v3752_v10  ;;  %v8308_v36 = vpop.eup %5906  ;;  %v3749_v51 = vadd.f32 %v8305_v25, %v8299_v59  ;;  %v3528_v8 = vsub.f32 %v8111_v47, %v3439_v2  ;;  %v9697_v10 = vld [vmem:[#allocation31_spill] sm:$0xff] }
 0x89b   : > { %v3599_v57 = vmul.f32 1.442695, %v3525_v53  ;;  %v3601_v14 = vmul.f32 1.442695, %v3526_v7  ;;  %v8313_v56 = vpop.eup %5908  ;;  %v3523_v53 = vsub.f32 %v8101_v17, %v3433_v61 }
 0x89c   : > { %v3430_v20 = vpop.xlane.xlu0 %3429  ;;  %v3746_v13 = vadd.f32 %v8313_v56, %v8308_v36 }
 0x89d   : > { %v3521_v1 = vsub.f32 %v8097_v50, %v3430_v20  ;;  %v3522_v58 = vsub.f32 %v8099_v27, %v3430_v20  ;;  %5926 = vpow2.f32 %v3599_v57  ;;  %v3529_v50 = vsub.f32 %v8113_v55, %v8290_v0  ;;  %v8319_v27 = vpop.eup %5910 }
 0x89e   : > { %5928 = vpow2.f32 %v3601_v14  ;;  %3750 = vadd.xlane.f32.xlu1 %v3749_v51  ;;  %v8325_v48 = vpop.eup %5912  ;;  %v3524_v57 = vsub.f32 %v9697_v10, %v3433_v61  ;;  %v3595_v17 = vmul.f32 1.442695, %v3523_v53 }
 0x89f   : > { %v3591_v31 = vmul.f32 1.442695, %v3521_v1  ;;  %v3593_v46 = vmul.f32 1.442695, %v3522_v58  ;;  %5930 = vpow2.f32 %v3615_v6  ;;  %v8328_v55 = vpop.eup %5914  ;;  %v3743_v26 = vadd.f32 %v8325_v48, %v8319_v27  ;;  %v9698_v58 = vld [vmem:[#allocation45_spill] sm:$0xff] }
 0x8a0   : > { %v3424_v18 = vpop.xlane.xlu0 %3423  ;;  %5932 = vpow2.f32 %v3617_v39  ;;  %v8333_v0 = vpop.eup %5916  ;;  %v3597_v39 = vmul.f32 1.442695, %v3524_v57  ;;  %v3519_v51 = vsub.f32 %v9698_v58, %v3427_v30 }
 0x8a1   : > { %v3517_v60 = vsub.f32 %v8089_v54, %v3424_v18  ;;  %v3518_v15 = vsub.f32 %v8091_v52, %v3424_v18  ;;  %5934 = vpow2.f32 %v3591_v31  ;;  %v3527_v54 = vsub.f32 %v8109_v5, %v3439_v2  ;;  %v8335_v29 = vpop.eup %5918 }
 0x8a2   : > { %5936 = vpow2.f32 %v3593_v46  ;;  %3747 = vadd.xlane.f32.xlu1 %v3746_v13  ;;  %v3607_v52 = vmul.f32 1.442695, %v3529_v50  ;;  %v8338_v5 = vpop.eup %5920  ;;  %v3605_v2 = vmul.f32 1.442695, %v3528_v8  ;;  %v3740_v14 = vadd.f32 %v8333_v0, %v8328_v55  ;;  %v9699_v46 = vld [vmem:[#allocation47_spill] sm:$0xff]  ;;  %v3421_v50 = vpop.xlane.xlu1 %3420 }
 0x8a3   : > { %v3583_v43 = vmul.f32 1.442695, %v3517_v60  ;;  %v3585_v37 = vmul.f32 1.442695, %v3518_v15  ;;  %v3603_v7 = vmul.f32 1.442695, %v3527_v54  ;;  %v8341_v47 = vpop.eup %5922  ;;  %v3520_v18 = vsub.f32 %v9699_v46, %v3427_v30 }
 0x8a4   : > { %v8345_v20 = vpop.eup %5924  ;;  %v3737_v60 = vadd.f32 %v8338_v5, %v8335_v29 }
 0x8a5   : > { %5938 = vpow2.f32 %v3583_v43  ;;  %v3587_v43 = vmul.f32 1.442695, %v3519_v51  ;;  %v3589_v8 = vmul.f32 1.442695, %v3520_v18 }
 0x8a6   : > { %5940 = vpow2.f32 %v3585_v37  ;;  %3744 = vadd.xlane.f32.xlu1 %v3743_v26  ;;  %v9700_v37 = vld [vmem:[#allocation46_spill] sm:$0xff] }
 0x8a7   : > { %5942 = vpow2.f32 %v3607_v52  ;;  %v3515_v54 = vsub.f32 %v9700_v37, %v3421_v50 }
 0x8a8   : > { %5944 = vpow2.f32 %v3609_v12  ;;  %v9702_v12 = vld [vmem:[#allocation33_spill] sm:$0xff] }
 0x8a9   : > { %5946 = vpow2.f32 %v3603_v7  ;;  %v3516_v26 = vsub.f32 %v9702_v12, %v3421_v50  ;;  %v3579_v57 = vmul.f32 1.442695, %v3515_v54 }
 0x8aa   : > { %v8347_v6 = vpop.eup %5926  ;;  %3741 = vadd.xlane.f32.xlu1 %v3740_v14  ;;  %5948 = vpow2.f32 %v3605_v2 }
 0x8ab   : > { %v8349_v1 = vpop.eup %5928  ;;  %5950 = vpow2.f32 %v3595_v17  ;;  %v3581_v14 = vmul.f32 1.442695, %v3516_v26  ;;  %v3731_v17 = vadd.f32 %v8345_v20, %v8341_v47 }
 0x8ac   : > { %v8352_v31 = vpop.eup %5930  ;;  %v3722_v15 = vadd.f32 %v8349_v1, %v8347_v6  ;;  %5952 = vpow2.f32 %v3597_v39 }
 0x8ad   : > { %v8359_v61 = vpop.eup %5932  ;;  %5954 = vpow2.f32 %v3587_v43 }
 0x8ae   : > { %v8361_v16 = vpop.eup %5934  ;;  %3738 = vadd.xlane.f32.xlu1 %v3737_v60  ;;  %3723 = vadd.xlane.f32.xlu0 %v3722_v15  ;;  %v3734_v53 = vadd.f32 %v8359_v61, %v8352_v31  ;;  %5956 = vpow2.f32 %v3589_v8 }
 0x8af   : > { %v8363_v13 = vpop.eup %5936  ;;  %5958 = vpow2.f32 %v3579_v57 }
 0x8b0   : > { %v3716_v30 = vadd.f32 %v8363_v13, %v8361_v16  ;;  %5960 = vpow2.f32 %v3581_v14  ;;  %v9703_v14 = vld [vmem:[#allocation68_spill] sm:$0xff] }
 0x8b2   : > { %v8366_v52 = vpop.eup %5938  ;;  %3735 = vadd.xlane.f32.xlu1 %v3734_v53  ;;  %3717 = vadd.xlane.f32.xlu0 %v3716_v30 }
 0x8b3   : > { %9701 = vst [vmem:[#allocation31_spill] sm:$0xff] %v8366_v52  ;;  %v8373_v7 = vpop.eup %5940 }
 0x8b4   : > { %v3710_v10 = vadd.f32 %v8373_v7, %v8366_v52  ;;  %v8377_v2 = vpop.eup %5942 }
 0x8b5   : > { %v8381_v39 = vpop.eup %5944 }
 0x8b6   : > { %3732 = vadd.xlane.f32.xlu1 %v3731_v17  ;;  %3711 = vadd.xlane.f32.xlu0 %v3710_v10  ;;  %v8383_v58 = vpop.eup %5946  ;;  %v3728_v51 = vadd.f32 %v8381_v39, %v8377_v2 }
 0x8b7   : > { %v8387_v46 = vpop.eup %5948 }
 0x8b8   : > { %v8389_v18 = vpop.eup %5950  ;;  %v3725_v60 = vadd.f32 %v8387_v46, %v8383_v58 }
 0x8b9   : > { %v8391_v50 = vpop.eup %5952 }
 0x8ba   : > { %3729 = vadd.xlane.f32.xlu1 %v3728_v51  ;;  %v8397_v54 = vpop.eup %5954  ;;  %v3719_v8 = vadd.f32 %v8391_v50, %v8389_v18 }
 0x8bb   : > { %v8401_v12 = vpop.eup %5956 }
 0x8be   : > { %3726 = vadd.xlane.f32.xlu1 %v3725_v60  ;;  %v3713_v60 = vadd.f32 %v8401_v12, %v8397_v54 }
 0x8c0   : > { %v3511_v15 = vpop.xlane.xlu1 %3510 }
 0x8c1   : > { %v3575_v43 = vsub.f32 %v8237_v11, %v3511_v15  ;;  %v3576_v37 = vsub.f32 %v8239_v28, %v3511_v15  ;;  %v8406_v28 = vpop.eup %5958 }
 0x8c2   : > { %3720 = vadd.xlane.f32.xlu1 %v3719_v8  ;;  %v8411_v15 = vpop.eup %5960 }
 0x8c3   : > { %v3699_v26 = vmul.f32 1.442695, %v3575_v43  ;;  %v3701_v53 = vmul.f32 1.442695, %v3576_v37 }
 0x8c4   : > { %v3505_v30 = vpop.xlane.xlu1 %3504  ;;  %v3514_v10 = vpop.xlane.xlu0 %3513 }
 0x8c5   : > { %5962 = vpow2.f32 %v3699_v26  ;;  %v3571_v57 = vsub.f32 %v8229_v32, %v3505_v30  ;;  %v3572_v17 = vsub.f32 %v9703_v14, %v3505_v30  ;;  %v3577_v11 = vsub.f32 %v8243_v38, %v3514_v10 }
 0x8c6   : > { %5964 = vpow2.f32 %v3701_v53  ;;  %v3578_v51 = vsub.f32 %v8245_v35, %v3514_v10  ;;  %3714 = vadd.xlane.f32.xlu1 %v3713_v60  ;;  %v3707_v10 = vadd.f32 %v8411_v15, %v8406_v28 }
 0x8c7   : > { %v3691_v43 = vmul.f32 1.442695, %v3571_v57  ;;  %v3693_v37 = vmul.f32 1.442695, %v3572_v17  ;;  %v3703_v8 = vmul.f32 1.442695, %v3577_v11 }
 0x8c8   : > { %v3705_v26 = vmul.f32 1.442695, %v3578_v51  ;;  %v3499_v32 = vpop.xlane.xlu1 %3498  ;;  %v3508_v52 = vpop.xlane.xlu0 %3507 }
 0x8c9   : > { %5966 = vpow2.f32 %v3691_v43  ;;  %v3567_v38 = vsub.f32 %v8221_v45, %v3499_v32  ;;  %v3568_v30 = vsub.f32 %v8223_v49, %v3499_v32  ;;  %v3573_v53 = vsub.f32 %v8233_v34, %v3508_v52 }
 0x8ca   : > { %5968 = vpow2.f32 %v3693_v37  ;;  %v3574_v35 = vsub.f32 %v8235_v63, %v3508_v52  ;;  %3708 = vadd.xlane.f32.xlu1 %v3707_v10 }
 0x8cb   : > { %5970 = vpow2.f32 %v3703_v8  ;;  %v3683_v57 = vmul.f32 1.442695, %v3567_v38  ;;  %v3685_v14 = vmul.f32 1.442695, %v3568_v30  ;;  %v3695_v17 = vmul.f32 1.442695, %v3573_v53 }
 0x8cc   : > { %5972 = vpow2.f32 %v3705_v26  ;;  %v3697_v11 = vmul.f32 1.442695, %v3574_v35  ;;  %v3502_v51 = vpop.xlane.xlu0 %3501 }
 0x8cd   : > { %5974 = vpow2.f32 %v3683_v57  ;;  %v3569_v45 = vsub.f32 %v8225_v19, %v3502_v51  ;;  %v3570_v49 = vsub.f32 %v8227_v40, %v3502_v51 }
 0x8ce   : > { %5976 = vpow2.f32 %v3685_v14 }
 0x8cf   : > { %5978 = vpow2.f32 %v3695_v17  ;;  %v3687_v34 = vmul.f32 1.442695, %v3569_v45  ;;  %v3689_v63 = vmul.f32 1.442695, %v3570_v49 }
 0x8d0   : > { %5980 = vpow2.f32 %v3697_v11  ;;  %v3496_v52 = vpop.xlane.xlu0 %3495 }
 0x8d1   : > { %5982 = vpow2.f32 %v3687_v34  ;;  %v3565_v60 = vsub.f32 %v8217_v9, %v3496_v52  ;;  %v3566_v43 = vsub.f32 %v8219_v4, %v3496_v52 }
 0x8d2   : > { %v8423_v37 = vpop.eup %5962  ;;  %5984 = vpow2.f32 %v3689_v63 }
 0x8d3   : > { %v8425_v8 = vpop.eup %5964  ;;  %v3679_v26 = vmul.f32 1.442695, %v3565_v60  ;;  %v3681_v19 = vmul.f32 1.442695, %v3566_v43 }
 0x8d4   : > { %v3493_v32 = vpop.xlane.xlu0 %3492  ;;  %v3797_v40 = vadd.f32 %v8425_v8, %v8423_v37 }
 0x8d5   : > { %5986 = vpow2.f32 %v3679_v26  ;;  %v3563_v38 = vsub.f32 %v8213_v42, %v3493_v32  ;;  %v3564_v30 = vsub.f32 %v8215_v41, %v3493_v32 }
 0x8d6   : > { %v8431_v53 = vpop.eup %5966  ;;  %5988 = vpow2.f32 %v3681_v19  ;;  %3798 = vadd.xlane.f32.xlu1 %v3797_v40 }
 0x8d7   : > { %v8433_v9 = vpop.eup %5968  ;;  %v3675_v4 = vmul.f32 1.442695, %v3563_v38  ;;  %v3677_v35 = vmul.f32 1.442695, %v3564_v30 }
 0x8d8   : > { %v8435_v10 = vpop.eup %5970  ;;  %v3490_v57 = vpop.xlane.xlu0 %3489  ;;  %v3791_v14 = vadd.f32 %v8433_v9, %v8431_v53 }
 0x8d9   : > { %v8439_v17 = vpop.eup %5972  ;;  %5990 = vpow2.f32 %v3675_v4  ;;  %v3561_v42 = vsub.f32 %v8209_v44, %v3490_v57  ;;  %v3562_v41 = vsub.f32 %v8211_v24, %v3490_v57 }
 0x8da   : > { %v8443_v11 = vpop.eup %5974  ;;  %5992 = vpow2.f32 %v3677_v35  ;;  %3792 = vadd.xlane.f32.xlu1 %v3791_v14  ;;  %v3800_v51 = vadd.f32 %v8439_v17, %v8435_v10 }
 0x8db   : > { %v8447_v45 = vpop.eup %5976  ;;  %v3671_v49 = vmul.f32 1.442695, %v3561_v42  ;;  %v3673_v34 = vmul.f32 1.442695, %v3562_v41 }
 0x8dc   : > { %v8449_v63 = vpop.eup %5978  ;;  %3801 = vadd.xlane.f32.xlu0 %v3800_v51  ;;  %v3487_v52 = vpop.xlane.xlu0 %3486  ;;  %v3785_v44 = vadd.f32 %v8447_v45, %v8443_v11 }
 0x8dd   : > { %v8453_v60 = vpop.eup %5980  ;;  %5994 = vpow2.f32 %v3671_v49  ;;  %v3559_v24 = vsub.f32 %v8203_v62, %v3487_v52  ;;  %v3560_v43 = vsub.f32 %v8205_v3, %v3487_v52  ;;  %v9704_v3 = vld [vmem:[#allocation67_spill] sm:$0xff] }
 0x8de   : > { %v8457_v26 = vpop.eup %5982  ;;  %5996 = vpow2.f32 %v3673_v34  ;;  %3786 = vadd.xlane.f32.xlu1 %v3785_v44  ;;  %v3794_v19 = vadd.f32 %v8453_v60, %v8449_v63  ;;  %v9705_v52 = vld [vmem:[#allocation51_spill] sm:$0xff] }
 0x8df   : > { %v8461_v32 = vpop.eup %5984  ;;  %v3667_v40 = vmul.f32 1.442695, %v3559_v24  ;;  %v3669_v38 = vmul.f32 1.442695, %v3560_v43 }
 0x8e0   : > { %3795 = vadd.xlane.f32.xlu0 %v3794_v19  ;;  %v3484_v30 = vpop.xlane.xlu0 %3483  ;;  %v3788_v4 = vadd.f32 %v8461_v32, %v8457_v26 }
 0x8e1   : > { %5998 = vpow2.f32 %v3667_v40  ;;  %v3557_v62 = vsub.f32 %v8195_v22, %v3484_v30  ;;  %v3558_v35 = vsub.f32 %v9704_v3, %v3484_v30  ;;  %v9706_v30 = vld [vmem:[#allocation53_spill] sm:$0xff] }
 0x8e2   : > { %v8467_v57 = vpop.eup %5986  ;;  %6000 = vpow2.f32 %v3669_v38 }
 0x8e3   : > { %v8469_v14 = vpop.eup %5988  ;;  %v3663_v42 = vmul.f32 1.442695, %v3557_v62  ;;  %v3665_v41 = vmul.f32 1.442695, %v3558_v35  ;;  %v9707_v62 = vld [vmem:[#allocation52_spill] sm:$0xff] }
 0x8e4   : > { %3789 = vadd.xlane.f32.xlu0 %v3788_v4  ;;  %v3481_v51 = vpop.xlane.xlu0 %3480  ;;  %v3782_v49 = vadd.f32 %v8469_v14, %v8467_v57 }
 0x8e5   : > { %6002 = vpow2.f32 %v3663_v42  ;;  %v3555_v34 = vsub.f32 %v8187_v21, %v3481_v51  ;;  %v3556_v44 = vsub.f32 %v9705_v52, %v3481_v51 }
 0x8e6   : > { %v8475_v22 = vpop.eup %5990  ;;  %6004 = vpow2.f32 %v3665_v41 }
 0x8e7   : > { %v8477_v24 = vpop.eup %5992  ;;  %v3659_v43 = vmul.f32 1.442695, %v3555_v34  ;;  %v3661_v19 = vmul.f32 1.442695, %v3556_v44  ;;  %v9710_v34 = vld [vmem:[#allocation55_spill] sm:$0xff]  ;;  %v9711_v44 = vld [vmem:[#allocation54_spill] sm:$0xff] }
 0x8e8   : > { %3783 = vadd.xlane.f32.xlu0 %v3782_v49  ;;  %v3478_v40 = vpop.xlane.xlu0 %3477  ;;  %v3779_v38 = vadd.f32 %v8477_v24, %v8475_v22 }
 0x8e9   : > { %6006 = vpow2.f32 %v3659_v43  ;;  %v3553_v4 = vsub.f32 %v9706_v30, %v3478_v40  ;;  %v3554_v3 = vsub.f32 %v9707_v62, %v3478_v40 }
 0x8ea   : > { %v8483_v21 = vpop.eup %5994  ;;  %6008 = vpow2.f32 %v3661_v19  ;;  %3780 = vadd.xlane.f32.xlu1 %v3779_v38 }
 0x8eb   : > { %9708 = vst [vmem:[#allocation45_spill] sm:$0xff] %v8483_v21  ;;  %v8485_v35 = vpop.eup %5996  ;;  %v3655_v42 = vmul.f32 1.442695, %v3553_v4  ;;  %v3657_v41 = vmul.f32 1.442695, %v3554_v3  ;;  %v9714_v3 = vld [vmem:[#allocation57_spill] sm:$0xff] }
 0x8ec   : > { %9709 = vst [vmem:[#allocation47_spill] sm:$0xff] %v8485_v35  ;;  %v3475_v51 = vpop.xlane.xlu0 %3474  ;;  %v3776_v49 = vadd.f32 %v8485_v35, %v8483_v21 }
 0x8ed   : > { %6010 = vpow2.f32 %v3655_v42  ;;  %v3551_v52 = vsub.f32 %v9710_v34, %v3475_v51  ;;  %v3552_v43 = vsub.f32 %v9711_v44, %v3475_v51  ;;  %v9715_v42 = vld [vmem:[#allocation56_spill] sm:$0xff] }
 0x8ee   : > { %v8491_v30 = vpop.eup %5998  ;;  %6012 = vpow2.f32 %v3657_v41  ;;  %3777 = vadd.xlane.f32.xlu0 %v3776_v49 }
 0x8ef   : > { %9712 = vst [vmem:[#allocation46_spill] sm:$0xff] %v8491_v30  ;;  %v8493_v40 = vpop.eup %6000  ;;  %v3651_v19 = vmul.f32 1.442695, %v3551_v52  ;;  %v3653_v38 = vmul.f32 1.442695, %v3552_v43  ;;  %v9716_v43 = vld [vmem:[#allocation58_spill] sm:$0xff] }
 0x8f0   : > { %9713 = vst [vmem:[#allocation33_spill] sm:$0xff] %v8493_v40  ;;  %v3472_v62 = vpop.xlane.xlu0 %3471  ;;  %v3773_v4 = vadd.f32 %v8493_v40, %v8491_v30 }
 0x8f1   : > { %6014 = vpow2.f32 %v3651_v19  ;;  %v3549_v21 = vsub.f32 %v9714_v3, %v3472_v62  ;;  %v3550_v35 = vsub.f32 %v9715_v42, %v3472_v62  ;;  %v9717_v19 = vld [vmem:[#allocation48_spill] sm:$0xff] }
 0x8f2   : > { %v8499_v34 = vpop.eup %6002  ;;  %6016 = vpow2.f32 %v3653_v38  ;;  %3774 = vadd.xlane.f32.xlu1 %v3773_v4 }
 0x8f3   : > { %v8501_v51 = vpop.eup %6004  ;;  %v3647_v41 = vmul.f32 1.442695, %v3549_v21  ;;  %v3649_v49 = vmul.f32 1.442695, %v3550_v35 }
 0x8f4   : > { %v3469_v44 = vpop.xlane.xlu0 %3468  ;;  %v3770_v52 = vadd.f32 %v8501_v51, %v8499_v34 }
 0x8f5   : > { %6018 = vpow2.f32 %v3647_v41  ;;  %v3547_v30 = vsub.f32 %v9716_v43, %v3469_v44  ;;  %v3548_v40 = vsub.f32 %v9717_v19, %v3469_v44 }
 0x8f6   : > { %v8507_v3 = vpop.eup %6006  ;;  %6020 = vpow2.f32 %v3649_v49  ;;  %3771 = vadd.xlane.f32.xlu0 %v3770_v52 }
 0x8f7   : > { %v8509_v62 = vpop.eup %6008  ;;  %v3643_v38 = vmul.f32 1.442695, %v3547_v30  ;;  %v3645_v4 = vmul.f32 1.442695, %v3548_v40 }
 0x8f8   : > { %v3767_v21 = vadd.f32 %v8509_v62, %v8507_v3 }
 0x8f9   : > { %6022 = vpow2.f32 %v3643_v38 }
 0x8fa   : > { %v8513_v35 = vpop.eup %6010  ;;  %6024 = vpow2.f32 %v3645_v4  ;;  %3768 = vadd.xlane.f32.xlu1 %v3767_v21 }
 0x8fb   : > { %9718 = vst [vmem:[#allocation68_spill] sm:$0xff] %v8513_v35  ;;  %v8515_v42 = vpop.eup %6012 }
 0x8fc   : > { %v3764_v41 = vadd.f32 %v8515_v42, %v8513_v35  ;;  %v9724_v35 = vld [vmem:[#allocation23_spill] sm:$0xff] }
 0x8fe   : > { %v8519_v44 = vpop.eup %6014  ;;  %3765 = vadd.xlane.f32.xlu0 %v3764_v41 }
 0x8ff   : > { %9719 = vst [vmem:[#allocation67_spill] sm:$0xff] %v8519_v44  ;;  %v8521_v49 = vpop.eup %6016 }
 0x900   : > { %9720 = vst [vmem:[#allocation51_spill] sm:$0xff] %v8521_v49  ;;  %v3761_v30 = vadd.f32 %v8521_v49, %v8519_v44 }
 0x902   : > { %v8525_v40 = vpop.eup %6018  ;;  %3762 = vadd.xlane.f32.xlu1 %v3761_v30 }
 0x903   : > { %9721 = vst [vmem:[#allocation53_spill] sm:$0xff] %v8525_v40  ;;  %v8527_v52 = vpop.eup %6020 }
 0x904   : > { %9722 = vst [vmem:[#allocation52_spill] sm:$0xff] %v8527_v52  ;;  %v3758_v43 = vadd.f32 %v8527_v52, %v8525_v40 }
 0x906   : > { %v8531_v19 = vpop.eup %6022  ;;  %3759 = vadd.xlane.f32.xlu0 %v3758_v43 }
 0x907   : > { %9723 = vst [vmem:[#allocation55_spill] sm:$0xff] %v8531_v19  ;;  %v8533_v38 = vpop.eup %6024 }
 0x908   : > { %v3755_v4 = vadd.f32 %v8533_v38, %v8531_v19 }
 0x90a   : > { %3756 = vadd.xlane.f32.xlu1 %v3755_v4  ;;  %v9725_v4 = vld [vmem:[#allocation25_spill] sm:$0xff] }
 0x923   : > { %v3754_v21 = vpop.xlane.xlu1 %3753 }
 0x924   : > { %6026 = vrcp.f32 %v3754_v21 }
 0x927   : > { %v3751_v41 = vpop.xlane.xlu1 %3750 }
 0x928   : > { %6028 = vrcp.f32 %v3751_v41 }
 0x92b   : > { %v3748_v44 = vpop.xlane.xlu1 %3747 }
 0x92c   : > { %6030 = vrcp.f32 %v3748_v44 }
 0x92f   : > { %v3745_v30 = vpop.xlane.xlu1 %3744 }
 0x930   : > { %6032 = vrcp.f32 %v3745_v30 }
 0x931   : > { %v6027_v49 = vpop.eup %6026 }
 0x932   : > { %v3866_v40 = vmul.f32 %v6027_v49, %v8295_v23  ;;  %v3865_v43 = vmul.f32 %v6027_v49, %v8293_v33 }
 0x933   : > { %4020 = vxpose.xlu0.b32.start [1/4] (short) %v9724_v35, 128  ;;  %v3742_v52 = vpop.xlane.xlu1 %3741  ;;  %v9726_v35 = vld [vmem:[#allocation27_spill] sm:$0xff] }
 0x934   : > { %6034 = vrcp.f32 %v3742_v52  ;;  %3899 = vmatprep.subr.mxu1 %v3866_v40  ;;  %v9727_v40 = vld [vmem:[#allocation24_spill] sm:$0xff] }
 0x935   : > { %v6029_v19 = vpop.eup %6028  ;;  %3900 = vmatpush1.xpose.msra.mxu1 %v3865_v43 }
 0x936   : > { %v3864_v21 = vmul.f32 %v6029_v19, %v8305_v25  ;;  %v3863_v44 = vmul.f32 %v6029_v19, %v8299_v59  ;;  %v9728_v25 = vld [vmem:[#allocation29_spill] sm:$0xff] }
 0x937   : > { %4021 = vxpose.xlu0.b32.cont [2/4] (short) %v9725_v4, 128  ;;  %v3739_v41 = vpop.xlane.xlu1 %3738  ;;  %v9729_v4 = vld [vmem:[#allocation26_spill] sm:$0xff] }
 0x938   : > { %6036 = vrcp.f32 %v3739_v41  ;;  %3901 = vmatprep.subr.mxu1 %v3864_v21  ;;  %v9730_v41 = vld [vmem:[#allocation28_spill] sm:$0xff] }
 0x939   : > { %v6031_v30 = vpop.eup %6030  ;;  %3902 = vmatpush1.xpose.msra.mxu1 %v3863_v44 }
 0x93a   : > { %v3862_v33 = vmul.f32 %v6031_v30, %v8313_v56  ;;  %v3861_v23 = vmul.f32 %v6031_v30, %v8308_v36  ;;  %v3724_v30 = vpop.xlane.xlu0 %3723 }
 0x93b   : > { %4022 = vxpose.xlu0.b32.cont [3/4] (short) %v9726_v35, 128  ;;  %v3736_v49 = vpop.xlane.xlu1 %3735 }
 0x93c   : > { %6038 = vrcp.f32 %v3736_v49  ;;  %3903 = vmatprep.subr.mxu1 %v3862_v33 }
 0x93d   : > { %4052 = vxpose.xlu1.b32.start [1/4] (short) %v9727_v40, 128  ;;  %v6033_v52 = vpop.eup %6032  ;;  %3904 = vmatpush1.xpose.msra.mxu1 %v3861_v23  ;;  %v9731_v23 = vld [vmem:[#allocation30_spill] sm:$0xff] }
 0x93e   : > { %v3860_v59 = vmul.f32 %v6033_v52, %v8325_v48  ;;  %v3859_v19 = vmul.f32 %v6033_v52, %v8319_v27 }
 0x93f   : > { %4023 = vxpose.xlu0.b32.end [4/4] (short) %v9728_v25, 128  ;;  %v3733_v43 = vpop.xlane.xlu1 %3732  ;;  %v3718_v25 = vpop.xlane.xlu0 %3717 }
 0x940   : > { %6040 = vrcp.f32 %v3733_v43  ;;  %3905 = vmatprep.subr.mxu1 %v3860_v59 }
 0x941   : > { %4053 = vxpose.xlu1.b32.cont [2/4] (short) %v9729_v4, 128  ;;  %v6035_v56 = vpop.eup %6034  ;;  %3906 = vmatpush1.xpose.msra.mxu1 %v3859_v19 }
 0x942   : > { %v3858_v36 = vmul.f32 %v6035_v56, %v8333_v0  ;;  %v3857_v21 = vmul.f32 %v6035_v56, %v8328_v55 }
 0x943   : > { %v3730_v44 = vpop.xlane.xlu1 %3729  ;;  %v3712_v56 = vpop.xlane.xlu0 %3711 }
 0x944   : > { %6042 = vrcp.f32 %v3730_v44  ;;  %3907 = vmatprep.subr.mxu1 %v3858_v36 }
 0x945   : > { %4054 = vxpose.xlu1.b32.cont [3/4] (short) %v9730_v41, 128  ;;  %v6037_v48 = vpop.eup %6036  ;;  %3908 = vmatpush1.xpose.msra.mxu1 %v3857_v21  ;;  %6044 = vrcp.f32 %v3724_v30 }
 0x946   : > { %v3856_v27 = vmul.f32 %v6037_v48, %v8338_v5  ;;  %v3855_v35 = vmul.f32 %v6037_v48, %v8335_v29 }
 0x947   : > { %v3727_v33 = vpop.xlane.xlu1 %3726 }
 0x948   : > { %6046 = vrcp.f32 %v3727_v33  ;;  %3909 = vmatprep.subr.mxu1 %v3856_v27 }
 0x949   : > { %4055 = vxpose.xlu1.b32.end [4/4] (short) %v9731_v23, 128  ;;  %v6039_v0 = vpop.eup %6038  ;;  %3910 = vmatpush1.xpose.msra.mxu1 %v3855_v35 }
 0x94a   : > { %v3854_v55 = vmul.f32 %v6039_v0, %v8359_v61  ;;  %v3853_v49 = vmul.f32 %v6039_v0, %v8352_v31  ;;  %v9732_v0 = vld [vmem:[#allocation31_spill] sm:$0xff] }
 0x94b   : > { %v3721_v40 = vpop.xlane.xlu1 %3720 }
 0x94c   : > { %6048 = vrcp.f32 %v3721_v40  ;;  %3911 = vmatprep.subr.mxu1 %v3854_v55 }
 0x94d   : > { %v6041_v52 = vpop.eup %6040  ;;  %3912 = vmatpush1.xpose.msra.mxu1 %v3853_v49  ;;  %6050 = vrcp.f32 %v3718_v25 }
 0x94e   : > { %v3852_v29 = vmul.f32 %v6041_v52, %v8345_v20  ;;  %v3851_v5 = vmul.f32 %v6041_v52, %v8341_v47 }
 0x94f   : > { %v3715_v19 = vpop.xlane.xlu1 %3714 }
 0x950   : > { %3913 = vmatprep.subr.mxu1 %v3852_v29  ;;  %6052 = vrcp.f32 %v3715_v19 }
 0x951   : > { %v6043_v59 = vpop.eup %6042  ;;  %3914 = vmatpush1.xpose.msra.mxu1 %v3851_v5  ;;  %6054 = vrcp.f32 %v3712_v56 }
 0x952   : > { %v3850_v43 = vmul.f32 %v6043_v59, %v8381_v39  ;;  %v3849_v61 = vmul.f32 %v6043_v59, %v8377_v2  ;;  %v6045_v31 = vpop.eup %6044 }
 0x953   : > { %v3846_v47 = vmul.f32 %v6045_v31, %v8349_v1  ;;  %v3709_v44 = vpop.xlane.xlu1 %3708  ;;  %v3845_v2 = vmul.f32 %v6045_v31, %v8347_v6 }
 0x954   : > { %3915 = vmatprep.subr.mxu1 %v3850_v43  ;;  %6056 = vrcp.f32 %v3709_v44 }
 0x955   : > { %v6047_v4 = vpop.eup %6046  ;;  %3916 = vmatpush1.xpose.msra.mxu1 %v3849_v61 }
 0x956   : > { %v3848_v36 = vmul.f32 %v6047_v4, %v8387_v46  ;;  %v3847_v20 = vmul.f32 %v6047_v4, %v8383_v58 }
 0x958   : > { %3917 = vmatprep.subr.mxu1 %v3848_v36 }
 0x959   : > { %v6049_v21 = vpop.eup %6048  ;;  %3918 = vmatpush1.xpose.msra.mxu1 %v3847_v20 }
 0x95a   : > { %3919 = vmatprep.subr.mxu1 %v3846_v47  ;;  %v3844_v39 = vmul.f32 %v6049_v21, %v8391_v50  ;;  %v6051_v41 = vpop.eup %6050  ;;  %v3843_v46 = vmul.f32 %v6049_v21, %v8389_v18 }
 0x95b   : > { %v3842_v58 = vmul.f32 %v6051_v41, %v8363_v13  ;;  %v3841_v27 = vmul.f32 %v6051_v41, %v8361_v16 }
 0x95d   : > { %3920 = vmatpush1.xpose.msra.mxu1 %v3845_v2  ;;  %v6053_v48 = vpop.eup %6052 }
 0x95e   : > { %3921 = vmatprep.subr.mxu1 %v3844_v39  ;;  %v3840_v6 = vmul.f32 %v6053_v48, %v8401_v12  ;;  %v6055_v35 = vpop.eup %6054  ;;  %v3839_v33 = vmul.f32 %v6053_v48, %v8397_v54 }
 0x95f   : > { %v3799_v30 = vpop.xlane.xlu1 %3798  ;;  %v3838_v18 = vmul.f32 %v6055_v35, %v8373_v7  ;;  %v3837_v55 = vmul.f32 %v6055_v35, %v9732_v0 }
 0x960   : > { %6058 = vrcp.f32 %v3799_v30 }
 0x961   : > { %3922 = vmatpush1.xpose.msra.mxu1 %v3843_v46  ;;  %v6057_v13 = vpop.eup %6056  ;;  %v9734_v46 = vld [vmem:[#allocation45_spill] sm:$0xff] }
 0x962   : > { %3923 = vmatprep.subr.mxu1 %v3842_v58  ;;  %v3836_v16 = vmul.f32 %v6057_v13, %v8411_v15  ;;  %v3835_v12 = vmul.f32 %v6057_v13, %v8406_v28 }
 0x963   : > { %v3793_v23 = vpop.xlane.xlu1 %3792 }
 0x965   : > { %v3802_v1 = vpop.xlane.xlu0 %3801  ;;  %3924 = vmatpush1.xpose.msra.mxu1 %v3841_v27 }
 0x966   : > { %6060 = vrcp.f32 %v3802_v1  ;;  %3925 = vmatprep.subr.mxu1 %v3840_v6  ;;  %v9736_v1 = vld [vmem:[#allocation46_spill] sm:$0xff] }
 0x967   : > { %v3787_v52 = vpop.xlane.xlu1 %3786 }
 0x969   : > { %v3796_v50 = vpop.xlane.xlu0 %3795  ;;  %3926 = vmatpush1.xpose.msra.mxu1 %v3839_v33 }
 0x96a   : > { %6062 = vrcp.f32 %v3796_v50  ;;  %3927 = vmatprep.subr.mxu1 %v3838_v18 }
 0x96b   : > { %6064 = vrcp.f32 %v3793_v23 }
 0x96d   : > { %v3790_v49 = vpop.xlane.xlu0 %3789  ;;  %3928 = vmatpush1.xpose.msra.mxu1 %v3837_v55  ;;  %v6059_v40 = vpop.eup %6058 }
 0x96e   : > { %3929 = vmatprep.subr.mxu1 %v3836_v16  ;;  %6066 = vrcp.f32 %v3790_v49  ;;  %v3896_v29 = vmul.f32 %v6059_v40, %v8425_v8  ;;  %v3895_v59 = vmul.f32 %v6059_v40, %v8423_v37  ;;  %v9738_v16 = vld [vmem:[#allocation51_spill] sm:$0xff] }
 0x96f   : > { %6068 = vrcp.f32 %v3787_v52 }
 0x971   : > { %3930 = vmatpush1.xpose.msra.mxu1 %v3835_v12  ;;  %v3784_v15 = vpop.xlane.xlu0 %3783 }
 0x972   : > { %6070 = vrcp.f32 %v3784_v15 }
 0x973   : > { %v6061_v54 = vpop.eup %6060  ;;  %v3781_v43 = vpop.xlane.xlu1 %3780 }
 0x974   : > { %v3898_v7 = vmul.f32 %v6061_v54, %v8439_v17  ;;  %v3897_v25 = vmul.f32 %v6061_v54, %v8435_v10  ;;  %6072 = vrcp.f32 %v3781_v43  ;;  %v9746_v43 = vld [vmem:[#allocation65_spill] sm:$0xff] }
 0x976   : > { %3931 = vmatprep.subr.mxu1 %v3898_v7 }
 0x977   : > { %v6063_v5 = vpop.eup %6062  ;;  %3932 = vmatpush2.xpose.msra.mxu1 %v3897_v25  ;;  %v3778_v8 = vpop.xlane.xlu0 %3777 }
 0x978   : > { %3933 = vmatprep.subr.mxu1 %v3896_v29  ;;  %v3894_v28 = vmul.f32 %v6063_v5, %v8453_v60  ;;  %v6065_v19 = vpop.eup %6064  ;;  %v3893_v17 = vmul.f32 %v6063_v5, %v8449_v63  ;;  %6074 = vrcp.f32 %v3778_v8  ;;  %v9742_v29 = vld [vmem:[#allocation55_spill] sm:$0xff]  ;;  %v9750_v8 = vld [vmem:[#allocation62_spill] sm:$0xff] }
 0x979   : > { %v3892_v10 = vmul.f32 %v6065_v19, %v8433_v9  ;;  %v3891_v31 = vmul.f32 %v6065_v19, %v8431_v53  ;;  %v9745_v19 = vld [vmem:[#allocation36_spill] sm:$0xff] }
 0x97b   : > { %3934 = vmatpush2.xpose.msra.mxu1 %v3895_v59  ;;  %v6067_v61 = vpop.eup %6066  ;;  %v3775_v60 = vpop.xlane.xlu1 %3774  ;;  %v9743_v59 = vld [vmem:[#allocation66_spill] sm:$0xff] }
 0x97c   : > { %3935 = vmatprep.subr.mxu1 %v3894_v28  ;;  %v3890_v37 = vmul.f32 %v6067_v61, %v8461_v32  ;;  %v6069_v4 = vpop.eup %6068  ;;  %v3889_v56 = vmul.f32 %v6067_v61, %v8457_v26  ;;  %6076 = vrcp.f32 %v3775_v60  ;;  %v9744_v28 = vld [vmem:[#allocation50_spill] sm:$0xff]  ;;  %v9748_v61 = vld [vmem:[#allocation63_spill] sm:$0xff]  ;;  %v9753_v60 = vld [vmem:[#allocation60_spill] sm:$0xff] }
 0x97d   : > { %v3888_v63 = vmul.f32 %v6069_v4, %v8447_v45  ;;  %v3887_v20 = vmul.f32 %v6069_v4, %v8443_v11  ;;  %v9733_v11 = vld [vmem:[#allocation47_spill] sm:$0xff] }
 0x97f   : > { %3936 = vmatpush2.xpose.msra.mxu1 %v3893_v17  ;;  %v6071_v36 = vpop.eup %6070  ;;  %v3772_v9 = vpop.xlane.xlu0 %3771 }
 0x980   : > { %3937 = vmatprep.subr.mxu1 %v3892_v10  ;;  %6078 = vrcp.f32 %v3772_v9  ;;  %v3886_v53 = vmul.f32 %v6071_v36, %v8469_v14  ;;  %v3885_v21 = vmul.f32 %v6071_v36, %v8467_v57  ;;  %v9735_v57 = vld [vmem:[#allocation33_spill] sm:$0xff]  ;;  %v9747_v10 = vld [vmem:[#allocation64_spill] sm:$0xff]  ;;  %v9756_v36 = vld [vmem:[#allocation43_spill] sm:$0xff] }
 0x981   : > { %v6073_v47 = vpop.eup %6072 }
 0x982   : > { %v3884_v26 = vmul.f32 %v6073_v47, %v8477_v24  ;;  %v3883_v2 = vmul.f32 %v6073_v47, %v8475_v22  ;;  %v9758_v47 = vmov 0.0  }
 0x983   : > { %3938 = vmatpush2.xpose.msra.mxu1 %v3891_v31  ;;  %v3769_v32 = vpop.xlane.xlu1 %3768  ;;  %v9751_v31 = vld [vmem:[#allocation40_spill] sm:$0xff] }
 0x984   : > { %3939 = vmatprep.subr.mxu1 %v3890_v37  ;;  %6080 = vrcp.f32 %v3769_v32  ;;  %v9752_v37 = vld [vmem:[#allocation61_spill] sm:$0xff] }
 0x985   : > { %v6075_v44 = vpop.eup %6074 }
 0x986   : > { %v3882_v39 = vmul.f32 %v6075_v44, %v9733_v11  ;;  %v3881_v30 = vmul.f32 %v6075_v44, %v9734_v46 }
 0x987   : > { %3940 = vmatpush2.xpose.msra.mxu1 %v3889_v56  ;;  %v3766_v45 = vpop.xlane.xlu0 %3765  ;;  %v9754_v56 = vld [vmem:[#allocation59_spill] sm:$0xff] }
 0x988   : > { %3941 = vmatprep.subr.mxu1 %v3888_v63  ;;  %6082 = vrcp.f32 %v3766_v45  ;;  %v9755_v63 = vld [vmem:[#allocation38_spill] sm:$0xff] }
 0x989   : > { %v6077_v41 = vpop.eup %6076 }
 0x98a   : > { %v3880_v58 = vmul.f32 %v6077_v41, %v9735_v57  ;;  %v3879_v27 = vmul.f32 %v6077_v41, %v9736_v1 }
 0x98b   : > { %3942 = vmatpush2.xpose.msra.mxu1 %v3887_v20  ;;  %v3763_v14 = vpop.xlane.xlu1 %3762  ;;  %v9757_v20 = vld [vmem:[#allocation39_spill] sm:$0xff] }
 0x98c   : > { %3943 = vmatprep.subr.mxu1 %v3886_v53  ;;  %6084 = vrcp.f32 %v3763_v14 }
 0x98d   : > { %v6079_v48 = vpop.eup %6078 }
 0x98e   : > { %v3878_v22 = vmul.f32 %v6079_v48, %v8501_v51  ;;  %v3877_v50 = vmul.f32 %v6079_v48, %v8499_v34  ;;  %v9737_v51 = vld [vmem:[#allocation68_spill] sm:$0xff]  ;;  %v9739_v34 = vld [vmem:[#allocation67_spill] sm:$0xff] }
 0x98f   : > { %3944 = vmatpush2.xpose.msra.mxu1 %v3885_v21  ;;  %v3760_v24 = vpop.xlane.xlu0 %3759 }
 0x990   : > { %3945 = vmatprep.subr.mxu1 %v3884_v26  ;;  %6086 = vrcp.f32 %v3760_v24 }
 0x991   : > { %v6081_v6 = vpop.eup %6080 }
 0x992   : > { %v3876_v33 = vmul.f32 %v6081_v6, %v8509_v62  ;;  %v3875_v13 = vmul.f32 %v6081_v6, %v8507_v3  ;;  %v9740_v62 = vld [vmem:[#allocation52_spill] sm:$0xff]  ;;  %v9741_v3 = vld [vmem:[#allocation53_spill] sm:$0xff] }
 0x993   : > { %3946 = vmatpush2.xpose.msra.mxu1 %v3883_v2  ;;  %v3757_v35 = vpop.xlane.xlu1 %3756 }
 0x994   : > { %3947 = vmatprep.subr.mxu1 %v3882_v39  ;;  %6088 = vrcp.f32 %v3757_v35 }
 0x995   : > { %v6083_v18 = vpop.eup %6082 }
 0x996   : > { %v3874_v23 = vmul.f32 %v6083_v18, %v8515_v42  ;;  %v3873_v55 = vmul.f32 %v6083_v18, %v9737_v51 }
 0x997   : > { %3948 = vmatpush2.xpose.msra.mxu1 %v3881_v30 }
 0x998   : > { %3949 = vmatprep.subr.mxu1 %v3880_v58 }
 0x999   : > { %v6085_v0 = vpop.eup %6084 }
 0x99a   : > { %v3872_v49 = vmul.f32 %v6085_v0, %v9738_v16  ;;  %v3871_v40 = vmul.f32 %v6085_v0, %v9739_v34 }
 0x99b   : > { %3950 = vmatpush2.xpose.msra.mxu1 %v3879_v27 }
 0x99c   : > { %3951 = vmatprep.subr.mxu1 %v3878_v22 }
 0x99d   : > { %v6087_v12 = vpop.eup %6086 }
 0x99e   : > { %v3870_v54 = vmul.f32 %v6087_v12, %v9740_v62  ;;  %v3869_v7 = vmul.f32 %v6087_v12, %v9741_v3 }
 0x99f   : > { %3952 = vmatpush2.xpose.msra.mxu1 %v3877_v50 }
 0x9a0   : > { %3953 = vmatprep.subr.mxu1 %v3876_v33 }
 0x9a1   : > { %v6089_v52 = vpop.eup %6088 }
 0x9a2   : > { %v3868_v42 = vmul.f32 %v6089_v52, %v8533_v38  ;;  %v3867_v5 = vmul.f32 %v6089_v52, %v9742_v29  ;;  %v9749_v38 = vld [vmem:[#allocation49_spill] sm:$0xff] }
 0x9a3   : > { %3954 = vmatpush2.xpose.msra.mxu1 %v3875_v13 }
 0x9a4   : > { %3955 = vmatprep.subr.mxu1 %v3874_v23 }
 0x9a7   : > { %3956 = vmatpush2.xpose.msra.mxu1 %v3873_v55 }
 0x9a8   : > { %3957 = vmatprep.subr.mxu1 %v3872_v49 }
 0x9ab   : > { %3958 = vmatpush2.xpose.msra.mxu1 %v3871_v40 }
 0x9ac   : > { %3959 = vmatprep.subr.mxu1 %v3870_v54 }
 0x9af   : > { %3960 = vmatpush2.xpose.msra.mxu1 %v3869_v7  ;;  %v4036_v25 = vpop.trf.xlu0 }
 0x9b0   : > { %3961 = vmatprep.subr.mxu1 %v3868_v42  ;;  %v4084_v53 = vmul.f32 0.17677669, %v4036_v25 }
 0x9b3   : > { %3962 = vmatpush2.xpose.msra.mxu1 %v3867_v5  ;;  %v4037_v15 = vpop.trf.xlu0 }
 0x9b4   : > { %4236 = vmatprep.subr.mxu1 %v9743_v59  ;;  %v4085_v21 = vmul.f32 0.17677669, %v4037_v15 }
 0x9b6   : > { %3964 = vmatmul.mubr.f32.vlgmr.msra.gmra.mxu1 %v9744_v28 }
 0x9b7   : > { %3969 = vmatprep.mubr.f32.mxu1 %v9745_v19  ;;  %4237 = vmatpush1.msra.mxu1 %v9746_v43  ;;  %v4038_v17 = vpop.trf.xlu0 }
 0x9b8   : > { %4238 = vmatprep.subr.mxu1 %v9747_v10  ;;  %v4086_v44 = vmul.f32 0.17677669, %v4038_v17 }
 0x9b9   : > { %4239 = vmatpush1.msra.mxu1 %v9748_v61  ;;  %v4068_v58 = vpop.trf.xlu1 }
 0x9ba   : > { %3970 = vmatmul.mubr.f32.gmra.mxu1 %v9749_v38  ;;  %4240 = vmatprep.subr.mxu1 %v9750_v8  ;;  %v4100_v34 = vmul.f32 0.17677669, %v4068_v58 }
 0x9bb   : > { %3975 = vmatprep.mubr.f32.mxu1 %v9751_v31  ;;  %4241 = vmatpush1.msra.mxu1 %v9752_v37  ;;  %v4039_v4 = vpop.trf.xlu0 }
 0x9bc   : > { %4242 = vmatprep.subr.mxu1 %v9753_v60  ;;  %v4087_v2 = vmul.f32 0.17677669, %v4039_v4 }
 0x9bd   : > { %4243 = vmatpush1.msra.mxu1 %v9754_v56  ;;  %v4069_v27 = vpop.trf.xlu1 }
 0x9be   : > { %3976 = vmatmul.mubr.f32.gmra.mxu1 %v9755_v63  ;;  %v4101_v62 = vmul.f32 0.17677669, %v4069_v27 }
 0x9bf   : > { %3981 = vmatprep.mubr.f32.mxu1 %v9756_v36  ;;  %v4040_v9 = vpop.trf.xlu0 }
 0x9c0   : > { %v4088_v39 = vmul.f32 0.17677669, %v4040_v9 }
 0x9c1   : > { %v4070_v35 = vpop.trf.xlu1 }
 0x9c2   : > { %3982 = vmatmul.mubr.f32.gmra.mxu1 %v9757_v20  ;;  %v4102_v54 = vmul.f32 0.17677669, %v4070_v35 }
 0x9c3   : > { %4276 = vmatprep.mubr.f32.mxu1 %v9758_v47  ;;  %v4041_v32 = vpop.trf.xlu0 }
 0x9c4   : > { %v4089_v41 = vmul.f32 0.17677669, %v4041_v32 }
 0x9c5   : > { %v4071_v13 = vpop.trf.xlu1 }
 0x9c6   : > { %5430 = vmatmul.mubr.msk.f32.vlgmr.msra.gmra.mxu1 %vm252_vm0, %v4084_v53  ;;  %v4103_v3 = vmul.f32 0.17677669, %v4071_v13 }
 0x9c7   : > { %4282 = vmatprep.mubr.f32.mxu1 %v9758_v47  ;;  %v4042_v26 = vpop.trf.xlu0 }
 0x9c8   : > { %v4090_v46 = vmul.f32 0.17677669, %v4042_v26 }
 0x9c9   : > { %v4072_v51 = vpop.trf.xlu1 }
 0x9ca   : > { %5431 = vmatmul.mubr.msk.f32.gmra.mxu1 %vm252_vm0, %v4085_v21  ;;  %v4104_v42 = vmul.f32 0.17677669, %v4072_v51 }
 0x9cb   : > { %4288 = vmatprep.mubr.f32.mxu1 %v9758_v47  ;;  %v4043_v45 = vpop.trf.xlu0 }
 0x9cc   : > { %v4091_v57 = vmul.f32 0.17677669, %v4043_v45 }
 0x9cd   : > { %v4073_v12 = vpop.trf.xlu1 }
 0x9ce   : > { %5432 = vmatmul.mubr.msk.f32.gmra.mxu1 %vm252_vm0, %v4086_v44  ;;  %v4105_v25 = vmul.f32 0.17677669, %v4073_v12 }
 0x9cf   : > { %4294 = vmatprep.mubr.f32.mxu1 %v9758_v47  ;;  %v4044_v11 = vpop.trf.xlu0 }
 0x9d0   : > { %v4092_v48 = vmul.f32 0.17677669, %v4044_v11 }
 0x9d1   : > { %v4074_v40 = vpop.trf.xlu1 }
 0x9d2   : > { %5433 = vmatmul.mubr.msk.f32.gmra.mxu1 %vm252_vm0, %v4087_v2  ;;  %v4106_v5 = vmul.f32 0.17677669, %v4074_v40 }
 0x9d3   : > { %4300 = vmatprep.mubr.f32.mxu1 %v9758_v47  ;;  %v4045_v14 = vpop.trf.xlu0 }
 0x9d4   : > { %v4093_v1 = vmul.f32 0.17677669, %v4045_v14 }
 0x9d5   : > { %v4075_v52 = vpop.trf.xlu1 }
 0x9d6   : > { %5434 = vmatmul.mubr.msk.f32.gmra.mxu1 %vm252_vm0, %v4088_v39  ;;  %v4107_v59 = vmul.f32 0.17677669, %v4075_v52 }
 0x9d7   : > { %4306 = vmatprep.mubr.f32.mxu1 %v9758_v47  ;;  %v4046_v30 = vpop.trf.xlu0 }
 0x9d8   : > { %v4094_v6 = vmul.f32 0.17677669, %v4046_v30 }
 0x9d9   : > { %v4076_v7 = vpop.trf.xlu1 }
 0x9da   : > { %5435 = vmatmul.mubr.msk.f32.gmra.mxu1 %vm252_vm0, %v4089_v41  ;;  %v4108_v28 = vmul.f32 0.17677669, %v4076_v7 }
 0x9db   : > { %4312 = vmatprep.mubr.f32.mxu1 %v9758_v47  ;;  %v4047_v24 = vpop.trf.xlu0 }
 0x9dc   : > { %v4095_v50 = vmul.f32 0.17677669, %v4047_v24 }
 0x9dd   : > { %v4077_v29 = vpop.trf.xlu1 }
 0x9de   : > { %5436 = vmatmul.mubr.msk.f32.gmra.mxu1 %vm252_vm0, %v4090_v46  ;;  %v4109_v43 = vmul.f32 0.17677669, %v4077_v29 }
 0x9df   : > { %4318 = vmatprep.mubr.f32.mxu1 %v9758_v47  ;;  %v4048_v22 = vpop.trf.xlu0 }
 0x9e0   : > { %v4096_v18 = vmul.f32 0.17677669, %v4048_v22 }
 0x9e1   : > { %v4078_v15 = vpop.trf.xlu1 }
 0x9e2   : > { %5437 = vmatmul.mubr.msk.f32.gmra.mxu1 %vm252_vm0, %v4091_v57  ;;  %v4110_v10 = vmul.f32 0.17677669, %v4078_v15 }
 0x9e3   : > { %4324 = vmatprep.mubr.f32.mxu1 %v9758_v47  ;;  %v4049_v33 = vpop.trf.xlu0 }
 0x9e4   : > { %v4097_v0 = vmul.f32 0.17677669, %v4049_v33 }
 0x9e5   : > { %v4079_v19 = vpop.trf.xlu1 }
 0x9e6   : > { %5438 = vmatmul.mubr.msk.f32.gmra.mxu1 %vm252_vm0, %v4092_v48  ;;  %v4111_v61 = vmul.f32 0.17677669, %v4079_v19 }
 0x9e7   : > { %4330 = vmatprep.mubr.f32.mxu1 %v9758_v47  ;;  %v4050_v23 = vpop.trf.xlu0 }
 0x9e8   : > { %v4098_v55 = vmul.f32 0.17677669, %v4050_v23 }
 0x9e9   : > { %v4080_v17 = vpop.trf.xlu1 }
 0x9ea   : > { %5439 = vmatmul.mubr.msk.f32.gmra.mxu1 %vm252_vm0, %v4093_v1  ;;  %v4112_v8 = vmul.f32 0.17677669, %v4080_v17 }
 0x9eb   : > { %4336 = vmatprep.mubr.f32.mxu1 %v9758_v47  ;;  %v4051_v16 = vpop.trf.xlu0 }
 0x9ec   : > { %v4099_v49 = vmul.f32 0.17677669, %v4051_v16 }
 0x9ed   : > { %v4081_v38 = vpop.trf.xlu1 }
 0x9ee   : > { %5440 = vmatmul.mubr.msk.f32.gmra.mxu1 %vm252_vm0, %v4094_v6  ;;  %v4113_v37 = vmul.f32 0.17677669, %v4081_v38 }
 0x9ef   : > { %4342 = vmatprep.mubr.f32.mxu1 %v9758_v47 }
 0x9f1   : > { %v4082_v31 = vpop.trf.xlu1 }
 0x9f2   : > { %5441 = vmatmul.mubr.msk.f32.gmra.mxu1 %vm252_vm0, %v4095_v50  ;;  %v4114_v4 = vmul.f32 0.17677669, %v4082_v31 }
 0x9f3   : > { %4348 = vmatprep.mubr.f32.mxu1 %v9758_v47 }
 0x9f5   : > { %v4083_v60 = vpop.trf.xlu1 }
 0x9f6   : > { %5442 = vmatmul.mubr.msk.f32.gmra.mxu1 %vm252_vm0, %v4096_v18  ;;  %v4115_v56 = vmul.f32 0.17677669, %v4083_v60 }
 0x9f7   : > { %4354 = vmatprep.mubr.f32.mxu1 %v9758_v47 }
 0x9fa   : > { %5443 = vmatmul.mubr.msk.f32.gmra.mxu1 %vm252_vm0, %v4097_v0 }
 0x9fb   : > { %4360 = vmatprep.mubr.f32.mxu1 %v9758_v47 }
 0x9fe   : > { %5444 = vmatmul.mubr.msk.f32.gmra.mxu1 %vm252_vm0, %v4098_v55 }
 0x9ff   : > { %4366 = vmatprep.mubr.f32.mxu1 %v9758_v47 }
 0xa02   : > { %5445 = vmatmul.mubr.msk.f32.gmra.mxu1 %vm252_vm0, %v4099_v49 }
 0xa03   : > { %4372 = vmatprep.mubr.f32.mxu1 %v9758_v47 }
 0xa06   : > { %5446 = vmatmul.mubr.msk.f32.gmra.mxu1 %vm252_vm0, %v4100_v34 }
 0xa07   : > { %4378 = vmatprep.mubr.f32.mxu1 %v9758_v47 }
 0xa0a   : > { %5447 = vmatmul.mubr.msk.f32.gmra.mxu1 %vm252_vm0, %v4101_v62 }
 0xa0b   : > { %4384 = vmatprep.mubr.f32.mxu1 %v9758_v47 }
 0xa0e   : > { %5448 = vmatmul.mubr.msk.f32.gmra.mxu1 %vm252_vm0, %v4102_v54 }
 0xa0f   : > { %4390 = vmatprep.mubr.f32.mxu1 %v9758_v47 }
 0xa12   : > { %5449 = vmatmul.mubr.msk.f32.gmra.mxu1 %vm252_vm0, %v4103_v3 }
 0xa13   : > { %4396 = vmatprep.mubr.f32.mxu1 %v9758_v47 }
 0xa16   : > { %5450 = vmatmul.mubr.msk.f32.gmra.mxu1 %vm252_vm0, %v4104_v42 }
 0xa17   : > { %4402 = vmatprep.mubr.f32.mxu1 %v9758_v47 }
 0xa1a   : > { %5451 = vmatmul.mubr.msk.f32.gmra.mxu1 %vm252_vm0, %v4105_v25 }
 0xa1b   : > { %4408 = vmatprep.mubr.f32.mxu1 %v9758_v47 }
 0xa1e   : > { %5452 = vmatmul.mubr.msk.f32.gmra.mxu1 %vm252_vm0, %v4106_v5 }
 0xa1f   : > { %4414 = vmatprep.mubr.f32.mxu1 %v9758_v47 }
 0xa22   : > { %5453 = vmatmul.mubr.msk.f32.gmra.mxu1 %vm252_vm0, %v4107_v59 }
 0xa23   : > { %4420 = vmatprep.mubr.f32.mxu1 %v9758_v47 }
 0xa26   : > { %5454 = vmatmul.mubr.msk.f32.gmra.mxu1 %vm252_vm0, %v4108_v28 }
 0xa27   : > { %4426 = vmatprep.mubr.f32.mxu1 %v9758_v47 }
 0xa2a   : > { %5455 = vmatmul.mubr.msk.f32.gmra.mxu1 %vm252_vm0, %v4109_v43 }
 0xa2b   : > { %4432 = vmatprep.mubr.f32.mxu1 %v9758_v47 }
 0xa2e   : > { %5456 = vmatmul.mubr.msk.f32.gmra.mxu1 %vm252_vm0, %v4110_v10 }
 0xa2f   : > { %4438 = vmatprep.mubr.f32.mxu1 %v9758_v47 }
 0xa32   : > { %5457 = vmatmul.mubr.msk.f32.gmra.mxu1 %vm252_vm0, %v4111_v61 }
 0xa33   : > { %4444 = vmatprep.mubr.f32.mxu1 %v9758_v47 }
 0xa36   : > { %5458 = vmatmul.mubr.msk.f32.gmra.mxu1 %vm252_vm0, %v4112_v8 }
 0xa37   : > { %4450 = vmatprep.mubr.f32.mxu1 %v9758_v47 }
 0xa3a   : > { %5459 = vmatmul.mubr.msk.f32.gmra.mxu1 %vm252_vm0, %v4113_v37 }
 0xa3b   : > { %4456 = vmatprep.mubr.f32.mxu1 %v9758_v47 }
 0xa3e   : > { %5460 = vmatmul.mubr.msk.f32.gmra.mxu1 %vm252_vm0, %v4114_v4 }
 0xa3f   : > { %4462 = vmatprep.mubr.f32.mxu1 %v9758_v47 }
 0xa42   : > { %5461 = vmatmul.mubr.msk.f32.gmra.mxu1 %vm252_vm0, %v4115_v56 }
 0xa76   : > { %v8688_v63 = vpop.f32.mrf.mxu1 }
 0xa77   : > { %9759 = vst [vmem:[#allocation54_spill] sm:$0xff] %v8688_v63 }
 0xa78   : > { %v8690_v36 = vpop.f32.mrf.mxu1 }
 0xa79   : > { %9760 = vst [vmem:[#allocation57_spill] sm:$0xff] %v8690_v36 }
 0xa7a   : > { %v8692_v9 = vpop.f32.mrf.mxu1 }
 0xa7b   : > { %9761 = vst [vmem:[#allocation56_spill] sm:$0xff] %v8692_v9 }
 0xa7c   : > { %v8694_v20 = vpop.f32.mrf.mxu1 }
 0xa7d   : > { %9762 = vst [vmem:[#allocation58_spill] sm:$0xff] %v8694_v20 }
 0xa7e   : > { %v8696_v53 = vpop.f32.mrf.mxu1 }
 0xa7f   : > { %9763 = vst [vmem:[#allocation48_spill] sm:$0xff] %v8696_v53 }
 0xa80   : > { %v8698_v32 = vpop.f32.mrf.mxu1 }
 0xa81   : > { %9764 = vst [vmem:[#allocation23_spill] sm:$0xff] %v8698_v32 }
 0xa82   : > { %v8700_v21 = vpop.f32.mrf.mxu1 }
 0xa83   : > { %9765 = vst [vmem:[#allocation25_spill] sm:$0xff] %v8700_v21 }
 0xa84   : > { %v8702_v26 = vpop.f32.mrf.mxu1 }
 0xa85   : > { %9766 = vst [vmem:[#allocation27_spill] sm:$0xff] %v8702_v26 }
 0xa86   : > { %v8704_v44 = vpop.f32.mrf.mxu1 }
 0xa87   : > { %9767 = vst [vmem:[#allocation24_spill] sm:$0xff] %v8704_v44 }
 0xa88   : > { %v8706_v45 = vpop.f32.mrf.mxu1 }
 0xa89   : > { %9768 = vst [vmem:[#allocation29_spill] sm:$0xff] %v8706_v45 }
 0xa8a   : > { %v8708_v2 = vpop.f32.mrf.mxu1 }
 0xa8c   : > { %v8710_v11 = vpop.f32.mrf.mxu1 }
 0xa8e   : > { %v8712_v39 = vpop.f32.mrf.mxu1 }
 0xa8f   : > { %9769 = vst [vmem:[#allocation26_spill] sm:$0xff] %v8712_v39 }
 0xa90   : > { %v8714_v41 = vpop.f32.mrf.mxu1 }
 0xa91   : > { %9770 = vst [vmem:[#allocation28_spill] sm:$0xff] %v8714_v41  ;;  %v4475_v60 = vmax.f32 %v8712_v39, %v8714_v41 }
 0xa92   : > { %v8716_v14 = vpop.f32.mrf.mxu1 }
 0xa94   : > { %v8718_v46 = vpop.f32.mrf.mxu1 }
 0xa96   : > { %v8720_v30 = vpop.f32.mrf.mxu1 }
 0xa98   : > { %v8722_v57 = vpop.f32.mrf.mxu1 }
 0xa99   : > { %9771 = vst [vmem:[#allocation30_spill] sm:$0xff] %v8722_v57  ;;  %v4481_v8 = vmax.f32 %v8720_v30, %v8722_v57 }
 0xa9a   : > { %v8724_v58 = vpop.f32.mrf.mxu1 }
 0xa9c   : > { %v8726_v48 = vpop.f32.mrf.mxu1 }
 0xa9d   : > { %v4484_v56 = vmax.f32 %v8724_v58, %v8726_v48 }
 0xa9e   : > { %v8728_v24 = vpop.f32.mrf.mxu1 }
 0xaa0   : > { %v8730_v1 = vpop.f32.mrf.mxu1 }
 0xaa1   : > { %v4487_v17 = vmax.f32 %v8728_v24, %v8730_v1 }
 0xaa2   : > { %v8732_v27 = vpop.f32.mrf.mxu1 }
 0xaa4   : > { %v8734_v22 = vpop.f32.mrf.mxu1 }
 0xaa5   : > { %v4490_v31 = vmax.f32 %v8732_v27, %v8734_v22 }
 0xaa6   : > { %v8736_v6 = vpop.f32.mrf.mxu1 }
 0xaa8   : > { %v8738_v35 = vpop.f32.mrf.mxu1 }
 0xaa9   : > { %v4493_v59 = vmax.f32 %v8736_v6, %v8738_v35 }
 0xaaa   : > { %v8740_v50 = vpop.f32.mrf.mxu1 }
 0xaac   : > { %v8742_v33 = vpop.f32.mrf.mxu1 }
 0xaad   : > { %v4496_v10 = vmax.f32 %v8740_v50, %v8742_v33 }
 0xaae   : > { %v8744_v18 = vpop.f32.mrf.mxu1 }
 0xab0   : > { %v8746_v13 = vpop.f32.mrf.mxu1 }
 0xab1   : > { %v4499_v25 = vmax.f32 %v8744_v18, %v8746_v13 }
 0xab2   : > { %v8748_v23 = vpop.f32.mrf.mxu1 }
 0xab4   : > { %v8750_v0 = vpop.f32.mrf.mxu1 }
 0xab5   : > { %v4502_v28 = vmax.f32 %v8748_v23, %v8750_v0 }
 0xab6   : > { %v8752_v51 = vpop.f32.mrf.mxu1 }
 0xab8   : > { %v8754_v55 = vpop.f32.mrf.mxu1 }
 0xab9   : > { %v4505_v52 = vmax.f32 %v8752_v51, %v8754_v55 }
 0xaba   : > { %v8756_v16 = vpop.f32.mrf.mxu1 }
 0xabc   : > { %v8758_v49 = vpop.f32.mrf.mxu1 }
 0xabd   : > { %v4508_v29 = vmax.f32 %v8756_v16, %v8758_v49 }
 0xabe   : > { %v8760_v12 = vpop.f32.mrf.mxu1 }
 0xac0   : > { %v8762_v34 = vpop.f32.mrf.mxu1 }
 0xac1   : > { %v4511_v40 = vmax.f32 %v8760_v12, %v8762_v34 }
 0xac2   : > { %v8766_v62 = vpop.f32.mrf.mxu1 }
 0xac3   : > { %4512 = vmax.xlane.f32.xlu1 %v4511_v40 }
 0xac4   : > { %v8768_v54 = vpop.f32.mrf.mxu1 }
 0xac5   : > { %v4514_v3 = vmax.f32 %v8766_v62, %v8768_v54 }
 0xac6   : > { %v8774_v7 = vpop.f32.mrf.mxu1 }
 0xac7   : > { %9772 = vst [vmem:[#allocation31_spill] sm:$0xff] %v8774_v7  ;;  %4506 = vmax.xlane.f32.xlu1 %v4505_v52  ;;  %4515 = vmax.xlane.f32.xlu0 %v4514_v3  ;;  %v4469_v3 = vmax.f32 %v8704_v44, %v8706_v45 }
 0xac8   : > { %v8776_v42 = vpop.f32.mrf.mxu1 }
 0xac9   : > { %9773 = vst [vmem:[#allocation47_spill] sm:$0xff] %v8776_v42 }
 0xaca   : > { %v8782_v5 = vpop.f32.mrf.mxu1 }
 0xacb   : > { %9774 = vst [vmem:[#allocation45_spill] sm:$0xff] %v8782_v5  ;;  %4500 = vmax.xlane.f32.xlu1 %v4499_v25  ;;  %4509 = vmax.xlane.f32.xlu0 %v4508_v29  ;;  %v4478_v25 = vmax.f32 %v8716_v14, %v8718_v46 }
 0xacc   : > { %v8784_v15 = vpop.f32.mrf.mxu1 }
 0xacd   : > { %9775 = vst [vmem:[#allocation33_spill] sm:$0xff] %v8784_v15 }
 0xace   : > { %v8790_v19 = vpop.f32.mrf.mxu1 }
 0xacf   : > { %9776 = vst [vmem:[#allocation46_spill] sm:$0xff] %v8790_v19  ;;  %4494 = vmax.xlane.f32.xlu1 %v4493_v59  ;;  %4503 = vmax.xlane.f32.xlu0 %v4502_v28  ;;  %v4472_v28 = vmax.f32 %v8708_v2, %v8710_v11 }
 0xad0   : > { %v8792_v43 = vpop.f32.mrf.mxu1 }
 0xad1   : > { %9777 = vst [vmem:[#allocation68_spill] sm:$0xff] %v8792_v43 }
 0xad2   : > { %v8798_v61 = vpop.f32.mrf.mxu1 }
 0xad3   : > { %9778 = vst [vmem:[#allocation51_spill] sm:$0xff] %v8798_v61  ;;  %4488 = vmax.xlane.f32.xlu1 %v4487_v17  ;;  %4497 = vmax.xlane.f32.xlu0 %v4496_v10 }
 0xad4   : > { %v8800_v38 = vpop.f32.mrf.mxu1 }
 0xad5   : > { %9779 = vst [vmem:[#allocation67_spill] sm:$0xff] %v8800_v38 }
 0xad6   : > { %v8806_v37 = vpop.f32.mrf.mxu1 }
 0xad7   : > { %4482 = vmax.xlane.f32.xlu1 %v4481_v8  ;;  %4491 = vmax.xlane.f32.xlu0 %v4490_v31 }
 0xad8   : > { %v8808_v4 = vpop.f32.mrf.mxu1 }
 0xad9   : > { %9780 = vst [vmem:[#allocation52_spill] sm:$0xff] %v8808_v4 }
 0xada   : > { %v8814_v40 = vpop.f32.mrf.mxu1 }
 0xadb   : > { %4476 = vmax.xlane.f32.xlu1 %v4475_v60  ;;  %4485 = vmax.xlane.f32.xlu0 %v4484_v56 }
 0xadc   : > { %v8816_v52 = vpop.f32.mrf.mxu1 }
 0xadd   : > { %9781 = vst [vmem:[#allocation53_spill] sm:$0xff] %v8816_v52 }
 0xade   : > { %v8822_v29 = vpop.f32.mrf.mxu1 }
 0xadf   : > { %4470 = vmax.xlane.f32.xlu1 %v4469_v3  ;;  %4479 = vmax.xlane.f32.xlu0 %v4478_v25 }
 0xae0   : > { %v8824_v59 = vpop.f32.mrf.mxu1 }
 0xae2   : > { %v8828_v17 = vpop.f32.mrf.mxu1 }
 0xae3   : > { %4473 = vmax.xlane.f32.xlu0 %v4472_v28 }
 0xae4   : > { %v8830_v10 = vpop.f32.mrf.mxu1 }
 0xae6   : > { %v8832_v8 = vpop.f32.mrf.mxu1 }
 0xae8   : > { %v8834_v31 = vpop.f32.mrf.mxu1 }
 0xaea   : > { %v8836_v60 = vpop.f32.mrf.mxu1 }
 0xaec   : > { %v8838_v56 = vpop.f32.mrf.mxu1 }
 0xaee   : > { %v8840_v3 = vpop.f32.mrf.mxu1 }
 0xaf0   : > { %v8842_v25 = vpop.f32.mrf.mxu1 }
 0xaf1   : > { %v4547_v39 = vmax.f32 %v8840_v3, %v8842_v25 }
 0xaf2   : > { %v8844_v63 = vpop.f32.mrf.mxu1 }
 0xaf4   : > { %v8846_v36 = vpop.f32.mrf.mxu1 }
 0xaf6   : > { %v8848_v9 = vpop.f32.mrf.mxu1 }
 0xaf8   : > { %v8850_v28 = vpop.f32.mrf.mxu1 }
 0xaf9   : > { %9782 = vst [vmem:[#allocation55_spill] sm:$0xff] %v8850_v28  ;;  %v4553_v44 = vmax.f32 %v8848_v9, %v8850_v28  ;;  %v4544_v28 = vmax.f32 %v8836_v60, %v8838_v56 }
 0xafa   : > { %v8852_v20 = vpop.f32.mrf.mxu1 }
 0xafc   : > { %v8854_v53 = vpop.f32.mrf.mxu1 }
 0xafd   : > { %v4556_v57 = vmax.f32 %v8852_v20, %v8854_v53 }
 0xafe   : > { %v8856_v32 = vpop.f32.mrf.mxu1 }
 0xb00   : > { %v8858_v21 = vpop.f32.mrf.mxu1 }
 0xb01   : > { %v4559_v26 = vmax.f32 %v8856_v32, %v8858_v21 }
 0xb02   : > { %v8862_v47 = vpop.f32.mrf.mxu1 }
 0xb03   : > { %4560 = vmax.xlane.f32.xlu1 %v4559_v26  ;;  %v4550_v26 = vmax.f32 %v8844_v63, %v8846_v36 }
 0xb04   : > { %v8864_v45 = vpop.f32.mrf.mxu1 }
 0xb05   : > { %v4562_v41 = vmax.f32 %v8862_v47, %v8864_v45 }
 0xb07   : > { %4554 = vmax.xlane.f32.xlu1 %v4553_v44  ;;  %4563 = vmax.xlane.f32.xlu0 %v4562_v41  ;;  %v4541_v44 = vmax.f32 %v8832_v8, %v8834_v31  ;;  %v4538_v41 = vmax.f32 %v8828_v17, %v8830_v10 }
 0xb0b   : > { %4548 = vmax.xlane.f32.xlu1 %v4547_v39  ;;  %4557 = vmax.xlane.f32.xlu0 %v4556_v57  ;;  %v4535_v39 = vmax.f32 %v8822_v29, %v8824_v59  ;;  %v4532_v57 = vmax.f32 %v8814_v40, %v8816_v52 }
 0xb0f   : > { %4551 = vmax.xlane.f32.xlu0 %v4550_v26  ;;  %v4529_v26 = vmax.f32 %v8806_v37, %v8808_v4 }
 0xb13   : > { %4545 = vmax.xlane.f32.xlu0 %v4544_v28  ;;  %v4526_v28 = vmax.f32 %v8798_v61, %v8800_v38 }
 0xb17   : > { %4542 = vmax.xlane.f32.xlu0 %v4541_v44  ;;  %v4523_v44 = vmax.f32 %v8790_v19, %v8792_v43 }
 0xb1b   : > { %4539 = vmax.xlane.f32.xlu0 %v4538_v41  ;;  %v4520_v41 = vmax.f32 %v8782_v5, %v8784_v15 }
 0xb1f   : > { %4536 = vmax.xlane.f32.xlu0 %v4535_v39  ;;  %v4517_v39 = vmax.f32 %v8774_v7, %v8776_v42 }
 0xb23   : > { %4533 = vmax.xlane.f32.xlu0 %v4532_v57 }
 0xb27   : > { %4530 = vmax.xlane.f32.xlu0 %v4529_v26 }
 0xb2b   : > { %4527 = vmax.xlane.f32.xlu0 %v4526_v28 }
 0xb2f   : > { %4524 = vmax.xlane.f32.xlu0 %v4523_v44 }
 0xb33   : > { %4521 = vmax.xlane.f32.xlu0 %v4520_v41 }
 0xb37   : > { %4518 = vmax.xlane.f32.xlu0 %v4517_v39 }
 0xb4c   : > { %v4513_v57 = vpop.xlane.xlu1 %4512 }
 0xb4d   : > { %v4593_v26 = vsub.f32 %v8760_v12, %v4513_v57  ;;  %v4594_v28 = vsub.f32 %v8762_v34, %v4513_v57 }
 0xb4f   : > { %v4685_v15 = vmul.f32 1.442695, %v4593_v26  ;;  %v4687_v5 = vmul.f32 1.442695, %v4594_v28 }
 0xb50   : > { %v4516_v52 = vpop.xlane.xlu0 %4515  ;;  %v4507_v4 = vpop.xlane.xlu1 %4506 }
 0xb51   : > { %v4595_v38 = vsub.f32 %v8766_v62, %v4516_v52  ;;  %v4596_v43 = vsub.f32 %v8768_v54, %v4516_v52  ;;  %v4589_v62 = vsub.f32 %v8752_v51, %v4507_v4  ;;  %v4590_v34 = vsub.f32 %v8754_v55, %v4507_v4 }
 0xb53   : > { %v4689_v44 = vmul.f32 1.442695, %v4595_v38  ;;  %v4691_v19 = vmul.f32 1.442695, %v4596_v43  ;;  %v4677_v38 = vmul.f32 1.442695, %v4589_v62 }
 0xb54   : > { %v4510_v61 = vpop.xlane.xlu0 %4509  ;;  %v4501_v42 = vpop.xlane.xlu1 %4500  ;;  %v4679_v57 = vmul.f32 1.442695, %v4590_v34 }
 0xb55   : > { %v4591_v41 = vsub.f32 %v8756_v16, %v4510_v61  ;;  %v4592_v39 = vsub.f32 %v8758_v49, %v4510_v61  ;;  %6090 = vpow2.f32 %v4689_v44 }
 0xb56   : > { %6092 = vpow2.f32 %v4691_v19  ;;  %v4585_v19 = vsub.f32 %v8744_v18, %v4501_v42 }
 0xb57   : > { %6094 = vpow2.f32 %v4685_v15  ;;  %v4681_v7 = vmul.f32 1.442695, %v4591_v41  ;;  %v4683_v54 = vmul.f32 1.442695, %v4592_v39  ;;  %v4586_v15 = vsub.f32 %v8746_v13, %v4501_v42 }
 0xb58   : > { %v4504_v12 = vpop.xlane.xlu0 %4503  ;;  %6096 = vpow2.f32 %v4687_v5  ;;  %v4495_v52 = vpop.xlane.xlu1 %4494  ;;  %v4669_v4 = vmul.f32 1.442695, %v4585_v19 }
 0xb59   : > { %6098 = vpow2.f32 %v4681_v7  ;;  %v4587_v16 = vsub.f32 %v8748_v23, %v4504_v12  ;;  %v4588_v49 = vsub.f32 %v8750_v0, %v4504_v12  ;;  %v4581_v51 = vsub.f32 %v8736_v6, %v4495_v52 }
 0xb5a   : > { %6100 = vpow2.f32 %v4683_v54  ;;  %v4582_v55 = vsub.f32 %v8738_v35, %v4495_v52  ;;  %v4671_v26 = vmul.f32 1.442695, %v4586_v15 }
 0xb5b   : > { %6102 = vpow2.f32 %v4677_v38  ;;  %v4673_v61 = vmul.f32 1.442695, %v4587_v16  ;;  %v4675_v7 = vmul.f32 1.442695, %v4588_v49  ;;  %v4661_v28 = vmul.f32 1.442695, %v4581_v51 }
 0xb5c   : > { %v4498_v43 = vpop.xlane.xlu0 %4497  ;;  %6104 = vpow2.f32 %v4679_v57  ;;  %v4663_v18 = vmul.f32 1.442695, %v4582_v55  ;;  %v4489_v34 = vpop.xlane.xlu1 %4488 }
 0xb5d   : > { %6106 = vpow2.f32 %v4673_v61  ;;  %v4583_v6 = vsub.f32 %v8740_v50, %v4498_v43  ;;  %v4584_v35 = vsub.f32 %v8742_v33, %v4498_v43 }
 0xb5e   : > { %6108 = vpow2.f32 %v4675_v7 }
 0xb5f   : > { %6110 = vpow2.f32 %v4669_v4 }
 0xb60   : > { %v8909_v5 = vpop.xlane.xlu0 %4491  ;;  %6112 = vpow2.f32 %v4671_v26  ;;  %v4483_v55 = vpop.xlane.xlu1 %4482 }
 0xb61   : > { %6114 = vpow2.f32 %v4661_v28  ;;  %v4580_v61 = vsub.f32 %v8734_v22, %v8909_v5 }
 0xb62   : > { %v8912_v23 = vpop.eup %6090  ;;  %6116 = vpow2.f32 %v4663_v18 }
 0xb63   : > { %v8914_v44 = vpop.eup %6092  ;;  %v4659_v18 = vmul.f32 1.442695, %v4580_v61 }
 0xb64   : > { %v4486_v0 = vpop.xlane.xlu0 %4485  ;;  %v8918_v42 = vpop.eup %6094  ;;  %v4802_v39 = vadd.f32 %v8914_v44, %v8912_v23 }
 0xb65   : > { %v4575_v13 = vsub.f32 %v8724_v58, %v4486_v0  ;;  %v4576_v41 = vsub.f32 %v8726_v48, %v4486_v0  ;;  %v8924_v12 = vpop.eup %6096  ;;  %v4665_v58 = vmul.f32 1.442695, %v4583_v6  ;;  %v4667_v48 = vmul.f32 1.442695, %v4584_v35  ;;  %v4477_v35 = vpop.xlane.xlu1 %4476 }
 0xb66   : > { %4803 = vadd.xlane.f32.xlu1 %v4802_v39  ;;  %v8927_v52 = vpop.eup %6098  ;;  %v4799_v43 = vadd.f32 %v8924_v12, %v8918_v42  ;;  %v4578_v0 = vsub.f32 %v8730_v1, %v4489_v34  ;;  %v9783_v39 = vld [vmem:[#allocation30_spill] sm:$0xff] }
 0xb67   : > { %v4649_v62 = vmul.f32 1.442695, %v4575_v13  ;;  %v4651_v54 = vmul.f32 1.442695, %v4576_v41  ;;  %v8932_v16 = vpop.eup %6100  ;;  %v4573_v13 = vsub.f32 %v8720_v30, %v4483_v55 }
 0xb68   : > { %v4480_v50 = vpop.xlane.xlu0 %4479  ;;  %v4796_v7 = vadd.f32 %v8932_v16, %v8927_v52 }
 0xb69   : > { %v4571_v38 = vsub.f32 %v8716_v14, %v4480_v50  ;;  %v4572_v33 = vsub.f32 %v8718_v46, %v4480_v50  ;;  %6118 = vpow2.f32 %v4649_v62  ;;  %v4579_v14 = vsub.f32 %v8732_v27, %v8909_v5  ;;  %v8938_v46 = vpop.eup %6102 }
 0xb6a   : > { %6120 = vpow2.f32 %v4651_v54  ;;  %4800 = vadd.xlane.f32.xlu1 %v4799_v43  ;;  %v8944_v4 = vpop.eup %6104  ;;  %v4574_v62 = vsub.f32 %v9783_v39, %v4483_v55  ;;  %v4645_v30 = vmul.f32 1.442695, %v4573_v13 }
 0xb6b   : > { %v4641_v57 = vmul.f32 1.442695, %v4571_v38  ;;  %v4643_v49 = vmul.f32 1.442695, %v4572_v33  ;;  %6122 = vpow2.f32 %v4665_v58  ;;  %v8947_v27 = vpop.eup %6106  ;;  %v4793_v22 = vadd.f32 %v8944_v4, %v8938_v46  ;;  %v9784_v33 = vld [vmem:[#allocation26_spill] sm:$0xff] }
 0xb6c   : > { %v4474_v19 = vpop.xlane.xlu0 %4473  ;;  %6124 = vpow2.f32 %v4667_v48  ;;  %v8952_v5 = vpop.eup %6108  ;;  %v4647_v48 = vmul.f32 1.442695, %v4574_v62  ;;  %v4569_v43 = vsub.f32 %v9784_v33, %v4477_v35 }
 0xb6d   : > { %v4567_v15 = vsub.f32 %v8708_v2, %v4474_v19  ;;  %v4568_v51 = vsub.f32 %v8710_v11, %v4474_v19  ;;  %6126 = vpow2.f32 %v4641_v57  ;;  %v4577_v2 = vsub.f32 %v8728_v24, %v4489_v34  ;;  %v8954_v6 = vpop.eup %6110 }
 0xb6e   : > { %6128 = vpow2.f32 %v4643_v49  ;;  %4797 = vadd.xlane.f32.xlu1 %v4796_v7  ;;  %v4657_v11 = vmul.f32 1.442695, %v4579_v14  ;;  %v8957_v24 = vpop.eup %6112  ;;  %v4655_v34 = vmul.f32 1.442695, %v4578_v0  ;;  %v4790_v54 = vadd.f32 %v8952_v5, %v8947_v27  ;;  %v9785_v49 = vld [vmem:[#allocation28_spill] sm:$0xff]  ;;  %v4471_v14 = vpop.xlane.xlu1 %4470 }
 0xb6f   : > { %v4633_v26 = vmul.f32 1.442695, %v4567_v15  ;;  %v4635_v28 = vmul.f32 1.442695, %v4568_v51  ;;  %v4653_v41 = vmul.f32 1.442695, %v4577_v2  ;;  %v8960_v1 = vpop.eup %6114  ;;  %v4570_v19 = vsub.f32 %v9785_v49, %v4477_v35 }
 0xb70   : > { %v8964_v50 = vpop.eup %6116  ;;  %v4787_v15 = vadd.f32 %v8957_v24, %v8954_v6 }
 0xb71   : > { %6130 = vpow2.f32 %v4633_v26  ;;  %v4637_v26 = vmul.f32 1.442695, %v4569_v43  ;;  %v4639_v0 = vmul.f32 1.442695, %v4570_v19 }
 0xb72   : > { %6132 = vpow2.f32 %v4635_v28  ;;  %4794 = vadd.xlane.f32.xlu1 %v4793_v22  ;;  %v9786_v28 = vld [vmem:[#allocation24_spill] sm:$0xff] }
 0xb73   : > { %6134 = vpow2.f32 %v4657_v11  ;;  %v4565_v2 = vsub.f32 %v9786_v28, %v4471_v14 }
 0xb74   : > { %6136 = vpow2.f32 %v4659_v18  ;;  %v9788_v18 = vld [vmem:[#allocation29_spill] sm:$0xff] }
 0xb75   : > { %6138 = vpow2.f32 %v4653_v41  ;;  %v4566_v22 = vsub.f32 %v9788_v18, %v4471_v14  ;;  %v4629_v62 = vmul.f32 1.442695, %v4565_v2 }
 0xb76   : > { %v8966_v58 = vpop.eup %6118  ;;  %4791 = vadd.xlane.f32.xlu1 %v4790_v54  ;;  %6140 = vpow2.f32 %v4655_v34 }
 0xb77   : > { %v8968_v38 = vpop.eup %6120  ;;  %6142 = vpow2.f32 %v4645_v30  ;;  %v4631_v54 = vmul.f32 1.442695, %v4566_v22  ;;  %v4781_v30 = vadd.f32 %v8964_v50, %v8960_v1 }
 0xb78   : > { %v8971_v57 = vpop.eup %6122  ;;  %v4772_v51 = vadd.f32 %v8968_v38, %v8966_v58  ;;  %6144 = vpow2.f32 %v4647_v48 }
 0xb79   : > { %v8978_v55 = vpop.eup %6124  ;;  %6146 = vpow2.f32 %v4637_v26 }
 0xb7a   : > { %v8980_v61 = vpop.eup %6126  ;;  %4788 = vadd.xlane.f32.xlu1 %v4787_v15  ;;  %4773 = vadd.xlane.f32.xlu0 %v4772_v51  ;;  %v4784_v13 = vadd.f32 %v8978_v55, %v8971_v57  ;;  %6148 = vpow2.f32 %v4639_v0 }
 0xb7b   : > { %v8982_v7 = vpop.eup %6128  ;;  %6150 = vpow2.f32 %v4629_v62 }
 0xb7c   : > { %v4766_v35 = vadd.f32 %v8982_v7, %v8980_v61  ;;  %6152 = vpow2.f32 %v4631_v54  ;;  %v9789_v54 = vld [vmem:[#allocation55_spill] sm:$0xff] }
 0xb7e   : > { %v8985_v11 = vpop.eup %6130  ;;  %4785 = vadd.xlane.f32.xlu1 %v4784_v13  ;;  %4767 = vadd.xlane.f32.xlu0 %v4766_v35 }
 0xb7f   : > { %9787 = vst [vmem:[#allocation66_spill] sm:$0xff] %v8985_v11  ;;  %v8992_v41 = vpop.eup %6132 }
 0xb80   : > { %v4760_v39 = vadd.f32 %v8992_v41, %v8985_v11  ;;  %v8996_v34 = vpop.eup %6134 }
 0xb81   : > { %v9000_v48 = vpop.eup %6136 }
 0xb82   : > { %4782 = vadd.xlane.f32.xlu1 %v4781_v30  ;;  %4761 = vadd.xlane.f32.xlu0 %v4760_v39  ;;  %v9002_v33 = vpop.eup %6138  ;;  %v4778_v43 = vadd.f32 %v9000_v48, %v8996_v34 }
 0xb83   : > { %v9006_v49 = vpop.eup %6140 }
 0xb84   : > { %v9008_v19 = vpop.eup %6142  ;;  %v4775_v15 = vadd.f32 %v9006_v49, %v9002_v33 }
 0xb85   : > { %v9010_v14 = vpop.eup %6144 }
 0xb86   : > { %4779 = vadd.xlane.f32.xlu1 %v4778_v43  ;;  %v9016_v2 = vpop.eup %6146  ;;  %v4769_v0 = vadd.f32 %v9010_v14, %v9008_v19 }
 0xb87   : > { %v9020_v18 = vpop.eup %6148 }
 0xb8a   : > { %4776 = vadd.xlane.f32.xlu1 %v4775_v15  ;;  %v4763_v15 = vadd.f32 %v9020_v18, %v9016_v2 }
 0xb8c   : > { %v4561_v51 = vpop.xlane.xlu1 %4560 }
 0xb8d   : > { %v4625_v26 = vsub.f32 %v8856_v32, %v4561_v51  ;;  %v4626_v28 = vsub.f32 %v8858_v21, %v4561_v51  ;;  %v9025_v21 = vpop.eup %6150 }
 0xb8e   : > { %4770 = vadd.xlane.f32.xlu1 %v4769_v0  ;;  %v9030_v51 = vpop.eup %6152 }
 0xb8f   : > { %v4749_v22 = vmul.f32 1.442695, %v4625_v26  ;;  %v4751_v13 = vmul.f32 1.442695, %v4626_v28 }
 0xb90   : > { %v4555_v35 = vpop.xlane.xlu1 %4554  ;;  %v4564_v39 = vpop.xlane.xlu0 %4563 }
 0xb91   : > { %6154 = vpow2.f32 %v4749_v22  ;;  %v4621_v62 = vsub.f32 %v8848_v9, %v4555_v35  ;;  %v4622_v30 = vsub.f32 %v9789_v54, %v4555_v35  ;;  %v4627_v32 = vsub.f32 %v8862_v47, %v4564_v39 }
 0xb92   : > { %6156 = vpow2.f32 %v4751_v13  ;;  %v4628_v43 = vsub.f32 %v8864_v45, %v4564_v39  ;;  %4764 = vadd.xlane.f32.xlu1 %v4763_v15  ;;  %v4757_v39 = vadd.f32 %v9030_v51, %v9025_v21 }
 0xb93   : > { %v4741_v26 = vmul.f32 1.442695, %v4621_v62  ;;  %v4743_v28 = vmul.f32 1.442695, %v4622_v30  ;;  %v4753_v0 = vmul.f32 1.442695, %v4627_v32 }
 0xb94   : > { %v4755_v22 = vmul.f32 1.442695, %v4628_v43  ;;  %v4549_v9 = vpop.xlane.xlu1 %4548  ;;  %v4558_v11 = vpop.xlane.xlu0 %4557 }
 0xb95   : > { %6158 = vpow2.f32 %v4741_v26  ;;  %v4617_v47 = vsub.f32 %v8840_v3, %v4549_v9  ;;  %v4618_v35 = vsub.f32 %v8842_v25, %v4549_v9  ;;  %v4623_v13 = vsub.f32 %v8852_v20, %v4558_v11 }
 0xb96   : > { %6160 = vpow2.f32 %v4743_v28  ;;  %v4624_v45 = vsub.f32 %v8854_v53, %v4558_v11  ;;  %4758 = vadd.xlane.f32.xlu1 %v4757_v39 }
 0xb97   : > { %6162 = vpow2.f32 %v4753_v0  ;;  %v4733_v62 = vmul.f32 1.442695, %v4617_v47  ;;  %v4735_v54 = vmul.f32 1.442695, %v4618_v35  ;;  %v4745_v30 = vmul.f32 1.442695, %v4623_v13 }
 0xb98   : > { %6164 = vpow2.f32 %v4755_v22  ;;  %v4747_v32 = vmul.f32 1.442695, %v4624_v45  ;;  %v4552_v43 = vpop.xlane.xlu0 %4551 }
 0xb99   : > { %6166 = vpow2.f32 %v4733_v62  ;;  %v4619_v3 = vsub.f32 %v8844_v63, %v4552_v43  ;;  %v4620_v25 = vsub.f32 %v8846_v36, %v4552_v43 }
 0xb9a   : > { %6168 = vpow2.f32 %v4735_v54 }
 0xb9b   : > { %6170 = vpow2.f32 %v4745_v30  ;;  %v4737_v20 = vmul.f32 1.442695, %v4619_v3  ;;  %v4739_v53 = vmul.f32 1.442695, %v4620_v25 }
 0xb9c   : > { %6172 = vpow2.f32 %v4747_v32  ;;  %v4546_v11 = vpop.xlane.xlu0 %4545 }
 0xb9d   : > { %6174 = vpow2.f32 %v4737_v20  ;;  %v4615_v15 = vsub.f32 %v8836_v60, %v4546_v11  ;;  %v4616_v26 = vsub.f32 %v8838_v56, %v4546_v11 }
 0xb9e   : > { %v9042_v28 = vpop.eup %6154  ;;  %6176 = vpow2.f32 %v4739_v53 }
 0xb9f   : > { %v9044_v0 = vpop.eup %6156  ;;  %v4729_v22 = vmul.f32 1.442695, %v4615_v15  ;;  %v4731_v63 = vmul.f32 1.442695, %v4616_v26 }
 0xba0   : > { %v4543_v9 = vpop.xlane.xlu0 %4542  ;;  %v4847_v36 = vadd.f32 %v9044_v0, %v9042_v28 }
 0xba1   : > { %6178 = vpow2.f32 %v4729_v22  ;;  %v4613_v47 = vsub.f32 %v8832_v8, %v4543_v9  ;;  %v4614_v35 = vsub.f32 %v8834_v31, %v4543_v9 }
 0xba2   : > { %v9050_v13 = vpop.eup %6158  ;;  %6180 = vpow2.f32 %v4731_v63  ;;  %4848 = vadd.xlane.f32.xlu1 %v4847_v36 }
 0xba3   : > { %v9052_v60 = vpop.eup %6160  ;;  %v4725_v56 = vmul.f32 1.442695, %v4613_v47  ;;  %v4727_v45 = vmul.f32 1.442695, %v4614_v35 }
 0xba4   : > { %v9054_v39 = vpop.eup %6162  ;;  %v4540_v62 = vpop.xlane.xlu0 %4539  ;;  %v4841_v54 = vadd.f32 %v9052_v60, %v9050_v13 }
 0xba5   : > { %v9058_v30 = vpop.eup %6164  ;;  %6182 = vpow2.f32 %v4725_v56  ;;  %v4611_v8 = vsub.f32 %v8828_v17, %v4540_v62  ;;  %v4612_v31 = vsub.f32 %v8830_v10, %v4540_v62 }
 0xba6   : > { %v9062_v32 = vpop.eup %6166  ;;  %6184 = vpow2.f32 %v4727_v45  ;;  %4842 = vadd.xlane.f32.xlu1 %v4841_v54  ;;  %v4850_v43 = vadd.f32 %v9058_v30, %v9054_v39 }
 0xba7   : > { %v9066_v3 = vpop.eup %6168  ;;  %v4721_v25 = vmul.f32 1.442695, %v4611_v8  ;;  %v4723_v20 = vmul.f32 1.442695, %v4612_v31 }
 0xba8   : > { %v9068_v53 = vpop.eup %6170  ;;  %4851 = vadd.xlane.f32.xlu0 %v4850_v43  ;;  %v4537_v11 = vpop.xlane.xlu0 %4536  ;;  %v4835_v17 = vadd.f32 %v9066_v3, %v9062_v32 }
 0xba9   : > { %v9072_v15 = vpop.eup %6172  ;;  %6186 = vpow2.f32 %v4721_v25  ;;  %v4609_v10 = vsub.f32 %v8822_v29, %v4537_v11  ;;  %v4610_v26 = vsub.f32 %v8824_v59, %v4537_v11  ;;  %v9790_v59 = vld [vmem:[#allocation53_spill] sm:$0xff]  ;;  %v9791_v11 = vld [vmem:[#allocation52_spill] sm:$0xff] }
 0xbaa   : > { %v9076_v22 = vpop.eup %6174  ;;  %6188 = vpow2.f32 %v4723_v20  ;;  %4836 = vadd.xlane.f32.xlu1 %v4835_v17  ;;  %v4844_v63 = vadd.f32 %v9072_v15, %v9068_v53 }
 0xbab   : > { %v9080_v9 = vpop.eup %6176  ;;  %v4717_v36 = vmul.f32 1.442695, %v4609_v10  ;;  %v4719_v47 = vmul.f32 1.442695, %v4610_v26 }
 0xbac   : > { %4845 = vadd.xlane.f32.xlu0 %v4844_v63  ;;  %v4534_v35 = vpop.xlane.xlu0 %4533  ;;  %v4838_v56 = vadd.f32 %v9080_v9, %v9076_v22 }
 0xbad   : > { %6190 = vpow2.f32 %v4717_v36  ;;  %v4607_v29 = vsub.f32 %v8814_v40, %v4534_v35  ;;  %v4608_v45 = vsub.f32 %v9790_v59, %v4534_v35  ;;  %v9792_v35 = vld [vmem:[#allocation51_spill] sm:$0xff] }
 0xbae   : > { %v9086_v62 = vpop.eup %6178  ;;  %6192 = vpow2.f32 %v4719_v47 }
 0xbaf   : > { %v9088_v54 = vpop.eup %6180  ;;  %v4713_v8 = vmul.f32 1.442695, %v4607_v29  ;;  %v4715_v31 = vmul.f32 1.442695, %v4608_v45  ;;  %v9793_v29 = vld [vmem:[#allocation67_spill] sm:$0xff] }
 0xbb0   : > { %4839 = vadd.xlane.f32.xlu0 %v4838_v56  ;;  %v4531_v43 = vpop.xlane.xlu0 %4530  ;;  %v4832_v25 = vadd.f32 %v9088_v54, %v9086_v62 }
 0xbb1   : > { %6194 = vpow2.f32 %v4713_v8  ;;  %v4605_v20 = vsub.f32 %v8806_v37, %v4531_v43  ;;  %v4606_v17 = vsub.f32 %v9791_v11, %v4531_v43 }
 0xbb2   : > { %v9094_v40 = vpop.eup %6182  ;;  %6196 = vpow2.f32 %v4715_v31 }
 0xbb3   : > { %v9096_v10 = vpop.eup %6184  ;;  %v4709_v26 = vmul.f32 1.442695, %v4605_v20  ;;  %v4711_v63 = vmul.f32 1.442695, %v4606_v17  ;;  %v9796_v20 = vld [vmem:[#allocation46_spill] sm:$0xff]  ;;  %v9797_v17 = vld [vmem:[#allocation68_spill] sm:$0xff] }
 0xbb4   : > { %4833 = vadd.xlane.f32.xlu0 %v4832_v25  ;;  %v4528_v36 = vpop.xlane.xlu0 %4527  ;;  %v4829_v47 = vadd.f32 %v9096_v10, %v9094_v40 }
 0xbb5   : > { %6198 = vpow2.f32 %v4709_v26  ;;  %v4603_v56 = vsub.f32 %v9792_v35, %v4528_v36  ;;  %v4604_v59 = vsub.f32 %v9793_v29, %v4528_v36 }
 0xbb6   : > { %v9102_v37 = vpop.eup %6186  ;;  %6200 = vpow2.f32 %v4711_v63  ;;  %4830 = vadd.xlane.f32.xlu1 %v4829_v47 }
 0xbb7   : > { %9794 = vst [vmem:[#allocation50_spill] sm:$0xff] %v9102_v37  ;;  %v9104_v45 = vpop.eup %6188  ;;  %v4705_v8 = vmul.f32 1.442695, %v4603_v56  ;;  %v4707_v31 = vmul.f32 1.442695, %v4604_v59  ;;  %v9800_v59 = vld [vmem:[#allocation45_spill] sm:$0xff] }
 0xbb8   : > { %9795 = vst [vmem:[#allocation36_spill] sm:$0xff] %v9104_v45  ;;  %v4525_v43 = vpop.xlane.xlu0 %4524  ;;  %v4826_v25 = vadd.f32 %v9104_v45, %v9102_v37 }
 0xbb9   : > { %6202 = vpow2.f32 %v4705_v8  ;;  %v4601_v11 = vsub.f32 %v9796_v20, %v4525_v43  ;;  %v4602_v26 = vsub.f32 %v9797_v17, %v4525_v43  ;;  %v9801_v8 = vld [vmem:[#allocation33_spill] sm:$0xff] }
 0xbba   : > { %v9110_v35 = vpop.eup %6190  ;;  %6204 = vpow2.f32 %v4707_v31  ;;  %4827 = vadd.xlane.f32.xlu0 %v4826_v25 }
 0xbbb   : > { %9798 = vst [vmem:[#allocation65_spill] sm:$0xff] %v9110_v35  ;;  %v9112_v36 = vpop.eup %6192  ;;  %v4701_v63 = vmul.f32 1.442695, %v4601_v11  ;;  %v4703_v47 = vmul.f32 1.442695, %v4602_v26  ;;  %v9802_v26 = vld [vmem:[#allocation31_spill] sm:$0xff] }
 0xbbc   : > { %9799 = vst [vmem:[#allocation64_spill] sm:$0xff] %v9112_v36  ;;  %v4522_v29 = vpop.xlane.xlu0 %4521  ;;  %v4823_v56 = vadd.f32 %v9112_v36, %v9110_v35 }
 0xbbd   : > { %6206 = vpow2.f32 %v4701_v63  ;;  %v4599_v37 = vsub.f32 %v9800_v59, %v4522_v29  ;;  %v4600_v45 = vsub.f32 %v9801_v8, %v4522_v29  ;;  %v9803_v63 = vld [vmem:[#allocation47_spill] sm:$0xff] }
 0xbbe   : > { %v9118_v20 = vpop.eup %6194  ;;  %6208 = vpow2.f32 %v4703_v47  ;;  %4824 = vadd.xlane.f32.xlu1 %v4823_v56 }
 0xbbf   : > { %v9120_v43 = vpop.eup %6196  ;;  %v4697_v31 = vmul.f32 1.442695, %v4599_v37  ;;  %v4699_v25 = vmul.f32 1.442695, %v4600_v45 }
 0xbc0   : > { %v4519_v17 = vpop.xlane.xlu0 %4518  ;;  %v4820_v11 = vadd.f32 %v9120_v43, %v9118_v20 }
 0xbc1   : > { %6210 = vpow2.f32 %v4697_v31  ;;  %v4597_v35 = vsub.f32 %v9802_v26, %v4519_v17  ;;  %v4598_v36 = vsub.f32 %v9803_v63, %v4519_v17 }
 0xbc2   : > { %v9126_v59 = vpop.eup %6198  ;;  %6212 = vpow2.f32 %v4699_v25  ;;  %4821 = vadd.xlane.f32.xlu0 %v4820_v11 }
 0xbc3   : > { %v9128_v29 = vpop.eup %6200  ;;  %v4693_v47 = vmul.f32 1.442695, %v4597_v35  ;;  %v4695_v56 = vmul.f32 1.442695, %v4598_v36 }
 0xbc4   : > { %v4817_v37 = vadd.f32 %v9128_v29, %v9126_v59 }
 0xbc5   : > { %6214 = vpow2.f32 %v4693_v47 }
 0xbc6   : > { %v9132_v45 = vpop.eup %6202  ;;  %6216 = vpow2.f32 %v4695_v56  ;;  %4818 = vadd.xlane.f32.xlu1 %v4817_v37 }
 0xbc7   : > { %9804 = vst [vmem:[#allocation63_spill] sm:$0xff] %v9132_v45  ;;  %v9134_v8 = vpop.eup %6204 }
 0xbc8   : > { %v4814_v31 = vadd.f32 %v9134_v8, %v9132_v45 }
 0xbca   : > { %v9138_v17 = vpop.eup %6206  ;;  %4815 = vadd.xlane.f32.xlu0 %v4814_v31 }
 0xbcb   : > { %9805 = vst [vmem:[#allocation49_spill] sm:$0xff] %v9138_v17  ;;  %v9140_v25 = vpop.eup %6208 }
 0xbcc   : > { %9806 = vst [vmem:[#allocation62_spill] sm:$0xff] %v9140_v25  ;;  %v4811_v35 = vadd.f32 %v9140_v25, %v9138_v17 }
 0xbce   : > { %v9144_v36 = vpop.eup %6210  ;;  %4812 = vadd.xlane.f32.xlu1 %v4811_v35 }
 0xbcf   : > { %9807 = vst [vmem:[#allocation40_spill] sm:$0xff] %v9144_v36  ;;  %v9146_v11 = vpop.eup %6212 }
 0xbd0   : > { %9808 = vst [vmem:[#allocation61_spill] sm:$0xff] %v9146_v11  ;;  %v4808_v26 = vadd.f32 %v9146_v11, %v9144_v36 }
 0xbd2   : > { %v9150_v63 = vpop.eup %6214  ;;  %4809 = vadd.xlane.f32.xlu0 %v4808_v26 }
 0xbd3   : > { %9809 = vst [vmem:[#allocation60_spill] sm:$0xff] %v9150_v63  ;;  %v9152_v47 = vpop.eup %6216 }
 0xbd4   : > { %v4805_v56 = vadd.f32 %v9152_v47, %v9150_v63 }
 0xbd6   : > { %4806 = vadd.xlane.f32.xlu1 %v4805_v56 }
 0xbef   : > { %v4804_v37 = vpop.xlane.xlu1 %4803 }
 0xbf0   : > { %6218 = vrcp.f32 %v4804_v37 }
 0xbf3   : > { %v4801_v31 = vpop.xlane.xlu1 %4800 }
 0xbf4   : > { %6220 = vrcp.f32 %v4801_v31 }
 0xbf7   : > { %v4798_v17 = vpop.xlane.xlu1 %4797 }
 0xbf8   : > { %6222 = vrcp.f32 %v4798_v17 }
 0xbfb   : > { %v4795_v35 = vpop.xlane.xlu1 %4794 }
 0xbfc   : > { %6224 = vrcp.f32 %v4795_v35 }
 0xbfd   : > { %v6219_v25 = vpop.eup %6218 }
 0xbfe   : > { %v4916_v36 = vmul.f32 %v6219_v25, %v8914_v44  ;;  %v4915_v11 = vmul.f32 %v6219_v25, %v8912_v23 }
 0xbff   : > { %v4792_v26 = vpop.xlane.xlu1 %4791 }
 0xc00   : > { %6226 = vrcp.f32 %v4792_v26  ;;  %4949 = vmatprep.subr.mxu0 %v4916_v36 }
 0xc01   : > { %v6221_v45 = vpop.eup %6220  ;;  %4950 = vmatpush1.xpose.msra.mxu0 %v4915_v11 }
 0xc02   : > { %v4914_v56 = vmul.f32 %v6221_v45, %v8924_v12  ;;  %v4913_v37 = vmul.f32 %v6221_v45, %v8918_v42 }
 0xc03   : > { %v4789_v63 = vpop.xlane.xlu1 %4788 }
 0xc04   : > { %6228 = vrcp.f32 %v4789_v63  ;;  %4951 = vmatprep.subr.mxu0 %v4914_v56 }
 0xc05   : > { %v6223_v17 = vpop.eup %6222  ;;  %4952 = vmatpush1.xpose.msra.mxu0 %v4913_v37 }
 0xc06   : > { %v4912_v31 = vmul.f32 %v6223_v17, %v8932_v16  ;;  %v4911_v44 = vmul.f32 %v6223_v17, %v8927_v52  ;;  %v4774_v52 = vpop.xlane.xlu0 %4773 }
 0xc07   : > { %v4786_v35 = vpop.xlane.xlu1 %4785 }
 0xc08   : > { %6230 = vrcp.f32 %v4786_v35  ;;  %4953 = vmatprep.subr.mxu0 %v4912_v31 }
 0xc09   : > { %v6225_v23 = vpop.eup %6224  ;;  %4954 = vmatpush1.xpose.msra.mxu0 %v4911_v44 }
 0xc0a   : > { %v4910_v25 = vmul.f32 %v6225_v23, %v8944_v4  ;;  %v4909_v12 = vmul.f32 %v6225_v23, %v8938_v46  ;;  %v4768_v31 = vpop.xlane.xlu0 %4767 }
 0xc0b   : > { %v4783_v36 = vpop.xlane.xlu1 %4782 }
 0xc0c   : > { %6232 = vrcp.f32 %v4783_v36  ;;  %4955 = vmatprep.subr.mxu0 %v4910_v25 }
 0xc0d   : > { %v6227_v42 = vpop.eup %6226  ;;  %4956 = vmatpush1.xpose.msra.mxu0 %v4909_v12 }
 0xc0e   : > { %v4908_v45 = vmul.f32 %v6227_v42, %v8952_v5  ;;  %v4907_v16 = vmul.f32 %v6227_v42, %v8947_v27  ;;  %v4762_v12 = vpop.xlane.xlu0 %4761 }
 0xc0f   : > { %v4780_v11 = vpop.xlane.xlu1 %4779 }
 0xc10   : > { %6234 = vrcp.f32 %v4780_v11  ;;  %4957 = vmatprep.subr.mxu0 %v4908_v45 }
 0xc11   : > { %v6229_v63 = vpop.eup %6228  ;;  %4958 = vmatpush1.xpose.msra.mxu0 %v4907_v16  ;;  %6236 = vrcp.f32 %v4774_v52 }
 0xc12   : > { %v4906_v26 = vmul.f32 %v6229_v63, %v8957_v24  ;;  %v4905_v4 = vmul.f32 %v6229_v63, %v8954_v6 }
 0xc13   : > { %v4777_v46 = vpop.xlane.xlu1 %4776 }
 0xc14   : > { %6238 = vrcp.f32 %v4777_v46  ;;  %4959 = vmatprep.subr.mxu0 %v4906_v26 }
 0xc15   : > { %v6231_v56 = vpop.eup %6230  ;;  %4960 = vmatpush1.xpose.msra.mxu0 %v4905_v4 }
 0xc16   : > { %v4904_v5 = vmul.f32 %v6231_v56, %v8978_v55  ;;  %v4903_v27 = vmul.f32 %v6231_v56, %v8971_v57  ;;  %v9810_v56 = vld [vmem:[#allocation66_spill] sm:$0xff] }
 0xc17   : > { %v4771_v37 = vpop.xlane.xlu1 %4770 }
 0xc18   : > { %6240 = vrcp.f32 %v4771_v37  ;;  %4961 = vmatprep.subr.mxu0 %v4904_v5 }
 0xc19   : > { %v6233_v17 = vpop.eup %6232  ;;  %4962 = vmatpush1.xpose.msra.mxu0 %v4903_v27  ;;  %6242 = vrcp.f32 %v4768_v31 }
 0xc1a   : > { %v4902_v24 = vmul.f32 %v6233_v17, %v8964_v50  ;;  %v4901_v6 = vmul.f32 %v6233_v17, %v8960_v1 }
 0xc1b   : > { %v4765_v35 = vpop.xlane.xlu1 %4764 }
 0xc1c   : > { %4963 = vmatprep.subr.mxu0 %v4902_v24  ;;  %6244 = vrcp.f32 %v4765_v35 }
 0xc1d   : > { %v6235_v44 = vpop.eup %6234  ;;  %4964 = vmatpush1.xpose.msra.mxu0 %v4901_v6  ;;  %6246 = vrcp.f32 %v4762_v12 }
 0xc1e   : > { %v4900_v23 = vmul.f32 %v6235_v44, %v9000_v48  ;;  %v4899_v55 = vmul.f32 %v6235_v44, %v8996_v34  ;;  %v6237_v57 = vpop.eup %6236 }
 0xc1f   : > { %v4896_v1 = vmul.f32 %v6237_v57, %v8968_v38  ;;  %v4759_v45 = vpop.xlane.xlu1 %4758  ;;  %v4895_v34 = vmul.f32 %v6237_v57, %v8966_v58 }
 0xc20   : > { %4965 = vmatprep.subr.mxu0 %v4900_v23  ;;  %6248 = vrcp.f32 %v4759_v45 }
 0xc21   : > { %v6239_v25 = vpop.eup %6238  ;;  %4966 = vmatpush1.xpose.msra.mxu0 %v4899_v55 }
 0xc22   : > { %v4898_v36 = vmul.f32 %v6239_v25, %v9006_v49  ;;  %v4897_v50 = vmul.f32 %v6239_v25, %v9002_v33 }
 0xc24   : > { %4967 = vmatprep.subr.mxu0 %v4898_v36 }
 0xc25   : > { %v6241_v42 = vpop.eup %6240  ;;  %4968 = vmatpush1.xpose.msra.mxu0 %v4897_v50 }
 0xc26   : > { %4969 = vmatprep.subr.mxu0 %v4896_v1  ;;  %v4894_v48 = vmul.f32 %v6241_v42, %v9010_v14  ;;  %v6243_v16 = vpop.eup %6242  ;;  %v4893_v49 = vmul.f32 %v6241_v42, %v9008_v19 }
 0xc27   : > { %v4892_v33 = vmul.f32 %v6243_v16, %v8982_v7  ;;  %v4891_v63 = vmul.f32 %v6243_v16, %v8980_v61 }
 0xc29   : > { %4970 = vmatpush1.xpose.msra.mxu0 %v4895_v34  ;;  %v6245_v52 = vpop.eup %6244 }
 0xc2a   : > { %4971 = vmatprep.subr.mxu0 %v4894_v48  ;;  %v4890_v58 = vmul.f32 %v6245_v52, %v9020_v18  ;;  %v6247_v26 = vpop.eup %6246  ;;  %v4889_v4 = vmul.f32 %v6245_v52, %v9016_v2 }
 0xc2b   : > { %v4849_v11 = vpop.xlane.xlu1 %4848  ;;  %v4888_v19 = vmul.f32 %v6247_v26, %v8992_v41  ;;  %v4887_v5 = vmul.f32 %v6247_v26, %v9810_v56 }
 0xc2c   : > { %6250 = vrcp.f32 %v4849_v11 }
 0xc2d   : > { %4972 = vmatpush1.xpose.msra.mxu0 %v4893_v49  ;;  %v6249_v7 = vpop.eup %6248  ;;  %v9812_v49 = vld [vmem:[#allocation50_spill] sm:$0xff] }
 0xc2e   : > { %4973 = vmatprep.subr.mxu0 %v4892_v33  ;;  %v4886_v61 = vmul.f32 %v6249_v7, %v9030_v51  ;;  %v4885_v18 = vmul.f32 %v6249_v7, %v9025_v21 }
 0xc2f   : > { %v4843_v46 = vpop.xlane.xlu1 %4842 }
 0xc31   : > { %v4852_v38 = vpop.xlane.xlu0 %4851  ;;  %4974 = vmatpush1.xpose.msra.mxu0 %v4891_v63 }
 0xc32   : > { %6252 = vrcp.f32 %v4852_v38  ;;  %4975 = vmatprep.subr.mxu0 %v4890_v58  ;;  %v9814_v38 = vld [vmem:[#allocation65_spill] sm:$0xff] }
 0xc33   : > { %v4837_v17 = vpop.xlane.xlu1 %4836 }
 0xc35   : > { %v4846_v14 = vpop.xlane.xlu0 %4845  ;;  %4976 = vmatpush1.xpose.msra.mxu0 %v4889_v4 }
 0xc36   : > { %6254 = vrcp.f32 %v4846_v14  ;;  %4977 = vmatprep.subr.mxu0 %v4888_v19 }
 0xc37   : > { %6256 = vrcp.f32 %v4843_v46 }
 0xc39   : > { %v4840_v27 = vpop.xlane.xlu0 %4839  ;;  %4978 = vmatpush1.xpose.msra.mxu0 %v4887_v5  ;;  %v6251_v37 = vpop.eup %6250 }
 0xc3a   : > { %4979 = vmatprep.subr.mxu0 %v4886_v61  ;;  %6258 = vrcp.f32 %v4840_v27  ;;  %v4946_v24 = vmul.f32 %v6251_v37, %v9044_v0  ;;  %v4945_v44 = vmul.f32 %v6251_v37, %v9042_v28  ;;  %v9816_v61 = vld [vmem:[#allocation62_spill] sm:$0xff] }
 0xc3b   : > { %6260 = vrcp.f32 %v4837_v17 }
 0xc3d   : > { %4980 = vmatpush1.xpose.msra.mxu0 %v4885_v18  ;;  %v4834_v51 = vpop.xlane.xlu0 %4833 }
 0xc3e   : > { %6262 = vrcp.f32 %v4834_v51  ;;  %v9822_v51 = vld [vmem:[#allocation17_spill] sm:$0xff] }
 0xc3f   : > { %v6253_v2 = vpop.eup %6252  ;;  %v4831_v23 = vpop.xlane.xlu1 %4830 }
 0xc40   : > { %v4948_v41 = vmul.f32 %v6253_v2, %v9058_v30  ;;  %v4947_v31 = vmul.f32 %v6253_v2, %v9054_v39  ;;  %6264 = vrcp.f32 %v4831_v23  ;;  %v9826_v23 = vld [vmem:[#allocation18_spill] sm:$0xff] }
 0xc42   : > { %4981 = vmatprep.subr.mxu0 %v4948_v41 }
 0xc43   : > { %v6255_v6 = vpop.eup %6254  ;;  %4982 = vmatpush2.xpose.msra.mxu0 %v4947_v31  ;;  %v4828_v0 = vpop.xlane.xlu0 %4827  ;;  %v9820_v31 = vld [vmem:[#allocation60_spill] sm:$0xff] }
 0xc44   : > { %4983 = vmatprep.subr.mxu0 %v4946_v24  ;;  %v4944_v21 = vmul.f32 %v6255_v6, %v9072_v15  ;;  %v6257_v35 = vpop.eup %6256  ;;  %v4943_v30 = vmul.f32 %v6255_v6, %v9068_v53  ;;  %6266 = vrcp.f32 %v4828_v0  ;;  %v9821_v6 = vld [vmem:[#allocation44_spill] sm:$0xff]  ;;  %v6345_v0 = vmov 0  }
 0xc45   : > { %v4942_v39 = vmul.f32 %v6257_v35, %v9052_v60  ;;  %v4941_v57 = vmul.f32 %v6257_v35, %v9050_v13  ;;  %v9825_v35 = vld [vmem:[#allocation19_spill] sm:$0xff]  ;;  %5513 = vset.pattern.permute.xlu1 %v6345_v0  ;;  %5512 = vset.pattern.permute.xlu0 %v6345_v0 }
 0xc47   : > { %4984 = vmatpush2.xpose.msra.mxu0 %v4945_v44  ;;  %v6259_v55 = vpop.eup %6258  ;;  %v4825_v15 = vpop.xlane.xlu1 %4824  ;;  %v9823_v44 = vld [vmem:[#allocation15_spill] sm:$0xff] }
 0xc48   : > { %4985 = vmatprep.subr.mxu0 %v4944_v21  ;;  %v4940_v28 = vmul.f32 %v6259_v55, %v9080_v9  ;;  %v6261_v25 = vpop.eup %6260  ;;  %v4939_v12 = vmul.f32 %v6259_v55, %v9076_v22  ;;  %6268 = vrcp.f32 %v4825_v15  ;;  %v9824_v21 = vld [vmem:[#allocation16_spill] sm:$0xff]  ;;  %v5082_v55 = vld [vmem:[%s9335_s3] sm:$0xff] }
 0xc49   : > { %v4938_v53 = vmul.f32 %v6261_v25, %v9066_v3  ;;  %v4937_v50 = vmul.f32 %v6261_v25, %v9062_v32  ;;  %v9811_v32 = vld [vmem:[#allocation36_spill] sm:$0xff]  ;;  %5088 = vperm.xlu0 %5512, %v5082_v55  }
 0xc4b   : > { %4986 = vmatpush2.xpose.msra.mxu0 %v4943_v30  ;;  %v6263_v36 = vpop.eup %6262  ;;  %v4822_v60 = vpop.xlane.xlu0 %4821  ;;  %v9827_v30 = vld [vmem:[#allocation21_spill] sm:$0xff] }
 0xc4c   : > { %4987 = vmatprep.subr.mxu0 %v4942_v39  ;;  %6270 = vrcp.f32 %v4822_v60  ;;  %v4936_v13 = vmul.f32 %v6263_v36, %v9088_v54  ;;  %v4935_v42 = vmul.f32 %v6263_v36, %v9086_v62  ;;  %v9813_v62 = vld [vmem:[#allocation64_spill] sm:$0xff] }
 0xc4d   : > { %v6265_v1 = vpop.eup %6264  ;;  %v5083_v39 = vld [vmem:[%s9335_s3 + $0x8] sm:$0xff] }
 0xc4e   : > { %v4934_v22 = vmul.f32 %v6265_v1, %v9096_v10  ;;  %v4933_v34 = vmul.f32 %v6265_v1, %v9094_v40  ;;  %5093 = vperm.xlu1 %5513, %v5083_v39   ;;  %v9829_v1 = vld [vmem:[#allocation27_spill] sm:$0xff] }
 0xc4f   : > { %4988 = vmatpush2.xpose.msra.mxu0 %v4941_v57  ;;  %v4819_v9 = vpop.xlane.xlu1 %4818  ;;  %v5084_v57 = vld [vmem:[%s9335_s3 + $0x10] sm:$0xff] }
 0xc50   : > { %4989 = vmatprep.subr.mxu0 %v4940_v28  ;;  %6272 = vrcp.f32 %v4819_v9  ;;  %v5085_v28 = vld [vmem:[%s9335_s3 + $0x18] sm:$0xff]  ;;  %v9830_v9 = vld [vmem:[#allocation25_spill] sm:$0xff] }
 0xc51   : > { %v6267_v45 = vpop.eup %6266 }
 0xc52   : > { %v4932_v48 = vmul.f32 %v6267_v45, %v9811_v32  ;;  %v4931_v11 = vmul.f32 %v6267_v45, %v9812_v49  ;;  %5098 = vperm.xlu1 %5513, %v5084_v57   ;;  %v9833_v45 = vld [vmem:[#allocation58_spill] sm:$0xff] }
 0xc53   : > { %4990 = vmatpush2.xpose.msra.mxu0 %v4939_v12  ;;  %v4816_v3 = vpop.xlane.xlu0 %4815  ;;  %v9836_v32 = vld [vmem:[#allocation54_spill] sm:$0xff] }
 0xc54   : > { %4991 = vmatprep.subr.mxu0 %v4938_v53  ;;  %6274 = vrcp.f32 %v4816_v3  ;;  %v9834_v3 = vld [vmem:[#allocation56_spill] sm:$0xff]  ;;  %v9840_v49 = vld [vmem:[#allocation42_spill] sm:$0xff] }
 0xc55   : > { %v6269_v16 = vpop.eup %6268 }
 0xc56   : > { %v4930_v33 = vmul.f32 %v6269_v16, %v9813_v62  ;;  %v4929_v63 = vmul.f32 %v6269_v16, %v9814_v38  ;;  %5103 = vperm.xlu1 %5513, %v5085_v28   ;;  %v9838_v16 = vld [vmem:[#allocation41_spill] sm:$0xff]  ;;  %v9846_v38 = vld [vmem:[#allocation12_spill] sm:$0xff] }
 0xc57   : > { %4992 = vmatpush2.xpose.msra.mxu0 %v4937_v50  ;;  %v4813_v54 = vpop.xlane.xlu1 %4812  ;;  %v9842_v62 = vld [vmem:[#allocation37_spill] sm:$0xff] }
 0xc58   : > { %4993 = vmatprep.subr.mxu0 %v4936_v13  ;;  %6276 = vrcp.f32 %v4813_v54  ;;  %v9839_v54 = vld [vmem:[#allocation32_spill] sm:$0xff] }
 0xc59   : > { %v6271_v52 = vpop.eup %6270 }
 0xc5a   : > { %v4928_v40 = vmul.f32 %v6271_v52, %v9120_v43  ;;  %v4927_v14 = vmul.f32 %v6271_v52, %v9118_v20  ;;  %v9815_v43 = vld [vmem:[#allocation63_spill] sm:$0xff]  ;;  %v9817_v20 = vld [vmem:[#allocation49_spill] sm:$0xff]  ;;  %v9844_v52 = vld [vmem:[#allocation20_spill] sm:$0xff] }
 0xc5b   : > { %4994 = vmatpush2.xpose.msra.mxu0 %v4935_v42  ;;  %v4810_v10 = vpop.xlane.xlu0 %4809  ;;  %v9831_v42 = vld [vmem:[#allocation23_spill] sm:$0xff] }
 0xc5c   : > { %4995 = vmatprep.subr.mxu0 %v4934_v22  ;;  %6278 = vrcp.f32 %v4810_v10  ;;  %v9832_v22 = vld [vmem:[#allocation48_spill] sm:$0xff]  ;;  %v9845_v10 = vld [vmem:[#allocation14_spill] sm:$0xff] }
 0xc5d   : > { %v6273_v58 = vpop.eup %6272 }
 0xc5e   : > { %v4926_v4 = vmul.f32 %v6273_v58, %v9128_v29  ;;  %v4925_v7 = vmul.f32 %v6273_v58, %v9126_v59  ;;  %v9818_v29 = vld [vmem:[#allocation61_spill] sm:$0xff]  ;;  %v9819_v59 = vld [vmem:[#allocation40_spill] sm:$0xff] }
 0xc5f   : > { %4996 = vmatpush2.xpose.msra.mxu0 %v4933_v34  ;;  %v4807_v26 = vpop.xlane.xlu1 %4806  ;;  %v9835_v34 = vld [vmem:[#allocation57_spill] sm:$0xff]  ;;  %v9849_v58 = vld [vmem:[#allocation8_spill] sm:$0xff] }
 0xc60   : > { %4997 = vmatprep.subr.mxu0 %v4932_v48  ;;  %6280 = vrcp.f32 %v4807_v26  ;;  %v9837_v48 = vld [vmem:[#allocation34_spill] sm:$0xff]  ;;  %v9850_v26 = vld [vmem:[#allocation11_spill] sm:$0xff] }
 0xc61   : > { %v6275_v19 = vpop.eup %6274 }
 0xc62   : > { %v4924_v46 = vmul.f32 %v6275_v19, %v9134_v8  ;;  %v4923_v5 = vmul.f32 %v6275_v19, %v9815_v43  ;;  %v9852_v19 = vld [vmem:[#allocation7_spill] sm:$0xff] }
 0xc63   : > { %4998 = vmatpush2.xpose.msra.mxu0 %v4931_v11  ;;  %v9841_v11 = vld [vmem:[#allocation35_spill] sm:$0xff] }
 0xc64   : > { %4999 = vmatprep.subr.mxu0 %v4930_v33  ;;  %v9843_v33 = vld [vmem:[#allocation22_spill] sm:$0xff] }
 0xc65   : > { %v6277_v56 = vpop.eup %6276 }
 0xc66   : > { %v4922_v27 = vmul.f32 %v6277_v56, %v9816_v61  ;;  %v4921_v37 = vmul.f32 %v6277_v56, %v9817_v20  ;;  %v5049_v56 = vld [vmem:[%s9334_s2 + $0x18] sm:$0xff] }
 0xc67   : > { %5000 = vmatpush2.xpose.msra.mxu0 %v4929_v63  ;;  %v9847_v63 = vld [vmem:[#allocation10_spill] sm:$0xff] }
 0xc68   : > { %5001 = vmatprep.subr.mxu0 %v4928_v40  ;;  %v9848_v40 = vld [vmem:[#allocation13_spill] sm:$0xff] }
 0xc69   : > { %v6279_v18 = vpop.eup %6278 }
 0xc6a   : > { %v4920_v2 = vmul.f32 %v6279_v18, %v9818_v29  ;;  %v4919_v41 = vmul.f32 %v6279_v18, %v9819_v59 }
 0xc6b   : > { %5002 = vmatpush2.xpose.msra.mxu0 %v4927_v14  ;;  %v5046_v14 = vld [vmem:[%s9334_s2] sm:$0xff] }
 0xc6c   : > { %5003 = vmatprep.subr.mxu0 %v4926_v4  ;;  %v9851_v4 = vld [vmem:[#allocation9_spill] sm:$0xff] }
 0xc6d   : > { %v6281_v17 = vpop.eup %6280 }
 0xc6e   : > { %v4918_v8 = vmul.f32 %v6281_v17, %v9152_v47  ;;  %v4917_v24 = vmul.f32 %v6281_v17, %v9820_v31  ;;  %v9828_v47 = vmov 0.0  }
 0xc6f   : > { %5004 = vmatpush2.xpose.msra.mxu0 %v4925_v7  ;;  %v5047_v7 = vld [vmem:[%s9334_s2 + $0x8] sm:$0xff] }
 0xc70   : > { %5005 = vmatprep.subr.mxu0 %v4924_v46  ;;  %v5048_v46 = vld [vmem:[%s9334_s2 + $0x10] sm:$0xff] }
 0xc73   : > { %5006 = vmatpush2.xpose.msra.mxu0 %v4923_v5 }
 0xc74   : > { %5007 = vmatprep.subr.mxu0 %v4922_v27 }
 0xc77   : > { %5008 = vmatpush2.xpose.msra.mxu0 %v4921_v37 }
 0xc78   : > { %5009 = vmatprep.subr.mxu0 %v4920_v2 }
 0xc7b   : > { %5010 = vmatpush2.xpose.msra.mxu0 %v4919_v41 }
 0xc7c   : > { %5011 = vmatprep.subr.mxu0 %v4918_v8 }
 0xc7f   : > { %5012 = vmatpush2.xpose.msra.mxu0 %v4917_v24 }
 0xc82   : > { %5014 = vmatmul.mubr.f32.vlgmr.msra.gmra.mxu0 %v9821_v6 }
 0xc83   : > { %5019 = vmatprep.mubr.f32.mxu0 %v9822_v51 }
 0xc86   : > { %5020 = vmatmul.mubr.f32.gmra.mxu0 %v9823_v44 }
 0xc87   : > { %5025 = vmatprep.mubr.f32.mxu0 %v9824_v21 }
 0xc8a   : > { %5026 = vmatmul.mubr.f32.gmra.mxu0 %v9825_v35 }
 0xc8b   : > { %5031 = vmatprep.mubr.f32.mxu0 %v9826_v23 }
 0xc8e   : > { %5032 = vmatmul.mubr.f32.gmra.mxu0 %v9827_v30 }
 0xc8f   : > { %5170 = vmatprep.mubr.f32.mxu0 %v9828_v47 }
 0xcc4   : > { %v5089_v43 = vpop.permute.xlu0 %5088 }
 0xcc9   : > { %v5094_v61 = vpop.permute.xlu1 %5093 }
 0xccd   : > { %v5099_v17 = vpop.permute.xlu1 %5098 }
 0xcd1   : > { %v5104_v51 = vpop.permute.xlu1 %5103 }
 0xd42   : > { %v5015_v25 = vpop.f32.mrf.mxu0 }
 0xd44   : > { %v5017_v15 = vpop.f32.mrf.mxu0 }
 0xd46   : > { %v5021_v12 = vpop.f32.mrf.mxu0 }
 0xd48   : > { %v5023_v53 = vpop.f32.mrf.mxu0 }
 0xd4a   : > { %v5027_v36 = vpop.f32.mrf.mxu0 }
 0xd4c   : > { %v5029_v60 = vpop.f32.mrf.mxu0 }
 0xd4e   : > { %v5033_v50 = vpop.f32.mrf.mxu0 }
 0xd50   : > { %v5035_v13 = vpop.f32.mrf.mxu0 }
 0xd51   : > { %5106 = vmatprep.subr.mxu0 %v5035_v13 }
 0xd52   : > { %5107 = vmatpush1.msra.mxu0 %v5033_v50 }
 0xd53   : > { %5108 = vmatprep.subr.mxu0 %v5029_v60 }
 0xd54   : > { %5109 = vmatpush1.msra.mxu0 %v5027_v36 }
 0xd55   : > { %5110 = vmatprep.subr.mxu0 %v5023_v53 }
 0xd56   : > { %5111 = vmatpush1.msra.mxu0 %v5021_v12 }
 0xd57   : > { %5112 = vmatprep.subr.mxu0 %v5017_v15 }
 0xd58   : > { %5113 = vmatpush1.msra.mxu0 %v5015_v25 }
 0xd59   : > { %5114 = vmatprep.subr.mxu0 %v9829_v1 }
 0xd5a   : > { %5115 = vmatpush1.msra.mxu0 %v9830_v9 }
 0xd5b   : > { %5116 = vmatprep.subr.mxu0 %v9831_v42 }
 0xd5c   : > { %5117 = vmatpush1.msra.mxu0 %v9832_v22 }
 0xd5d   : > { %5118 = vmatprep.subr.mxu0 %v9833_v45 }
 0xd5e   : > { %5119 = vmatpush1.msra.mxu0 %v9834_v3 }
 0xd5f   : > { %5120 = vmatprep.subr.mxu0 %v9835_v34 }
 0xd60   : > { %5121 = vmatpush1.msra.mxu0 %v9836_v32 }
 0xd61   : > { %5122 = vmatprep.subr.mxu0 %v9837_v48 }
 0xd62   : > { %5123 = vmatpush1.msra.mxu0 %v9838_v16 }
 0xd63   : > { %5124 = vmatprep.subr.mxu0 %v9839_v54 }
 0xd64   : > { %5125 = vmatpush1.msra.mxu0 %v9840_v49 }
 0xd65   : > { %5126 = vmatprep.subr.mxu0 %v9841_v11 }
 0xd66   : > { %5127 = vmatpush1.msra.mxu0 %v9842_v62 }
 0xd67   : > { %5128 = vmatprep.subr.mxu0 %v9843_v33 }
 0xd68   : > { %5129 = vmatpush1.msra.mxu0 %v9844_v52 }
 0xd69   : > { %5130 = vmatprep.subr.mxu0 %v9845_v10 }
 0xd6a   : > { %5131 = vmatpush1.msra.mxu0 %v9846_v38 }
 0xd6b   : > { %5132 = vmatprep.subr.mxu0 %v9847_v63 }
 0xd6c   : > { %5133 = vmatpush1.msra.mxu0 %v9848_v40 }
 0xd6d   : > { %5134 = vmatprep.subr.mxu0 %v9849_v58 }
 0xd6e   : > { %5135 = vmatpush1.msra.mxu0 %v9850_v26 }
 0xd6f   : > { %5136 = vmatprep.subr.mxu0 %v9851_v4 }
 0xd70   : > { %5137 = vmatpush1.msra.mxu0 %v9852_v19 }
 0xd71   : > { %5171 = vmatmul.mubr.f32.vlgmr.msra.gmra.mxu0 %v5046_v14 }
 0xd72   : > { %5176 = vmatprep.mubr.f32.mxu0 %v9828_v47 }
 0xd75   : > { %5177 = vmatmul.mubr.f32.gmra.mxu0 %v5047_v7 }
 0xd76   : > { %5182 = vmatprep.mubr.f32.mxu0 %v9828_v47 }
 0xd79   : > { %5183 = vmatmul.mubr.f32.gmra.mxu0 %v5048_v46 }
 0xd7a   : > { %5188 = vmatprep.mubr.f32.mxu0 %v9828_v47 }
 0xd7d   : > { %5189 = vmatmul.mubr.f32.gmra.mxu0 %v5049_v56 }
 0xe31   : > { %v5172_v5 = vpop.f32.mrf.mxu0 }
 0xe32   : > { %v5173_v27 = vadd.f32 %v5172_v5, %v5089_v43 }
 0xe33   : > { %v5174_v18 = vpop.f32.mrf.mxu0 }
 0xe34   : > { %v5175_v20 = vadd.f32 %v5174_v18, %v5089_v43  ;;  %5195 = vst [vmem:[%s190_s27] sm:$0xff] %v5173_v27 }
 0xe35   : > { %v5178_v37 = vpop.f32.mrf.mxu0 }
 0xe36   : > { %v5179_v29 = vadd.f32 %v5178_v37, %v5094_v61  ;;  %5196 = vst [vmem:[%s190_s27 + $0x8] sm:$0xff] %v5175_v20 }
 0xe37   : > { %v5180_v2 = vpop.f32.mrf.mxu0 }
 0xe38   : > { %5197 = vst [vmem:[%s190_s27 + $0x10] sm:$0xff] %v5179_v29  ;;  %v5181_v59 = vadd.f32 %v5180_v2, %v5094_v61 }
 0xe39   : > { %v5184_v41 = vpop.f32.mrf.mxu0 }
 0xe3a   : > { %5198 = vst [vmem:[%s190_s27 + $0x18] sm:$0xff] %v5181_v59  ;;  %v5185_v8 = vadd.f32 %v5184_v41, %v5099_v17 }
 0xe3b   : > { %v5186_v31 = vpop.f32.mrf.mxu0 }
 0xe3c   : > { %5199 = vst [vmem:[%s190_s27 + $0x20] sm:$0xff] %v5185_v8  ;;  %v5187_v24 = vadd.f32 %v5186_v31, %v5099_v17 }
 0xe3d   : > { %v5190_v6 = vpop.f32.mrf.mxu0 }
 0xe3e   : > { %5200 = vst [vmem:[%s190_s27 + $0x28] sm:$0xff] %v5187_v24  ;;  %v5191_v44 = vadd.f32 %v5190_v6, %v5104_v51 }
 0xe3f   : > { %v5192_v21 = vpop.f32.mrf.mxu0 }
 0xe40   : > { %5201 = vst [vmem:[%s190_s27 + $0x30] sm:$0xff] %v5191_v44  ;;  %v5193_v35 = vadd.f32 %v5192_v21, %v5104_v51 }
 0xe42   : > { %5202 = vst [vmem:[%s190_s27 + $0x38] sm:$0xff] %v5193_v35 }
 0xe43   : > { %6295 = shalt.err (!%p6292_p3)
}
 0xe44   : > { %s6296_s11 = scalar_lea.hbm %s9286_s6, 1024  ;;  %s6300_s14 = scalar_lea.hbm %s9336_s4, 2048 }
 0xe45   : > { %p6297_p4 = scmp.ne.s32.totalorder %s9286_s6, %s6296_s11  ;;  %p6301_p9 = scmp.lt.s32.totalorder %s9286_s6, %s9336_s4 }
 0xe46   : > { %p6302_p10 = scmp.lt.s32.totalorder %s6300_s14, %s6296_s11 }
 0xe47   : > { %p6298_p7 = pnand %p6297_p4, %p6412_p5 }
 0xe48   : > { %p6303_p11 = por %p6302_p10, %p6301_p9 }
 0xe49   : > { %p6299_p8 = pneg %p6298_p7 }
 0xe4b   : > { %p6304_p12 = pnand %p6303_p11, %p6299_p8 }
 0xe4d   : > { %6307 = shalt.err (!%p6304_p12)
}
 0xe4e   : > { %s6347_s23 = smov 256   ;;  %s6348_s27 = smov 16  }
 0xe4f   : > { %5469 = dma.vmem_to_hbm [thread:$0]  (%p6412_p5), %s9288_s29, 1024, %s9286_s6, %s9292_s19, %s6347_s23, %s6347_s23, %s6348_s27  }
 0xe50 PF: > { %p5475_p13 = scmp.ge.s32.totalorder %s6342_s18, 2  ;;  %s5232_s28 = sand.u32 1, %s6330_s15  }
 0xe51   : > { %s5233_s30 = scalar_lea.sflag [#allocation5], %s5232_s28 }
 0xe52   : > { %p5472_p0 = pnand %p5475_p13, %p6416_p6 }
 0xe54   : > { %p5473_p1 = pneg %p5472_p0 }
 0xe56   : > { %6325 = dma.done.wait (%p5473_p1), %s5233_s30, 1024  }
 0xe57   : > { %6327 = vsyncadd (%p5473_p1), %s5233_s30, 4294966272  ;;  %p14_p2 = scmp.ge.s32.totalorder %s6399_s21, 4   ;;  %s9853_s15 = smov %s6334_s16 }
 0xe58   : > { %s9854_s16 = smov %s6338_s17  ;;  %s9855_s17 = smov %s6410_s24 }
 0xe59   : > { %s9856_s18 = smov %s6399_s21  ;;  %16 = sbr.rel (!%p14_p2) target bundleno = 3 (0x3), region = 71 }
 0xe5e   :  { %5238 = vsyncpa [#allocation5], 1 }
 0xe5f   :  { %5240 = vsyncpa [#allocation5 + $0x1], 1 }

</bundles_post_ra>
